<compile_context>
chip_gen: v6e
topology: v6e:2x2x1
jax: 0.10.0
libtpu: 0.0.40
codegen_flags: <defaults>
</compile_context>

<pallas_src>
import jax
import jax.numpy as jnp
from jax.experimental import pallas as pl
from jax.experimental.pallas import tpu as pltpu


# ------------------------------ geometry (16x16 input) -------------------------
CPAD = 128                 # channel padding (lane width)
KH1, KW1, CIN1 = 15, 15, 3
K1 = KH1 * KW1 * CIN1      # 675
K1_PAD = 768               # next multiple of 128
H1 = W1 = 10               # conv1 output spatial: 16 + 2*4 - 15 + 1
HP = WP = 3                # pooled spatial: floor(10 / 3)
PAD2 = 2                   # conv2 padding
HP2 = HP + 2 * PAD2        # 7 (padded pooled map)
H2 = W2 = 3                # conv2 output spatial: 3 + 4 - 5 + 1
PAD3 = 2                   # conv3 padding
HP3 = H2 + 2 * PAD3        # 7 (padded conv2 map)
H3 = W3 = 5                # conv3 output spatial: 3 + 4 - 3 + 1


# ------------------------------ fused Pallas kernel ----------------------------

def _descriptor_kernel(cols1_ref, w1_ref, b1_ref, w2_ref, b2_ref, w3_ref, b3_ref,
                       out_ref,
                       act1_ref, pool_ref, cols2_ref, act2_ref, cols3_ref):
    f32 = jnp.float32

    # ---- conv1 + bias + ReLU : single MXU matmul (100,768) @ (768,128) --------
    h1 = jnp.dot(cols1_ref[0], w1_ref[...], preferred_element_type=f32)
    act1_ref[...] = jnp.maximum(h1 + b1_ref[...], 0.0)            # (100, 128)

    # ---- 3x3 stride-3 max-pool (floor mode), lane-dense over channels ---------
    # Results are written straight into the zero-padded 7x7 map conv2 consumes.
    pool_ref[...] = jnp.zeros_like(pool_ref)
    for py in range(HP):
        for px in range(WP):
            b0 = (3 * py) * W1 + 3 * px
            s = jnp.maximum(
                jnp.maximum(act1_ref[b0:b0 + 3, :],
                            act1_ref[b0 + W1:b0 + W1 + 3, :]),
                act1_ref[b0 + 2 * W1:b0 + 2 * W1 + 3, :])          # (3, 128)
            row = (PAD2 + py) * HP2 + (PAD2 + px)
            pool_ref[row:row + 1, :] = jnp.max(s, axis=0, keepdims=True)

    # ---- conv2 + bias + ReLU : im2col assembled in VMEM, one MXU matmul -------
    for i in range(5):
        for j in range(5):
            c0 = (i * 5 + j) * CPAD
            for oy in range(H2):
                src = (i + oy) * HP2 + j
                cols2_ref[oy * W2:(oy + 1) * W2, c0:c0 + CPAD] = \
                    pool_ref[src:src + W2, :]
    h2 = jnp.dot(cols2_ref[...], w2_ref[...], preferred_element_type=f32)
    h2 = jnp.maximum(h2 + b2_ref[...], 0.0)                        # (9, 128)

    # scatter conv2 output into the zero-padded 7x7 map conv3 consumes
    act2_ref[...] = jnp.zeros_like(act2_ref)
    for oy in range(H2):
        dst = (PAD3 + oy) * HP3 + PAD3
        act2_ref[dst:dst + W2, :] = h2[oy * W2:(oy + 1) * W2, :]

    # ---- conv3 + bias + ReLU : im2col assembled in VMEM, one MXU matmul -------
    for i in range(3):
        for j in range(3):
            c0 = (i * 3 + j) * CPAD
            for oy in range(H3):
                src = (i + oy) * HP3 + j
                cols3_ref[oy * W3:(oy + 1) * W3, c0:c0 + CPAD] = \
                    act2_ref[src:src + W3, :]
    h3 = jnp.dot(cols3_ref[...], w3_ref[...], preferred_element_type=f32)
    out_ref[0] = jnp.maximum(h3 + b3_ref[...], 0.0)                # (25, 128)


# ------------------------------ one-time weight packing ------------------------

def prepare_params(params):
    """Pack/pad all weights & biases once: (kh,kw,cin)-major rows, 128 out lanes."""
    def pack_w(w_oihw, cin_pad):
        cout, cin, kh, kw = w_oihw.shape
        w = jnp.transpose(w_oihw, (2, 3, 1, 0)).astype(jnp.float32)   # (kh,kw,cin,cout)
        w = jnp.pad(w, ((0, 0), (0, 0), (0, cin_pad - cin), (0, CPAD - cout)))
        return w.reshape(kh * kw * cin_pad, CPAD)

    def pack_b(b):
        return jnp.pad(b.astype(jnp.float32), (0, CPAD - b.shape[0])).reshape(1, CPAD)

    w1 = pack_w(params["w1"], cin_pad=CIN1)                            # (675, 128)
    w1 = jnp.pad(w1, ((0, K1_PAD - K1), (0, 0)))                       # (768, 128)
    return {
        "w1": w1,                         "b1": pack_b(params["b1"]),
        "w2": pack_w(params["w2"], CPAD), "b2": pack_b(params["b2"]),  # (3200, 128)
        "w3": pack_w(params["w3"], CPAD), "b3": pack_b(params["b3"]),  # (1152, 128)
    }


# ------------------------------ forward (glue + one pallas_call) ---------------

def _im2col_conv1(x_nhwc):
    """im2col for conv1 (15x15, pad 4, stride 1) with (kh, kw, cin) column order."""
    n = x_nhwc.shape[0]
    xp = jnp.pad(x_nhwc, ((0, 0), (4, 4), (4, 4), (0, 0)))
    patches = []
    for i in range(KH1):
        for j in range(KW1):
            patches.append(xp[:, i:i + H1, j:j + W1, :])
    cols = jnp.stack(patches, axis=3).reshape(n, H1 * W1, K1)
    return jnp.pad(cols, ((0, 0), (0, 0), (0, K1_PAD - K1)))           # (n, 100, 768)


@jax.jit
def descriptor_forward(x_nchw, packed):
    n = x_nchw.shape[0]
    x = jnp.transpose(x_nchw, (0, 2, 3, 1)).astype(jnp.float32)        # NCHW -> NHWC
    cols1 = _im2col_conv1(x)

    y = pl.pallas_call(
        _descriptor_kernel,
        out_shape=jax.ShapeDtypeStruct((n, H3 * W3, CPAD), jnp.float32),
        grid_spec=pltpu.PrefetchScalarGridSpec(
            num_scalar_prefetch=0,
            grid=(n,),
            in_specs=[
                pl.BlockSpec((1, H1 * W1, K1_PAD), lambda b: (b, 0, 0)),  # conv1 im2col
                pl.BlockSpec((K1_PAD, CPAD), lambda b: (0, 0)),           # w1
                pl.BlockSpec((1, CPAD), lambda b: (0, 0)),                # b1
                pl.BlockSpec((25 * CPAD, CPAD), lambda b: (0, 0)),        # w2
                pl.BlockSpec((1, CPAD), lambda b: (0, 0)),                # b2
                pl.BlockSpec((9 * CPAD, CPAD), lambda b: (0, 0)),         # w3
                pl.BlockSpec((1, CPAD), lambda b: (0, 0)),                # b3
            ],
            out_specs=pl.BlockSpec((1, H3 * W3, CPAD), lambda b: (b, 0, 0)),
            scratch_shapes=[
                pltpu.VMEM((H1 * W1, CPAD), jnp.float32),        # conv1 activations
                pltpu.VMEM((HP2 * HP2, CPAD), jnp.float32),      # padded pooled map
                pltpu.VMEM((H2 * W2, 25 * CPAD), jnp.float32),   # conv2 im2col
                pltpu.VMEM((HP3 * HP3, CPAD), jnp.float32),      # padded conv2 map
                pltpu.VMEM((H3 * W3, 9 * CPAD), jnp.float32),    # conv3 im2col
            ]),
        compiler_params=pltpu.CompilerParams(
            dimension_semantics=("parallel",)),
    )(cols1, packed["w1"], packed["b1"], packed["w2"], packed["b2"],
      packed["w3"], packed["b3"])

    y = y.reshape(n, H3, W3, CPAD)[..., :30]          # drop channel padding
    y = jnp.transpose(y, (0, 3, 1, 2))                # NHWC -> NCHW
    return jnp.squeeze(y)                             # matches PyTorch x.squeeze()


# ------------------------------ reference (pure XLA) ---------------------------

def _ref_forward(x, params):
    def conv(x, w, b, pad):
        y = jax.lax.conv_general_dilated(
            x, w, (1, 1), [(pad, pad), (pad, pad)],
            dimension_numbers=("NCHW", "OIHW", "NCHW"))
        return jnp.maximum(y + b[None, :, None, None], 0.0)

    x = conv(x, params["w1"], params["b1"], 4)
    x = jax.lax.reduce_window(x, -jnp.inf, jax.lax.max,
                              (1, 1, 3, 3), (1, 1, 3, 3), "VALID")
    x = conv(x, params["w2"], params["b2"], 2)
    x = conv(x, params["w3"], params["b3"], 2)
    return jnp.squeeze(x)


# ------------------------------ main --------------------------------------------

if __name__ == "__main__":
    key = jax.random.PRNGKey(0)
    k = jax.random.split(key, 7)

    params = {
        "w1": 0.05 * jax.random.normal(k[0], (100, 3, 15, 15), jnp.float32),
        "b1": 0.05 * jax.random.normal(k[1], (100,), jnp.float32),
        "w2": 0.05 * jax.random.normal(k[2], (64, 100, 5, 5), jnp.float32),
        "b2": 0.05 * jax.random.normal(k[3], (64,), jnp.float32),
        "w3": 0.05 * jax.random.normal(k[4], (30, 64, 3, 3), jnp.float32),
        "b3": 0.05 * jax.random.normal(k[5], (30,), jnp.float32),
    }

    # Input like PyTorch NCHW: (batch=2, channels=3, 16, 16)
    x = jax.random.normal(k[6], (2, 3, 16, 16), jnp.float32)

    packed = prepare_params(params)                  # one-time weight packing

    out = jax.block_until_ready(descriptor_forward(x, packed))
    ref = jax.block_until_ready(_ref_forward(x, params))

    assert out.shape == ref.shape, (out.shape, ref.shape)   # expected (2, 30, 5, 5)
    assert jnp.allclose(out, ref, atol=1e-3, rtol=1e-3), float(jnp.max(jnp.abs(out - ref)))

    print("KERNEL_OK")
</pallas_src>

<mosaic_0001>
module attributes {stable_mosaic.version = 11 : i64} {
  func.func @_descriptor_kernel(%arg0: i32, %arg1: memref<1x100x768xf32, #tpu.memory_space<vmem>>, %arg2: memref<768x128xf32, #tpu.memory_space<vmem>>, %arg3: memref<1x128xf32, #tpu.memory_space<vmem>>, %arg4: memref<3200x128xf32, #tpu.memory_space<vmem>>, %arg5: memref<1x128xf32, #tpu.memory_space<vmem>>, %arg6: memref<1152x128xf32, #tpu.memory_space<vmem>>, %arg7: memref<1x128xf32, #tpu.memory_space<vmem>>, %arg8: memref<1x25x128xf32, #tpu.memory_space<vmem>>, %arg9: memref<100x128xf32, #tpu.memory_space<vmem>>, %arg10: memref<49x128xf32, #tpu.memory_space<vmem>>, %arg11: memref<9x3200xf32, #tpu.memory_space<vmem>>, %arg12: memref<49x128xf32, #tpu.memory_space<vmem>>, %arg13: memref<25x1152xf32, #tpu.memory_space<vmem>>) attributes {dimension_semantics = [#tpu.dimension_semantics<parallel>], iteration_bounds = array<i64: 2>, scalar_prefetch = 0 : i64, scratch_operands = 5 : i64, tpu.core_type = #tpu.core_type<tc>, window_params = [{transform_indices = @transform_0, window_bounds = array<i64: 1, 100, 768>}, {pipeline_mode = #tpu.pipeline_mode<synchronous>, transform_indices = @transform_1, window_bounds = array<i64: 768, 128>}, {pipeline_mode = #tpu.pipeline_mode<synchronous>, transform_indices = @transform_2, window_bounds = array<i64: 1, 128>}, {pipeline_mode = #tpu.pipeline_mode<synchronous>, transform_indices = @transform_3, window_bounds = array<i64: 3200, 128>}, {pipeline_mode = #tpu.pipeline_mode<synchronous>, transform_indices = @transform_4, window_bounds = array<i64: 1, 128>}, {pipeline_mode = #tpu.pipeline_mode<synchronous>, transform_indices = @transform_5, window_bounds = array<i64: 1152, 128>}, {pipeline_mode = #tpu.pipeline_mode<synchronous>, transform_indices = @transform_6, window_bounds = array<i64: 1, 128>}, {transform_indices = @transform_7, window_bounds = array<i64: 1, 25, 128>}]} {
    %c0 = arith.constant 0 : index
    %c0_0 = arith.constant 0 : index
    %c0_1 = arith.constant 0 : index
    %0 = vector.load %arg1[%c0, %c0_0, %c0_1] : memref<1x100x768xf32, #tpu.memory_space<vmem>>, vector<1x100x768xf32>
    %1 = vector.shape_cast %0 : vector<1x100x768xf32> to vector<100x768xf32>
    %c0_2 = arith.constant 0 : index
    %c0_3 = arith.constant 0 : index
    %2 = vector.load %arg2[%c0_2, %c0_3] : memref<768x128xf32, #tpu.memory_space<vmem>>, vector<768x128xf32>
    %cst = arith.constant dense<0.000000e+00> : vector<100x128xf32>
    %3 = tpu.matmul %1, %2, %cst {dimension_numbers = #tpu.dot_dimension_numbers<[1], [0], [0], [1], [0, 0, 1, 1], [], []>} : vector<100x768xf32>, vector<768x128xf32>, vector<100x128xf32> -> vector<100x128xf32>
    %c0_4 = arith.constant 0 : index
    %c0_5 = arith.constant 0 : index
    %4 = vector.load %arg3[%c0_4, %c0_5] : memref<1x128xf32, #tpu.memory_space<vmem>>, vector<1x128xf32>
    %5 = vector.broadcast %4 : vector<1x128xf32> to vector<100x128xf32>
    %6 = arith.addf %3, %5 : vector<100x128xf32>
    %cst_6 = arith.constant 0.000000e+00 : f32
    %7 = vector.broadcast %cst_6 : f32 to vector<100x128xf32>
    %8 = arith.maximumf %6, %7 : vector<100x128xf32>
    %c0_7 = arith.constant 0 : index
    %c0_8 = arith.constant 0 : index
    %9 = vector.load %arg9[%c0_7, %c0_8] : memref<100x128xf32, #tpu.memory_space<vmem>>, vector<100x128xf32>
    tpu.vector_store %arg9[%c0_7, %c0_8], %8 {strides = array<i32>} : memref<100x128xf32, #tpu.memory_space<vmem>>, vector<100x128xf32>,
    %cst_9 = arith.constant 0.000000e+00 : f32
    %10 = vector.broadcast %cst_9 : f32 to vector<49x128xf32>
    %c0_10 = arith.constant 0 : index
    %c0_11 = arith.constant 0 : index
    %11 = vector.load %arg10[%c0_10, %c0_11] : memref<49x128xf32, #tpu.memory_space<vmem>>, vector<49x128xf32>
    tpu.vector_store %arg10[%c0_10, %c0_11], %10 {strides = array<i32>} : memref<49x128xf32, #tpu.memory_space<vmem>>, vector<49x128xf32>,
    %c0_12 = arith.constant 0 : index
    %c0_13 = arith.constant 0 : index
    %12 = vector.load %arg9[%c0_12, %c0_13] : memref<100x128xf32, #tpu.memory_space<vmem>>, vector<3x128xf32>
    %c10 = arith.constant 10 : index
    %c0_14 = arith.constant 0 : index
    %13 = vector.load %arg9[%c10, %c0_14] : memref<100x128xf32, #tpu.memory_space<vmem>>, vector<3x128xf32>
    %14 = arith.maximumf %12, %13 : vector<3x128xf32>
    %c20 = arith.constant 20 : index
    %c0_15 = arith.constant 0 : index
    %15 = vector.load %arg9[%c20, %c0_15] : memref<100x128xf32, #tpu.memory_space<vmem>>, vector<3x128xf32>
    %16 = arith.maximumf %14, %15 : vector<3x128xf32>
    %cst_16 = arith.constant dense<0xFF800000> : vector<128xf32>
    %17 = vector.multi_reduction <maximumf>, %16, %cst_16 [0] : vector<3x128xf32> to vector<128xf32>
    %18 = vector.shape_cast %17 : vector<128xf32> to vector<1x128xf32>
    %c16 = arith.constant 16 : index
    %c0_17 = arith.constant 0 : index
    %19 = vector.load %arg10[%c16, %c0_17] : memref<49x128xf32, #tpu.memory_space<vmem>>, vector<1x128xf32>
    tpu.vector_store %arg10[%c16, %c0_17], %18 {strides = array<i32>} : memref<49x128xf32, #tpu.memory_space<vmem>>, vector<1x128xf32>,
    %c3 = arith.constant 3 : index
    %c0_18 = arith.constant 0 : index
    %20 = vector.load %arg9[%c3, %c0_18] : memref<100x128xf32, #tpu.memory_space<vmem>>, vector<3x128xf32>
    %c13 = arith.constant 13 : index
    %c0_19 = arith.constant 0 : index
    %21 = vector.load %arg9[%c13, %c0_19] : memref<100x128xf32, #tpu.memory_space<vmem>>, vector<3x128xf32>
    %22 = arith.maximumf %20, %21 : vector<3x128xf32>
    %c23 = arith.constant 23 : index
    %c0_20 = arith.constant 0 : index
    %23 = vector.load %arg9[%c23, %c0_20] : memref<100x128xf32, #tpu.memory_space<vmem>>, vector<3x128xf32>
    %24 = arith.maximumf %22, %23 : vector<3x128xf32>
    %cst_21 = arith.constant dense<0xFF800000> : vector<128xf32>
    %25 = vector.multi_reduction <maximumf>, %24, %cst_21 [0] : vector<3x128xf32> to vector<128xf32>
    %26 = vector.shape_cast %25 : vector<128xf32> to vector<1x128xf32>
    %c17 = arith.constant 17 : index
    %c0_22 = arith.constant 0 : index
    %27 = vector.load %arg10[%c17, %c0_22] : memref<49x128xf32, #tpu.memory_space<vmem>>, vector<1x128xf32>
    tpu.vector_store %arg10[%c17, %c0_22], %26 {strides = array<i32>} : memref<49x128xf32, #tpu.memory_space<vmem>>, vector<1x128xf32>,
    %c6 = arith.constant 6 : index
    %c0_23 = arith.constant 0 : index
    %28 = vector.load %arg9[%c6, %c0_23] : memref<100x128xf32, #tpu.memory_space<vmem>>, vector<3x128xf32>
    %c16_24 = arith.constant 16 : index
    %c0_25 = arith.constant 0 : index
    %29 = vector.load %arg9[%c16_24, %c0_25] : memref<100x128xf32, #tpu.memory_space<vmem>>, vector<3x128xf32>
    %30 = arith.maximumf %28, %29 : vector<3x128xf32>
    %c26 = arith.constant 26 : index
    %c0_26 = arith.constant 0 : index
    %31 = vector.load %arg9[%c26, %c0_26] : memref<100x128xf32, #tpu.memory_space<vmem>>, vector<3x128xf32>
    %32 = arith.maximumf %30, %31 : vector<3x128xf32>
    %cst_27 = arith.constant dense<0xFF800000> : vector<128xf32>
    %33 = vector.multi_reduction <maximumf>, %32, %cst_27 [0] : vector<3x128xf32> to vector<128xf32>
    %34 = vector.shape_cast %33 : vector<128xf32> to vector<1x128xf32>
    %c18 = arith.constant 18 : index
    %c0_28 = arith.constant 0 : index
    %35 = vector.load %arg10[%c18, %c0_28] : memref<49x128xf32, #tpu.memory_space<vmem>>, vector<1x128xf32>
    tpu.vector_store %arg10[%c18, %c0_28], %34 {strides = array<i32>} : memref<49x128xf32, #tpu.memory_space<vmem>>, vector<1x128xf32>,
    %c30 = arith.constant 30 : index
    %c0_29 = arith.constant 0 : index
    %36 = vector.load %arg9[%c30, %c0_29] : memref<100x128xf32, #tpu.memory_space<vmem>>, vector<3x128xf32>
    %c40 = arith.constant 40 : index
    %c0_30 = arith.constant 0 : index
    %37 = vector.load %arg9[%c40, %c0_30] : memref<100x128xf32, #tpu.memory_space<vmem>>, vector<3x128xf32>
    %38 = arith.maximumf %36, %37 : vector<3x128xf32>
    %c50 = arith.constant 50 : index
    %c0_31 = arith.constant 0 : index
    %39 = vector.load %arg9[%c50, %c0_31] : memref<100x128xf32, #tpu.memory_space<vmem>>, vector<3x128xf32>
    %40 = arith.maximumf %38, %39 : vector<3x128xf32>
    %cst_32 = arith.constant dense<0xFF800000> : vector<128xf32>
    %41 = vector.multi_reduction <maximumf>, %40, %cst_32 [0] : vector<3x128xf32> to vector<128xf32>
    %42 = vector.shape_cast %41 : vector<128xf32> to vector<1x128xf32>
    %c23_33 = arith.constant 23 : index
    %c0_34 = arith.constant 0 : index
    %43 = vector.load %arg10[%c23_33, %c0_34] : memref<49x128xf32, #tpu.memory_space<vmem>>, vector<1x128xf32>
    tpu.vector_store %arg10[%c23_33, %c0_34], %42 {strides = array<i32>} : memref<49x128xf32, #tpu.memory_space<vmem>>, vector<1x128xf32>,
    %c33 = arith.constant 33 : index
    %c0_35 = arith.constant 0 : index
    %44 = vector.load %arg9[%c33, %c0_35] : memref<100x128xf32, #tpu.memory_space<vmem>>, vector<3x128xf32>
    %c43 = arith.constant 43 : index
    %c0_36 = arith.constant 0 : index
    %45 = vector.load %arg9[%c43, %c0_36] : memref<100x128xf32, #tpu.memory_space<vmem>>, vector<3x128xf32>
    %46 = arith.maximumf %44, %45 : vector<3x128xf32>
    %c53 = arith.constant 53 : index
    %c0_37 = arith.constant 0 : index
    %47 = vector.load %arg9[%c53, %c0_37] : memref<100x128xf32, #tpu.memory_space<vmem>>, vector<3x128xf32>
    %48 = arith.maximumf %46, %47 : vector<3x128xf32>
    %cst_38 = arith.constant dense<0xFF800000> : vector<128xf32>
    %49 = vector.multi_reduction <maximumf>, %48, %cst_38 [0] : vector<3x128xf32> to vector<128xf32>
    %50 = vector.shape_cast %49 : vector<128xf32> to vector<1x128xf32>
    %c24 = arith.constant 24 : index
    %c0_39 = arith.constant 0 : index
    %51 = vector.load %arg10[%c24, %c0_39] : memref<49x128xf32, #tpu.memory_space<vmem>>, vector<1x128xf32>
    tpu.vector_store %arg10[%c24, %c0_39], %50 {strides = array<i32>} : memref<49x128xf32, #tpu.memory_space<vmem>>, vector<1x128xf32>,
    %c36 = arith.constant 36 : index
    %c0_40 = arith.constant 0 : index
    %52 = vector.load %arg9[%c36, %c0_40] : memref<100x128xf32, #tpu.memory_space<vmem>>, vector<3x128xf32>
    %c46 = arith.constant 46 : index
    %c0_41 = arith.constant 0 : index
    %53 = vector.load %arg9[%c46, %c0_41] : memref<100x128xf32, #tpu.memory_space<vmem>>, vector<3x128xf32>
    %54 = arith.maximumf %52, %53 : vector<3x128xf32>
    %c56 = arith.constant 56 : index
    %c0_42 = arith.constant 0 : index
    %55 = vector.load %arg9[%c56, %c0_42] : memref<100x128xf32, #tpu.memory_space<vmem>>, vector<3x128xf32>
    %56 = arith.maximumf %54, %55 : vector<3x128xf32>
    %cst_43 = arith.constant dense<0xFF800000> : vector<128xf32>
    %57 = vector.multi_reduction <maximumf>, %56, %cst_43 [0] : vector<3x128xf32> to vector<128xf32>
    %58 = vector.shape_cast %57 : vector<128xf32> to vector<1x128xf32>
    %c25 = arith.constant 25 : index
    %c0_44 = arith.constant 0 : index
    %59 = vector.load %arg10[%c25, %c0_44] : memref<49x128xf32, #tpu.memory_space<vmem>>, vector<1x128xf32>
    tpu.vector_store %arg10[%c25, %c0_44], %58 {strides = array<i32>} : memref<49x128xf32, #tpu.memory_space<vmem>>, vector<1x128xf32>,
    %c60 = arith.constant 60 : index
    %c0_45 = arith.constant 0 : index
    %60 = vector.load %arg9[%c60, %c0_45] : memref<100x128xf32, #tpu.memory_space<vmem>>, vector<3x128xf32>
    %c70 = arith.constant 70 : index
    %c0_46 = arith.constant 0 : index
    %61 = vector.load %arg9[%c70, %c0_46] : memref<100x128xf32, #tpu.memory_space<vmem>>, vector<3x128xf32>
    %62 = arith.maximumf %60, %61 : vector<3x128xf32>
    %c80 = arith.constant 80 : index
    %c0_47 = arith.constant 0 : index
    %63 = vector.load %arg9[%c80, %c0_47] : memref<100x128xf32, #tpu.memory_space<vmem>>, vector<3x128xf32>
    %64 = arith.maximumf %62, %63 : vector<3x128xf32>
    %cst_48 = arith.constant dense<0xFF800000> : vector<128xf32>
    %65 = vector.multi_reduction <maximumf>, %64, %cst_48 [0] : vector<3x128xf32> to vector<128xf32>
    %66 = vector.shape_cast %65 : vector<128xf32> to vector<1x128xf32>
    %c30_49 = arith.constant 30 : index
    %c0_50 = arith.constant 0 : index
    %67 = vector.load %arg10[%c30_49, %c0_50] : memref<49x128xf32, #tpu.memory_space<vmem>>, vector<1x128xf32>
    tpu.vector_store %arg10[%c30_49, %c0_50], %66 {strides = array<i32>} : memref<49x128xf32, #tpu.memory_space<vmem>>, vector<1x128xf32>,
    %c63 = arith.constant 63 : index
    %c0_51 = arith.constant 0 : index
    %68 = vector.load %arg9[%c63, %c0_51] : memref<100x128xf32, #tpu.memory_space<vmem>>, vector<3x128xf32>
    %c73 = arith.constant 73 : index
    %c0_52 = arith.constant 0 : index
    %69 = vector.load %arg9[%c73, %c0_52] : memref<100x128xf32, #tpu.memory_space<vmem>>, vector<3x128xf32>
    %70 = arith.maximumf %68, %69 : vector<3x128xf32>
    %c83 = arith.constant 83 : index
    %c0_53 = arith.constant 0 : index
    %71 = vector.load %arg9[%c83, %c0_53] : memref<100x128xf32, #tpu.memory_space<vmem>>, vector<3x128xf32>
    %72 = arith.maximumf %70, %71 : vector<3x128xf32>
    %cst_54 = arith.constant dense<0xFF800000> : vector<128xf32>
    %73 = vector.multi_reduction <maximumf>, %72, %cst_54 [0] : vector<3x128xf32> to vector<128xf32>
    %74 = vector.shape_cast %73 : vector<128xf32> to vector<1x128xf32>
    %c31 = arith.constant 31 : index
    %c0_55 = arith.constant 0 : index
    %75 = vector.load %arg10[%c31, %c0_55] : memref<49x128xf32, #tpu.memory_space<vmem>>, vector<1x128xf32>
    tpu.vector_store %arg10[%c31, %c0_55], %74 {strides = array<i32>} : memref<49x128xf32, #tpu.memory_space<vmem>>, vector<1x128xf32>,
    %c66 = arith.constant 66 : index
    %c0_56 = arith.constant 0 : index
    %76 = vector.load %arg9[%c66, %c0_56] : memref<100x128xf32, #tpu.memory_space<vmem>>, vector<3x128xf32>
    %c76 = arith.constant 76 : index
    %c0_57 = arith.constant 0 : index
    %77 = vector.load %arg9[%c76, %c0_57] : memref<100x128xf32, #tpu.memory_space<vmem>>, vector<3x128xf32>
    %78 = arith.maximumf %76, %77 : vector<3x128xf32>
    %c86 = arith.constant 86 : index
    %c0_58 = arith.constant 0 : index
    %79 = vector.load %arg9[%c86, %c0_58] : memref<100x128xf32, #tpu.memory_space<vmem>>, vector<3x128xf32>
    %80 = arith.maximumf %78, %79 : vector<3x128xf32>
    %cst_59 = arith.constant dense<0xFF800000> : vector<128xf32>
    %81 = vector.multi_reduction <maximumf>, %80, %cst_59 [0] : vector<3x128xf32> to vector<128xf32>
    %82 = vector.shape_cast %81 : vector<128xf32> to vector<1x128xf32>
    %c32 = arith.constant 32 : index
    %c0_60 = arith.constant 0 : index
    %83 = vector.load %arg10[%c32, %c0_60] : memref<49x128xf32, #tpu.memory_space<vmem>>, vector<1x128xf32>
    tpu.vector_store %arg10[%c32, %c0_60], %82 {strides = array<i32>} : memref<49x128xf32, #tpu.memory_space<vmem>>, vector<1x128xf32>,
    %c0_61 = arith.constant 0 : index
    %c0_62 = arith.constant 0 : index
    %84 = vector.load %arg10[%c0_61, %c0_62] : memref<49x128xf32, #tpu.memory_space<vmem>>, vector<3x128xf32>
    %c0_63 = arith.constant 0 : index
    %c0_64 = arith.constant 0 : index
    %85 = vector.load %arg11[%c0_63, %c0_64] : memref<9x3200xf32, #tpu.memory_space<vmem>>, vector<3x128xf32>
    tpu.vector_store %arg11[%c0_63, %c0_64], %84 {strides = array<i32>} : memref<9x3200xf32, #tpu.memory_space<vmem>>, vector<3x128xf32>,
    %c7 = arith.constant 7 : index
    %c0_65 = arith.constant 0 : index
    %86 = vector.load %arg10[%c7, %c0_65] : memref<49x128xf32, #tpu.memory_space<vmem>>, vector<3x128xf32>
    %c3_66 = arith.constant 3 : index
    %c0_67 = arith.constant 0 : index
    %87 = vector.load %arg11[%c3_66, %c0_67] : memref<9x3200xf32, #tpu.memory_space<vmem>>, vector<3x128xf32>
    tpu.vector_store %arg11[%c3_66, %c0_67], %86 {strides = array<i32>} : memref<9x3200xf32, #tpu.memory_space<vmem>>, vector<3x128xf32>,
    %c14 = arith.constant 14 : index
    %c0_68 = arith.constant 0 : index
    %88 = vector.load %arg10[%c14, %c0_68] : memref<49x128xf32, #tpu.memory_space<vmem>>, vector<3x128xf32>
    %c6_69 = arith.constant 6 : index
    %c0_70 = arith.constant 0 : index
    %89 = vector.load %arg11[%c6_69, %c0_70] : memref<9x3200xf32, #tpu.memory_space<vmem>>, vector<3x128xf32>
    tpu.vector_store %arg11[%c6_69, %c0_70], %88 {strides = array<i32>} : memref<9x3200xf32, #tpu.memory_space<vmem>>, vector<3x128xf32>,
    %c1 = arith.constant 1 : index
    %c0_71 = arith.constant 0 : index
    %90 = vector.load %arg10[%c1, %c0_71] : memref<49x128xf32, #tpu.memory_space<vmem>>, vector<3x128xf32>
    %c0_72 = arith.constant 0 : index
    %c128 = arith.constant 128 : index
    %91 = vector.load %arg11[%c0_72, %c128] : memref<9x3200xf32, #tpu.memory_space<vmem>>, vector<3x128xf32>
    tpu.vector_store %arg11[%c0_72, %c128], %90 {strides = array<i32>} : memref<9x3200xf32, #tpu.memory_space<vmem>>, vector<3x128xf32>,
    %c8 = arith.constant 8 : index
    %c0_73 = arith.constant 0 : index
    %92 = vector.load %arg10[%c8, %c0_73] : memref<49x128xf32, #tpu.memory_space<vmem>>, vector<3x128xf32>
    %c3_74 = arith.constant 3 : index
    %c128_75 = arith.constant 128 : index
    %93 = vector.load %arg11[%c3_74, %c128_75] : memref<9x3200xf32, #tpu.memory_space<vmem>>, vector<3x128xf32>
    tpu.vector_store %arg11[%c3_74, %c128_75], %92 {strides = array<i32>} : memref<9x3200xf32, #tpu.memory_space<vmem>>, vector<3x128xf32>,
    %c15 = arith.constant 15 : index
    %c0_76 = arith.constant 0 : index
    %94 = vector.load %arg10[%c15, %c0_76] : memref<49x128xf32, #tpu.memory_space<vmem>>, vector<3x128xf32>
    %c6_77 = arith.constant 6 : index
    %c128_78 = arith.constant 128 : index
    %95 = vector.load %arg11[%c6_77, %c128_78] : memref<9x3200xf32, #tpu.memory_space<vmem>>, vector<3x128xf32>
    tpu.vector_store %arg11[%c6_77, %c128_78], %94 {strides = array<i32>} : memref<9x3200xf32, #tpu.memory_space<vmem>>, vector<3x128xf32>,
    %c2 = arith.constant 2 : index
    %c0_79 = arith.constant 0 : index
    %96 = vector.load %arg10[%c2, %c0_79] : memref<49x128xf32, #tpu.memory_space<vmem>>, vector<3x128xf32>
    %c0_80 = arith.constant 0 : index
    %c256 = arith.constant 256 : index
    %97 = vector.load %arg11[%c0_80, %c256] : memref<9x3200xf32, #tpu.memory_space<vmem>>, vector<3x128xf32>
    tpu.vector_store %arg11[%c0_80, %c256], %96 {strides = array<i32>} : memref<9x3200xf32, #tpu.memory_space<vmem>>, vector<3x128xf32>,
    %c9 = arith.constant 9 : index
    %c0_81 = arith.constant 0 : index
    %98 = vector.load %arg10[%c9, %c0_81] : memref<49x128xf32, #tpu.memory_space<vmem>>, vector<3x128xf32>
    %c3_82 = arith.constant 3 : index
    %c256_83 = arith.constant 256 : index
    %99 = vector.load %arg11[%c3_82, %c256_83] : memref<9x3200xf32, #tpu.memory_space<vmem>>, vector<3x128xf32>
    tpu.vector_store %arg11[%c3_82, %c256_83], %98 {strides = array<i32>} : memref<9x3200xf32, #tpu.memory_space<vmem>>, vector<3x128xf32>,
    %c16_84 = arith.constant 16 : index
    %c0_85 = arith.constant 0 : index
    %100 = vector.load %arg10[%c16_84, %c0_85] : memref<49x128xf32, #tpu.memory_space<vmem>>, vector<3x128xf32>
    %c6_86 = arith.constant 6 : index
    %c256_87 = arith.constant 256 : index
    %101 = vector.load %arg11[%c6_86, %c256_87] : memref<9x3200xf32, #tpu.memory_space<vmem>>, vector<3x128xf32>
    tpu.vector_store %arg11[%c6_86, %c256_87], %100 {strides = array<i32>} : memref<9x3200xf32, #tpu.memory_space<vmem>>, vector<3x128xf32>,
    %c3_88 = arith.constant 3 : index
    %c0_89 = arith.constant 0 : index
    %102 = vector.load %arg10[%c3_88, %c0_89] : memref<49x128xf32, #tpu.memory_space<vmem>>, vector<3x128xf32>
    %c0_90 = arith.constant 0 : index
    %c384 = arith.constant 384 : index
    %103 = vector.load %arg11[%c0_90, %c384] : memref<9x3200xf32, #tpu.memory_space<vmem>>, vector<3x128xf32>
    tpu.vector_store %arg11[%c0_90, %c384], %102 {strides = array<i32>} : memref<9x3200xf32, #tpu.memory_space<vmem>>, vector<3x128xf32>,
    %c10_91 = arith.constant 10 : index
    %c0_92 = arith.constant 0 : index
    %104 = vector.load %arg10[%c10_91, %c0_92] : memref<49x128xf32, #tpu.memory_space<vmem>>, vector<3x128xf32>
    %c3_93 = arith.constant 3 : index
    %c384_94 = arith.constant 384 : index
    %105 = vector.load %arg11[%c3_93, %c384_94] : memref<9x3200xf32, #tpu.memory_space<vmem>>, vector<3x128xf32>
    tpu.vector_store %arg11[%c3_93, %c384_94], %104 {strides = array<i32>} : memref<9x3200xf32, #tpu.memory_space<vmem>>, vector<3x128xf32>,
    %c17_95 = arith.constant 17 : index
    %c0_96 = arith.constant 0 : index
    %106 = vector.load %arg10[%c17_95, %c0_96] : memref<49x128xf32, #tpu.memory_space<vmem>>, vector<3x128xf32>
    %c6_97 = arith.constant 6 : index
    %c384_98 = arith.constant 384 : index
    %107 = vector.load %arg11[%c6_97, %c384_98] : memref<9x3200xf32, #tpu.memory_space<vmem>>, vector<3x128xf32>
    tpu.vector_store %arg11[%c6_97, %c384_98], %106 {strides = array<i32>} : memref<9x3200xf32, #tpu.memory_space<vmem>>, vector<3x128xf32>,
    %c4 = arith.constant 4 : index
    %c0_99 = arith.constant 0 : index
    %108 = vector.load %arg10[%c4, %c0_99] : memref<49x128xf32, #tpu.memory_space<vmem>>, vector<3x128xf32>
    %c0_100 = arith.constant 0 : index
    %c512 = arith.constant 512 : index
    %109 = vector.load %arg11[%c0_100, %c512] : memref<9x3200xf32, #tpu.memory_space<vmem>>, vector<3x128xf32>
    tpu.vector_store %arg11[%c0_100, %c512], %108 {strides = array<i32>} : memref<9x3200xf32, #tpu.memory_space<vmem>>, vector<3x128xf32>,
    %c11 = arith.constant 11 : index
    %c0_101 = arith.constant 0 : index
    %110 = vector.load %arg10[%c11, %c0_101] : memref<49x128xf32, #tpu.memory_space<vmem>>, vector<3x128xf32>
    %c3_102 = arith.constant 3 : index
    %c512_103 = arith.constant 512 : index
    %111 = vector.load %arg11[%c3_102, %c512_103] : memref<9x3200xf32, #tpu.memory_space<vmem>>, vector<3x128xf32>
    tpu.vector_store %arg11[%c3_102, %c512_103], %110 {strides = array<i32>} : memref<9x3200xf32, #tpu.memory_space<vmem>>, vector<3x128xf32>,
    %c18_104 = arith.constant 18 : index
    %c0_105 = arith.constant 0 : index
    %112 = vector.load %arg10[%c18_104, %c0_105] : memref<49x128xf32, #tpu.memory_space<vmem>>, vector<3x128xf32>
    %c6_106 = arith.constant 6 : index
    %c512_107 = arith.constant 512 : index
    %113 = vector.load %arg11[%c6_106, %c512_107] : memref<9x3200xf32, #tpu.memory_space<vmem>>, vector<3x128xf32>
    tpu.vector_store %arg11[%c6_106, %c512_107], %112 {strides = array<i32>} : memref<9x3200xf32, #tpu.memory_space<vmem>>, vector<3x128xf32>,
    %c7_108 = arith.constant 7 : index
    %c0_109 = arith.constant 0 : index
    %114 = vector.load %arg10[%c7_108, %c0_109] : memref<49x128xf32, #tpu.memory_space<vmem>>, vector<3x128xf32>
    %c0_110 = arith.constant 0 : index
    %c640 = arith.constant 640 : index
    %115 = vector.load %arg11[%c0_110, %c640] : memref<9x3200xf32, #tpu.memory_space<vmem>>, vector<3x128xf32>
    tpu.vector_store %arg11[%c0_110, %c640], %114 {strides = array<i32>} : memref<9x3200xf32, #tpu.memory_space<vmem>>, vector<3x128xf32>,
    %c14_111 = arith.constant 14 : index
    %c0_112 = arith.constant 0 : index
    %116 = vector.load %arg10[%c14_111, %c0_112] : memref<49x128xf32, #tpu.memory_space<vmem>>, vector<3x128xf32>
    %c3_113 = arith.constant 3 : index
    %c640_114 = arith.constant 640 : index
    %117 = vector.load %arg11[%c3_113, %c640_114] : memref<9x3200xf32, #tpu.memory_space<vmem>>, vector<3x128xf32>
    tpu.vector_store %arg11[%c3_113, %c640_114], %116 {strides = array<i32>} : memref<9x3200xf32, #tpu.memory_space<vmem>>, vector<3x128xf32>,
    %c21 = arith.constant 21 : index
    %c0_115 = arith.constant 0 : index
    %118 = vector.load %arg10[%c21, %c0_115] : memref<49x128xf32, #tpu.memory_space<vmem>>, vector<3x128xf32>
    %c6_116 = arith.constant 6 : index
    %c640_117 = arith.constant 640 : index
    %119 = vector.load %arg11[%c6_116, %c640_117] : memref<9x3200xf32, #tpu.memory_space<vmem>>, vector<3x128xf32>
    tpu.vector_store %arg11[%c6_116, %c640_117], %118 {strides = array<i32>} : memref<9x3200xf32, #tpu.memory_space<vmem>>, vector<3x128xf32>,
    %c8_118 = arith.constant 8 : index
    %c0_119 = arith.constant 0 : index
    %120 = vector.load %arg10[%c8_118, %c0_119] : memref<49x128xf32, #tpu.memory_space<vmem>>, vector<3x128xf32>
    %c0_120 = arith.constant 0 : index
    %c768 = arith.constant 768 : index
    %121 = vector.load %arg11[%c0_120, %c768] : memref<9x3200xf32, #tpu.memory_space<vmem>>, vector<3x128xf32>
    tpu.vector_store %arg11[%c0_120, %c768], %120 {strides = array<i32>} : memref<9x3200xf32, #tpu.memory_space<vmem>>, vector<3x128xf32>,
    %c15_121 = arith.constant 15 : index
    %c0_122 = arith.constant 0 : index
    %122 = vector.load %arg10[%c15_121, %c0_122] : memref<49x128xf32, #tpu.memory_space<vmem>>, vector<3x128xf32>
    %c3_123 = arith.constant 3 : index
    %c768_124 = arith.constant 768 : index
    %123 = vector.load %arg11[%c3_123, %c768_124] : memref<9x3200xf32, #tpu.memory_space<vmem>>, vector<3x128xf32>
    tpu.vector_store %arg11[%c3_123, %c768_124], %122 {strides = array<i32>} : memref<9x3200xf32, #tpu.memory_space<vmem>>, vector<3x128xf32>,
    %c22 = arith.constant 22 : index
    %c0_125 = arith.constant 0 : index
    %124 = vector.load %arg10[%c22, %c0_125] : memref<49x128xf32, #tpu.memory_space<vmem>>, vector<3x128xf32>
    %c6_126 = arith.constant 6 : index
    %c768_127 = arith.constant 768 : index
    %125 = vector.load %arg11[%c6_126, %c768_127] : memref<9x3200xf32, #tpu.memory_space<vmem>>, vector<3x128xf32>
    tpu.vector_store %arg11[%c6_126, %c768_127], %124 {strides = array<i32>} : memref<9x3200xf32, #tpu.memory_space<vmem>>, vector<3x128xf32>,
    %c9_128 = arith.constant 9 : index
    %c0_129 = arith.constant 0 : index
    %126 = vector.load %arg10[%c9_128, %c0_129] : memref<49x128xf32, #tpu.memory_space<vmem>>, vector<3x128xf32>
    %c0_130 = arith.constant 0 : index
    %c896 = arith.constant 896 : index
    %127 = vector.load %arg11[%c0_130, %c896] : memref<9x3200xf32, #tpu.memory_space<vmem>>, vector<3x128xf32>
    tpu.vector_store %arg11[%c0_130, %c896], %126 {strides = array<i32>} : memref<9x3200xf32, #tpu.memory_space<vmem>>, vector<3x128xf32>,
    %c16_131 = arith.constant 16 : index
    %c0_132 = arith.constant 0 : index
    %128 = vector.load %arg10[%c16_131, %c0_132] : memref<49x128xf32, #tpu.memory_space<vmem>>, vector<3x128xf32>
    %c3_133 = arith.constant 3 : index
    %c896_134 = arith.constant 896 : index
    %129 = vector.load %arg11[%c3_133, %c896_134] : memref<9x3200xf32, #tpu.memory_space<vmem>>, vector<3x128xf32>
    tpu.vector_store %arg11[%c3_133, %c896_134], %128 {strides = array<i32>} : memref<9x3200xf32, #tpu.memory_space<vmem>>, vector<3x128xf32>,
    %c23_135 = arith.constant 23 : index
    %c0_136 = arith.constant 0 : index
    %130 = vector.load %arg10[%c23_135, %c0_136] : memref<49x128xf32, #tpu.memory_space<vmem>>, vector<3x128xf32>
    %c6_137 = arith.constant 6 : index
    %c896_138 = arith.constant 896 : index
    %131 = vector.load %arg11[%c6_137, %c896_138] : memref<9x3200xf32, #tpu.memory_space<vmem>>, vector<3x128xf32>
    tpu.vector_store %arg11[%c6_137, %c896_138], %130 {strides = array<i32>} : memref<9x3200xf32, #tpu.memory_space<vmem>>, vector<3x128xf32>,
    %c10_139 = arith.constant 10 : index
    %c0_140 = arith.constant 0 : index
    %132 = vector.load %arg10[%c10_139, %c0_140] : memref<49x128xf32, #tpu.memory_space<vmem>>, vector<3x128xf32>
    %c0_141 = arith.constant 0 : index
    %c1024 = arith.constant 1024 : index
    %133 = vector.load %arg11[%c0_141, %c1024] : memref<9x3200xf32, #tpu.memory_space<vmem>>, vector<3x128xf32>
    tpu.vector_store %arg11[%c0_141, %c1024], %132 {strides = array<i32>} : memref<9x3200xf32, #tpu.memory_space<vmem>>, vector<3x128xf32>,
    %c17_142 = arith.constant 17 : index
    %c0_143 = arith.constant 0 : index
    %134 = vector.load %arg10[%c17_142, %c0_143] : memref<49x128xf32, #tpu.memory_space<vmem>>, vector<3x128xf32>
    %c3_144 = arith.constant 3 : index
    %c1024_145 = arith.constant 1024 : index
    %135 = vector.load %arg11[%c3_144, %c1024_145] : memref<9x3200xf32, #tpu.memory_space<vmem>>, vector<3x128xf32>
    tpu.vector_store %arg11[%c3_144, %c1024_145], %134 {strides = array<i32>} : memref<9x3200xf32, #tpu.memory_space<vmem>>, vector<3x128xf32>,
    %c24_146 = arith.constant 24 : index
    %c0_147 = arith.constant 0 : index
    %136 = vector.load %arg10[%c24_146, %c0_147] : memref<49x128xf32, #tpu.memory_space<vmem>>, vector<3x128xf32>
    %c6_148 = arith.constant 6 : index
    %c1024_149 = arith.constant 1024 : index
    %137 = vector.load %arg11[%c6_148, %c1024_149] : memref<9x3200xf32, #tpu.memory_space<vmem>>, vector<3x128xf32>
    tpu.vector_store %arg11[%c6_148, %c1024_149], %136 {strides = array<i32>} : memref<9x3200xf32, #tpu.memory_space<vmem>>, vector<3x128xf32>,
    %c11_150 = arith.constant 11 : index
    %c0_151 = arith.constant 0 : index
    %138 = vector.load %arg10[%c11_150, %c0_151] : memref<49x128xf32, #tpu.memory_space<vmem>>, vector<3x128xf32>
    %c0_152 = arith.constant 0 : index
    %c1152 = arith.constant 1152 : index
    %139 = vector.load %arg11[%c0_152, %c1152] : memref<9x3200xf32, #tpu.memory_space<vmem>>, vector<3x128xf32>
    tpu.vector_store %arg11[%c0_152, %c1152], %138 {strides = array<i32>} : memref<9x3200xf32, #tpu.memory_space<vmem>>, vector<3x128xf32>,
    %c18_153 = arith.constant 18 : index
    %c0_154 = arith.constant 0 : index
    %140 = vector.load %arg10[%c18_153, %c0_154] : memref<49x128xf32, #tpu.memory_space<vmem>>, vector<3x128xf32>
    %c3_155 = arith.constant 3 : index
    %c1152_156 = arith.constant 1152 : index
    %141 = vector.load %arg11[%c3_155, %c1152_156] : memref<9x3200xf32, #tpu.memory_space<vmem>>, vector<3x128xf32>
    tpu.vector_store %arg11[%c3_155, %c1152_156], %140 {strides = array<i32>} : memref<9x3200xf32, #tpu.memory_space<vmem>>, vector<3x128xf32>,
    %c25_157 = arith.constant 25 : index
    %c0_158 = arith.constant 0 : index
    %142 = vector.load %arg10[%c25_157, %c0_158] : memref<49x128xf32, #tpu.memory_space<vmem>>, vector<3x128xf32>
    %c6_159 = arith.constant 6 : index
    %c1152_160 = arith.constant 1152 : index
    %143 = vector.load %arg11[%c6_159, %c1152_160] : memref<9x3200xf32, #tpu.memory_space<vmem>>, vector<3x128xf32>
    tpu.vector_store %arg11[%c6_159, %c1152_160], %142 {strides = array<i32>} : memref<9x3200xf32, #tpu.memory_space<vmem>>, vector<3x128xf32>,
    %c14_161 = arith.constant 14 : index
    %c0_162 = arith.constant 0 : index
    %144 = vector.load %arg10[%c14_161, %c0_162] : memref<49x128xf32, #tpu.memory_space<vmem>>, vector<3x128xf32>
    %c0_163 = arith.constant 0 : index
    %c1280 = arith.constant 1280 : index
    %145 = vector.load %arg11[%c0_163, %c1280] : memref<9x3200xf32, #tpu.memory_space<vmem>>, vector<3x128xf32>
    tpu.vector_store %arg11[%c0_163, %c1280], %144 {strides = array<i32>} : memref<9x3200xf32, #tpu.memory_space<vmem>>, vector<3x128xf32>,
    %c21_164 = arith.constant 21 : index
    %c0_165 = arith.constant 0 : index
    %146 = vector.load %arg10[%c21_164, %c0_165] : memref<49x128xf32, #tpu.memory_space<vmem>>, vector<3x128xf32>
    %c3_166 = arith.constant 3 : index
    %c1280_167 = arith.constant 1280 : index
    %147 = vector.load %arg11[%c3_166, %c1280_167] : memref<9x3200xf32, #tpu.memory_space<vmem>>, vector<3x128xf32>
    tpu.vector_store %arg11[%c3_166, %c1280_167], %146 {strides = array<i32>} : memref<9x3200xf32, #tpu.memory_space<vmem>>, vector<3x128xf32>,
    %c28 = arith.constant 28 : index
    %c0_168 = arith.constant 0 : index
    %148 = vector.load %arg10[%c28, %c0_168] : memref<49x128xf32, #tpu.memory_space<vmem>>, vector<3x128xf32>
    %c6_169 = arith.constant 6 : index
    %c1280_170 = arith.constant 1280 : index
    %149 = vector.load %arg11[%c6_169, %c1280_170] : memref<9x3200xf32, #tpu.memory_space<vmem>>, vector<3x128xf32>
    tpu.vector_store %arg11[%c6_169, %c1280_170], %148 {strides = array<i32>} : memref<9x3200xf32, #tpu.memory_space<vmem>>, vector<3x128xf32>,
    %c15_171 = arith.constant 15 : index
    %c0_172 = arith.constant 0 : index
    %150 = vector.load %arg10[%c15_171, %c0_172] : memref<49x128xf32, #tpu.memory_space<vmem>>, vector<3x128xf32>
    %c0_173 = arith.constant 0 : index
    %c1408 = arith.constant 1408 : index
    %151 = vector.load %arg11[%c0_173, %c1408] : memref<9x3200xf32, #tpu.memory_space<vmem>>, vector<3x128xf32>
    tpu.vector_store %arg11[%c0_173, %c1408], %150 {strides = array<i32>} : memref<9x3200xf32, #tpu.memory_space<vmem>>, vector<3x128xf32>,
    %c22_174 = arith.constant 22 : index
    %c0_175 = arith.constant 0 : index
    %152 = vector.load %arg10[%c22_174, %c0_175] : memref<49x128xf32, #tpu.memory_space<vmem>>, vector<3x128xf32>
    %c3_176 = arith.constant 3 : index
    %c1408_177 = arith.constant 1408 : index
    %153 = vector.load %arg11[%c3_176, %c1408_177] : memref<9x3200xf32, #tpu.memory_space<vmem>>, vector<3x128xf32>
    tpu.vector_store %arg11[%c3_176, %c1408_177], %152 {strides = array<i32>} : memref<9x3200xf32, #tpu.memory_space<vmem>>, vector<3x128xf32>,
    %c29 = arith.constant 29 : index
    %c0_178 = arith.constant 0 : index
    %154 = vector.load %arg10[%c29, %c0_178] : memref<49x128xf32, #tpu.memory_space<vmem>>, vector<3x128xf32>
    %c6_179 = arith.constant 6 : index
    %c1408_180 = arith.constant 1408 : index
    %155 = vector.load %arg11[%c6_179, %c1408_180] : memref<9x3200xf32, #tpu.memory_space<vmem>>, vector<3x128xf32>
    tpu.vector_store %arg11[%c6_179, %c1408_180], %154 {strides = array<i32>} : memref<9x3200xf32, #tpu.memory_space<vmem>>, vector<3x128xf32>,
    %c16_181 = arith.constant 16 : index
    %c0_182 = arith.constant 0 : index
    %156 = vector.load %arg10[%c16_181, %c0_182] : memref<49x128xf32, #tpu.memory_space<vmem>>, vector<3x128xf32>
    %c0_183 = arith.constant 0 : index
    %c1536 = arith.constant 1536 : index
    %157 = vector.load %arg11[%c0_183, %c1536] : memref<9x3200xf32, #tpu.memory_space<vmem>>, vector<3x128xf32>
    tpu.vector_store %arg11[%c0_183, %c1536], %156 {strides = array<i32>} : memref<9x3200xf32, #tpu.memory_space<vmem>>, vector<3x128xf32>,
    %c23_184 = arith.constant 23 : index
    %c0_185 = arith.constant 0 : index
    %158 = vector.load %arg10[%c23_184, %c0_185] : memref<49x128xf32, #tpu.memory_space<vmem>>, vector<3x128xf32>
    %c3_186 = arith.constant 3 : index
    %c1536_187 = arith.constant 1536 : index
    %159 = vector.load %arg11[%c3_186, %c1536_187] : memref<9x3200xf32, #tpu.memory_space<vmem>>, vector<3x128xf32>
    tpu.vector_store %arg11[%c3_186, %c1536_187], %158 {strides = array<i32>} : memref<9x3200xf32, #tpu.memory_space<vmem>>, vector<3x128xf32>,
    %c30_188 = arith.constant 30 : index
    %c0_189 = arith.constant 0 : index
    %160 = vector.load %arg10[%c30_188, %c0_189] : memref<49x128xf32, #tpu.memory_space<vmem>>, vector<3x128xf32>
    %c6_190 = arith.constant 6 : index
    %c1536_191 = arith.constant 1536 : index
    %161 = vector.load %arg11[%c6_190, %c1536_191] : memref<9x3200xf32, #tpu.memory_space<vmem>>, vector<3x128xf32>
    tpu.vector_store %arg11[%c6_190, %c1536_191], %160 {strides = array<i32>} : memref<9x3200xf32, #tpu.memory_space<vmem>>, vector<3x128xf32>,
    %c17_192 = arith.constant 17 : index
    %c0_193 = arith.constant 0 : index
    %162 = vector.load %arg10[%c17_192, %c0_193] : memref<49x128xf32, #tpu.memory_space<vmem>>, vector<3x128xf32>
    %c0_194 = arith.constant 0 : index
    %c1664 = arith.constant 1664 : index
    %163 = vector.load %arg11[%c0_194, %c1664] : memref<9x3200xf32, #tpu.memory_space<vmem>>, vector<3x128xf32>
    tpu.vector_store %arg11[%c0_194, %c1664], %162 {strides = array<i32>} : memref<9x3200xf32, #tpu.memory_space<vmem>>, vector<3x128xf32>,
    %c24_195 = arith.constant 24 : index
    %c0_196 = arith.constant 0 : index
    %164 = vector.load %arg10[%c24_195, %c0_196] : memref<49x128xf32, #tpu.memory_space<vmem>>, vector<3x128xf32>
    %c3_197 = arith.constant 3 : index
    %c1664_198 = arith.constant 1664 : index
    %165 = vector.load %arg11[%c3_197, %c1664_198] : memref<9x3200xf32, #tpu.memory_space<vmem>>, vector<3x128xf32>
    tpu.vector_store %arg11[%c3_197, %c1664_198], %164 {strides = array<i32>} : memref<9x3200xf32, #tpu.memory_space<vmem>>, vector<3x128xf32>,
    %c31_199 = arith.constant 31 : index
    %c0_200 = arith.constant 0 : index
    %166 = vector.load %arg10[%c31_199, %c0_200] : memref<49x128xf32, #tpu.memory_space<vmem>>, vector<3x128xf32>
    %c6_201 = arith.constant 6 : index
    %c1664_202 = arith.constant 1664 : index
    %167 = vector.load %arg11[%c6_201, %c1664_202] : memref<9x3200xf32, #tpu.memory_space<vmem>>, vector<3x128xf32>
    tpu.vector_store %arg11[%c6_201, %c1664_202], %166 {strides = array<i32>} : memref<9x3200xf32, #tpu.memory_space<vmem>>, vector<3x128xf32>,
    %c18_203 = arith.constant 18 : index
    %c0_204 = arith.constant 0 : index
    %168 = vector.load %arg10[%c18_203, %c0_204] : memref<49x128xf32, #tpu.memory_space<vmem>>, vector<3x128xf32>
    %c0_205 = arith.constant 0 : index
    %c1792 = arith.constant 1792 : index
    %169 = vector.load %arg11[%c0_205, %c1792] : memref<9x3200xf32, #tpu.memory_space<vmem>>, vector<3x128xf32>
    tpu.vector_store %arg11[%c0_205, %c1792], %168 {strides = array<i32>} : memref<9x3200xf32, #tpu.memory_space<vmem>>, vector<3x128xf32>,
    %c25_206 = arith.constant 25 : index
    %c0_207 = arith.constant 0 : index
    %170 = vector.load %arg10[%c25_206, %c0_207] : memref<49x128xf32, #tpu.memory_space<vmem>>, vector<3x128xf32>
    %c3_208 = arith.constant 3 : index
    %c1792_209 = arith.constant 1792 : index
    %171 = vector.load %arg11[%c3_208, %c1792_209] : memref<9x3200xf32, #tpu.memory_space<vmem>>, vector<3x128xf32>
    tpu.vector_store %arg11[%c3_208, %c1792_209], %170 {strides = array<i32>} : memref<9x3200xf32, #tpu.memory_space<vmem>>, vector<3x128xf32>,
    %c32_210 = arith.constant 32 : index
    %c0_211 = arith.constant 0 : index
    %172 = vector.load %arg10[%c32_210, %c0_211] : memref<49x128xf32, #tpu.memory_space<vmem>>, vector<3x128xf32>
    %c6_212 = arith.constant 6 : index
    %c1792_213 = arith.constant 1792 : index
    %173 = vector.load %arg11[%c6_212, %c1792_213] : memref<9x3200xf32, #tpu.memory_space<vmem>>, vector<3x128xf32>
    tpu.vector_store %arg11[%c6_212, %c1792_213], %172 {strides = array<i32>} : memref<9x3200xf32, #tpu.memory_space<vmem>>, vector<3x128xf32>,
    %c21_214 = arith.constant 21 : index
    %c0_215 = arith.constant 0 : index
    %174 = vector.load %arg10[%c21_214, %c0_215] : memref<49x128xf32, #tpu.memory_space<vmem>>, vector<3x128xf32>
    %c0_216 = arith.constant 0 : index
    %c1920 = arith.constant 1920 : index
    %175 = vector.load %arg11[%c0_216, %c1920] : memref<9x3200xf32, #tpu.memory_space<vmem>>, vector<3x128xf32>
    tpu.vector_store %arg11[%c0_216, %c1920], %174 {strides = array<i32>} : memref<9x3200xf32, #tpu.memory_space<vmem>>, vector<3x128xf32>,
    %c28_217 = arith.constant 28 : index
    %c0_218 = arith.constant 0 : index
    %176 = vector.load %arg10[%c28_217, %c0_218] : memref<49x128xf32, #tpu.memory_space<vmem>>, vector<3x128xf32>
    %c3_219 = arith.constant 3 : index
    %c1920_220 = arith.constant 1920 : index
    %177 = vector.load %arg11[%c3_219, %c1920_220] : memref<9x3200xf32, #tpu.memory_space<vmem>>, vector<3x128xf32>
    tpu.vector_store %arg11[%c3_219, %c1920_220], %176 {strides = array<i32>} : memref<9x3200xf32, #tpu.memory_space<vmem>>, vector<3x128xf32>,
    %c35 = arith.constant 35 : index
    %c0_221 = arith.constant 0 : index
    %178 = vector.load %arg10[%c35, %c0_221] : memref<49x128xf32, #tpu.memory_space<vmem>>, vector<3x128xf32>
    %c6_222 = arith.constant 6 : index
    %c1920_223 = arith.constant 1920 : index
    %179 = vector.load %arg11[%c6_222, %c1920_223] : memref<9x3200xf32, #tpu.memory_space<vmem>>, vector<3x128xf32>
    tpu.vector_store %arg11[%c6_222, %c1920_223], %178 {strides = array<i32>} : memref<9x3200xf32, #tpu.memory_space<vmem>>, vector<3x128xf32>,
    %c22_224 = arith.constant 22 : index
    %c0_225 = arith.constant 0 : index
    %180 = vector.load %arg10[%c22_224, %c0_225] : memref<49x128xf32, #tpu.memory_space<vmem>>, vector<3x128xf32>
    %c0_226 = arith.constant 0 : index
    %c2048 = arith.constant 2048 : index
    %181 = vector.load %arg11[%c0_226, %c2048] : memref<9x3200xf32, #tpu.memory_space<vmem>>, vector<3x128xf32>
    tpu.vector_store %arg11[%c0_226, %c2048], %180 {strides = array<i32>} : memref<9x3200xf32, #tpu.memory_space<vmem>>, vector<3x128xf32>,
    %c29_227 = arith.constant 29 : index
    %c0_228 = arith.constant 0 : index
    %182 = vector.load %arg10[%c29_227, %c0_228] : memref<49x128xf32, #tpu.memory_space<vmem>>, vector<3x128xf32>
    %c3_229 = arith.constant 3 : index
    %c2048_230 = arith.constant 2048 : index
    %183 = vector.load %arg11[%c3_229, %c2048_230] : memref<9x3200xf32, #tpu.memory_space<vmem>>, vector<3x128xf32>
    tpu.vector_store %arg11[%c3_229, %c2048_230], %182 {strides = array<i32>} : memref<9x3200xf32, #tpu.memory_space<vmem>>, vector<3x128xf32>,
    %c36_231 = arith.constant 36 : index
    %c0_232 = arith.constant 0 : index
    %184 = vector.load %arg10[%c36_231, %c0_232] : memref<49x128xf32, #tpu.memory_space<vmem>>, vector<3x128xf32>
    %c6_233 = arith.constant 6 : index
    %c2048_234 = arith.constant 2048 : index
    %185 = vector.load %arg11[%c6_233, %c2048_234] : memref<9x3200xf32, #tpu.memory_space<vmem>>, vector<3x128xf32>
    tpu.vector_store %arg11[%c6_233, %c2048_234], %184 {strides = array<i32>} : memref<9x3200xf32, #tpu.memory_space<vmem>>, vector<3x128xf32>,
    %c23_235 = arith.constant 23 : index
    %c0_236 = arith.constant 0 : index
    %186 = vector.load %arg10[%c23_235, %c0_236] : memref<49x128xf32, #tpu.memory_space<vmem>>, vector<3x128xf32>
    %c0_237 = arith.constant 0 : index
    %c2176 = arith.constant 2176 : index
    %187 = vector.load %arg11[%c0_237, %c2176] : memref<9x3200xf32, #tpu.memory_space<vmem>>, vector<3x128xf32>
    tpu.vector_store %arg11[%c0_237, %c2176], %186 {strides = array<i32>} : memref<9x3200xf32, #tpu.memory_space<vmem>>, vector<3x128xf32>,
    %c30_238 = arith.constant 30 : index
    %c0_239 = arith.constant 0 : index
    %188 = vector.load %arg10[%c30_238, %c0_239] : memref<49x128xf32, #tpu.memory_space<vmem>>, vector<3x128xf32>
    %c3_240 = arith.constant 3 : index
    %c2176_241 = arith.constant 2176 : index
    %189 = vector.load %arg11[%c3_240, %c2176_241] : memref<9x3200xf32, #tpu.memory_space<vmem>>, vector<3x128xf32>
    tpu.vector_store %arg11[%c3_240, %c2176_241], %188 {strides = array<i32>} : memref<9x3200xf32, #tpu.memory_space<vmem>>, vector<3x128xf32>,
    %c37 = arith.constant 37 : index
    %c0_242 = arith.constant 0 : index
    %190 = vector.load %arg10[%c37, %c0_242] : memref<49x128xf32, #tpu.memory_space<vmem>>, vector<3x128xf32>
    %c6_243 = arith.constant 6 : index
    %c2176_244 = arith.constant 2176 : index
    %191 = vector.load %arg11[%c6_243, %c2176_244] : memref<9x3200xf32, #tpu.memory_space<vmem>>, vector<3x128xf32>
    tpu.vector_store %arg11[%c6_243, %c2176_244], %190 {strides = array<i32>} : memref<9x3200xf32, #tpu.memory_space<vmem>>, vector<3x128xf32>,
    %c24_245 = arith.constant 24 : index
    %c0_246 = arith.constant 0 : index
    %192 = vector.load %arg10[%c24_245, %c0_246] : memref<49x128xf32, #tpu.memory_space<vmem>>, vector<3x128xf32>
    %c0_247 = arith.constant 0 : index
    %c2304 = arith.constant 2304 : index
    %193 = vector.load %arg11[%c0_247, %c2304] : memref<9x3200xf32, #tpu.memory_space<vmem>>, vector<3x128xf32>
    tpu.vector_store %arg11[%c0_247, %c2304], %192 {strides = array<i32>} : memref<9x3200xf32, #tpu.memory_space<vmem>>, vector<3x128xf32>,
    %c31_248 = arith.constant 31 : index
    %c0_249 = arith.constant 0 : index
    %194 = vector.load %arg10[%c31_248, %c0_249] : memref<49x128xf32, #tpu.memory_space<vmem>>, vector<3x128xf32>
    %c3_250 = arith.constant 3 : index
    %c2304_251 = arith.constant 2304 : index
    %195 = vector.load %arg11[%c3_250, %c2304_251] : memref<9x3200xf32, #tpu.memory_space<vmem>>, vector<3x128xf32>
    tpu.vector_store %arg11[%c3_250, %c2304_251], %194 {strides = array<i32>} : memref<9x3200xf32, #tpu.memory_space<vmem>>, vector<3x128xf32>,
    %c38 = arith.constant 38 : index
    %c0_252 = arith.constant 0 : index
    %196 = vector.load %arg10[%c38, %c0_252] : memref<49x128xf32, #tpu.memory_space<vmem>>, vector<3x128xf32>
    %c6_253 = arith.constant 6 : index
    %c2304_254 = arith.constant 2304 : index
    %197 = vector.load %arg11[%c6_253, %c2304_254] : memref<9x3200xf32, #tpu.memory_space<vmem>>, vector<3x128xf32>
    tpu.vector_store %arg11[%c6_253, %c2304_254], %196 {strides = array<i32>} : memref<9x3200xf32, #tpu.memory_space<vmem>>, vector<3x128xf32>,
    %c25_255 = arith.constant 25 : index
    %c0_256 = arith.constant 0 : index
    %198 = vector.load %arg10[%c25_255, %c0_256] : memref<49x128xf32, #tpu.memory_space<vmem>>, vector<3x128xf32>
    %c0_257 = arith.constant 0 : index
    %c2432 = arith.constant 2432 : index
    %199 = vector.load %arg11[%c0_257, %c2432] : memref<9x3200xf32, #tpu.memory_space<vmem>>, vector<3x128xf32>
    tpu.vector_store %arg11[%c0_257, %c2432], %198 {strides = array<i32>} : memref<9x3200xf32, #tpu.memory_space<vmem>>, vector<3x128xf32>,
    %c32_258 = arith.constant 32 : index
    %c0_259 = arith.constant 0 : index
    %200 = vector.load %arg10[%c32_258, %c0_259] : memref<49x128xf32, #tpu.memory_space<vmem>>, vector<3x128xf32>
    %c3_260 = arith.constant 3 : index
    %c2432_261 = arith.constant 2432 : index
    %201 = vector.load %arg11[%c3_260, %c2432_261] : memref<9x3200xf32, #tpu.memory_space<vmem>>, vector<3x128xf32>
    tpu.vector_store %arg11[%c3_260, %c2432_261], %200 {strides = array<i32>} : memref<9x3200xf32, #tpu.memory_space<vmem>>, vector<3x128xf32>,
    %c39 = arith.constant 39 : index
    %c0_262 = arith.constant 0 : index
    %202 = vector.load %arg10[%c39, %c0_262] : memref<49x128xf32, #tpu.memory_space<vmem>>, vector<3x128xf32>
    %c6_263 = arith.constant 6 : index
    %c2432_264 = arith.constant 2432 : index
    %203 = vector.load %arg11[%c6_263, %c2432_264] : memref<9x3200xf32, #tpu.memory_space<vmem>>, vector<3x128xf32>
    tpu.vector_store %arg11[%c6_263, %c2432_264], %202 {strides = array<i32>} : memref<9x3200xf32, #tpu.memory_space<vmem>>, vector<3x128xf32>,
    %c28_265 = arith.constant 28 : index
    %c0_266 = arith.constant 0 : index
    %204 = vector.load %arg10[%c28_265, %c0_266] : memref<49x128xf32, #tpu.memory_space<vmem>>, vector<3x128xf32>
    %c0_267 = arith.constant 0 : index
    %c2560 = arith.constant 2560 : index
    %205 = vector.load %arg11[%c0_267, %c2560] : memref<9x3200xf32, #tpu.memory_space<vmem>>, vector<3x128xf32>
    tpu.vector_store %arg11[%c0_267, %c2560], %204 {strides = array<i32>} : memref<9x3200xf32, #tpu.memory_space<vmem>>, vector<3x128xf32>,
    %c35_268 = arith.constant 35 : index
    %c0_269 = arith.constant 0 : index
    %206 = vector.load %arg10[%c35_268, %c0_269] : memref<49x128xf32, #tpu.memory_space<vmem>>, vector<3x128xf32>
    %c3_270 = arith.constant 3 : index
    %c2560_271 = arith.constant 2560 : index
    %207 = vector.load %arg11[%c3_270, %c2560_271] : memref<9x3200xf32, #tpu.memory_space<vmem>>, vector<3x128xf32>
    tpu.vector_store %arg11[%c3_270, %c2560_271], %206 {strides = array<i32>} : memref<9x3200xf32, #tpu.memory_space<vmem>>, vector<3x128xf32>,
    %c42 = arith.constant 42 : index
    %c0_272 = arith.constant 0 : index
    %208 = vector.load %arg10[%c42, %c0_272] : memref<49x128xf32, #tpu.memory_space<vmem>>, vector<3x128xf32>
    %c6_273 = arith.constant 6 : index
    %c2560_274 = arith.constant 2560 : index
    %209 = vector.load %arg11[%c6_273, %c2560_274] : memref<9x3200xf32, #tpu.memory_space<vmem>>, vector<3x128xf32>
    tpu.vector_store %arg11[%c6_273, %c2560_274], %208 {strides = array<i32>} : memref<9x3200xf32, #tpu.memory_space<vmem>>, vector<3x128xf32>,
    %c29_275 = arith.constant 29 : index
    %c0_276 = arith.constant 0 : index
    %210 = vector.load %arg10[%c29_275, %c0_276] : memref<49x128xf32, #tpu.memory_space<vmem>>, vector<3x128xf32>
    %c0_277 = arith.constant 0 : index
    %c2688 = arith.constant 2688 : index
    %211 = vector.load %arg11[%c0_277, %c2688] : memref<9x3200xf32, #tpu.memory_space<vmem>>, vector<3x128xf32>
    tpu.vector_store %arg11[%c0_277, %c2688], %210 {strides = array<i32>} : memref<9x3200xf32, #tpu.memory_space<vmem>>, vector<3x128xf32>,
    %c36_278 = arith.constant 36 : index
    %c0_279 = arith.constant 0 : index
    %212 = vector.load %arg10[%c36_278, %c0_279] : memref<49x128xf32, #tpu.memory_space<vmem>>, vector<3x128xf32>
    %c3_280 = arith.constant 3 : index
    %c2688_281 = arith.constant 2688 : index
    %213 = vector.load %arg11[%c3_280, %c2688_281] : memref<9x3200xf32, #tpu.memory_space<vmem>>, vector<3x128xf32>
    tpu.vector_store %arg11[%c3_280, %c2688_281], %212 {strides = array<i32>} : memref<9x3200xf32, #tpu.memory_space<vmem>>, vector<3x128xf32>,
    %c43_282 = arith.constant 43 : index
    %c0_283 = arith.constant 0 : index
    %214 = vector.load %arg10[%c43_282, %c0_283] : memref<49x128xf32, #tpu.memory_space<vmem>>, vector<3x128xf32>
    %c6_284 = arith.constant 6 : index
    %c2688_285 = arith.constant 2688 : index
    %215 = vector.load %arg11[%c6_284, %c2688_285] : memref<9x3200xf32, #tpu.memory_space<vmem>>, vector<3x128xf32>
    tpu.vector_store %arg11[%c6_284, %c2688_285], %214 {strides = array<i32>} : memref<9x3200xf32, #tpu.memory_space<vmem>>, vector<3x128xf32>,
    %c30_286 = arith.constant 30 : index
    %c0_287 = arith.constant 0 : index
    %216 = vector.load %arg10[%c30_286, %c0_287] : memref<49x128xf32, #tpu.memory_space<vmem>>, vector<3x128xf32>
    %c0_288 = arith.constant 0 : index
    %c2816 = arith.constant 2816 : index
    %217 = vector.load %arg11[%c0_288, %c2816] : memref<9x3200xf32, #tpu.memory_space<vmem>>, vector<3x128xf32>
    tpu.vector_store %arg11[%c0_288, %c2816], %216 {strides = array<i32>} : memref<9x3200xf32, #tpu.memory_space<vmem>>, vector<3x128xf32>,
    %c37_289 = arith.constant 37 : index
    %c0_290 = arith.constant 0 : index
    %218 = vector.load %arg10[%c37_289, %c0_290] : memref<49x128xf32, #tpu.memory_space<vmem>>, vector<3x128xf32>
    %c3_291 = arith.constant 3 : index
    %c2816_292 = arith.constant 2816 : index
    %219 = vector.load %arg11[%c3_291, %c2816_292] : memref<9x3200xf32, #tpu.memory_space<vmem>>, vector<3x128xf32>
    tpu.vector_store %arg11[%c3_291, %c2816_292], %218 {strides = array<i32>} : memref<9x3200xf32, #tpu.memory_space<vmem>>, vector<3x128xf32>,
    %c44 = arith.constant 44 : index
    %c0_293 = arith.constant 0 : index
    %220 = vector.load %arg10[%c44, %c0_293] : memref<49x128xf32, #tpu.memory_space<vmem>>, vector<3x128xf32>
    %c6_294 = arith.constant 6 : index
    %c2816_295 = arith.constant 2816 : index
    %221 = vector.load %arg11[%c6_294, %c2816_295] : memref<9x3200xf32, #tpu.memory_space<vmem>>, vector<3x128xf32>
    tpu.vector_store %arg11[%c6_294, %c2816_295], %220 {strides = array<i32>} : memref<9x3200xf32, #tpu.memory_space<vmem>>, vector<3x128xf32>,
    %c31_296 = arith.constant 31 : index
    %c0_297 = arith.constant 0 : index
    %222 = vector.load %arg10[%c31_296, %c0_297] : memref<49x128xf32, #tpu.memory_space<vmem>>, vector<3x128xf32>
    %c0_298 = arith.constant 0 : index
    %c2944 = arith.constant 2944 : index
    %223 = vector.load %arg11[%c0_298, %c2944] : memref<9x3200xf32, #tpu.memory_space<vmem>>, vector<3x128xf32>
    tpu.vector_store %arg11[%c0_298, %c2944], %222 {strides = array<i32>} : memref<9x3200xf32, #tpu.memory_space<vmem>>, vector<3x128xf32>,
    %c38_299 = arith.constant 38 : index
    %c0_300 = arith.constant 0 : index
    %224 = vector.load %arg10[%c38_299, %c0_300] : memref<49x128xf32, #tpu.memory_space<vmem>>, vector<3x128xf32>
    %c3_301 = arith.constant 3 : index
    %c2944_302 = arith.constant 2944 : index
    %225 = vector.load %arg11[%c3_301, %c2944_302] : memref<9x3200xf32, #tpu.memory_space<vmem>>, vector<3x128xf32>
    tpu.vector_store %arg11[%c3_301, %c2944_302], %224 {strides = array<i32>} : memref<9x3200xf32, #tpu.memory_space<vmem>>, vector<3x128xf32>,
    %c45 = arith.constant 45 : index
    %c0_303 = arith.constant 0 : index
    %226 = vector.load %arg10[%c45, %c0_303] : memref<49x128xf32, #tpu.memory_space<vmem>>, vector<3x128xf32>
    %c6_304 = arith.constant 6 : index
    %c2944_305 = arith.constant 2944 : index
    %227 = vector.load %arg11[%c6_304, %c2944_305] : memref<9x3200xf32, #tpu.memory_space<vmem>>, vector<3x128xf32>
    tpu.vector_store %arg11[%c6_304, %c2944_305], %226 {strides = array<i32>} : memref<9x3200xf32, #tpu.memory_space<vmem>>, vector<3x128xf32>,
    %c32_306 = arith.constant 32 : index
    %c0_307 = arith.constant 0 : index
    %228 = vector.load %arg10[%c32_306, %c0_307] : memref<49x128xf32, #tpu.memory_space<vmem>>, vector<3x128xf32>
    %c0_308 = arith.constant 0 : index
    %c3072 = arith.constant 3072 : index
    %229 = vector.load %arg11[%c0_308, %c3072] : memref<9x3200xf32, #tpu.memory_space<vmem>>, vector<3x128xf32>
    tpu.vector_store %arg11[%c0_308, %c3072], %228 {strides = array<i32>} : memref<9x3200xf32, #tpu.memory_space<vmem>>, vector<3x128xf32>,
    %c39_309 = arith.constant 39 : index
    %c0_310 = arith.constant 0 : index
    %230 = vector.load %arg10[%c39_309, %c0_310] : memref<49x128xf32, #tpu.memory_space<vmem>>, vector<3x128xf32>
    %c3_311 = arith.constant 3 : index
    %c3072_312 = arith.constant 3072 : index
    %231 = vector.load %arg11[%c3_311, %c3072_312] : memref<9x3200xf32, #tpu.memory_space<vmem>>, vector<3x128xf32>
    tpu.vector_store %arg11[%c3_311, %c3072_312], %230 {strides = array<i32>} : memref<9x3200xf32, #tpu.memory_space<vmem>>, vector<3x128xf32>,
    %c46_313 = arith.constant 46 : index
    %c0_314 = arith.constant 0 : index
    %232 = vector.load %arg10[%c46_313, %c0_314] : memref<49x128xf32, #tpu.memory_space<vmem>>, vector<3x128xf32>
    %c6_315 = arith.constant 6 : index
    %c3072_316 = arith.constant 3072 : index
    %233 = vector.load %arg11[%c6_315, %c3072_316] : memref<9x3200xf32, #tpu.memory_space<vmem>>, vector<3x128xf32>
    tpu.vector_store %arg11[%c6_315, %c3072_316], %232 {strides = array<i32>} : memref<9x3200xf32, #tpu.memory_space<vmem>>, vector<3x128xf32>,
    %c0_317 = arith.constant 0 : index
    %c0_318 = arith.constant 0 : index
    %234 = vector.load %arg11[%c0_317, %c0_318] : memref<9x3200xf32, #tpu.memory_space<vmem>>, vector<9x3200xf32>
    %c0_319 = arith.constant 0 : index
    %c0_320 = arith.constant 0 : index
    %235 = vector.load %arg4[%c0_319, %c0_320] : memref<3200x128xf32, #tpu.memory_space<vmem>>, vector<3200x128xf32>
    %cst_321 = arith.constant dense<0.000000e+00> : vector<9x128xf32>
    %236 = tpu.matmul %234, %235, %cst_321 {dimension_numbers = #tpu.dot_dimension_numbers<[1], [0], [0], [1], [0, 0, 1, 1], [], []>} : vector<9x3200xf32>, vector<3200x128xf32>, vector<9x128xf32> -> vector<9x128xf32>
    %c0_322 = arith.constant 0 : index
    %c0_323 = arith.constant 0 : index
    %237 = vector.load %arg5[%c0_322, %c0_323] : memref<1x128xf32, #tpu.memory_space<vmem>>, vector<1x128xf32>
    %238 = vector.broadcast %237 : vector<1x128xf32> to vector<9x128xf32>
    %239 = arith.addf %236, %238 : vector<9x128xf32>
    %cst_324 = arith.constant 0.000000e+00 : f32
    %240 = vector.broadcast %cst_324 : f32 to vector<9x128xf32>
    %241 = arith.maximumf %239, %240 : vector<9x128xf32>
    %cst_325 = arith.constant 0.000000e+00 : f32
    %242 = vector.broadcast %cst_325 : f32 to vector<49x128xf32>
    %c0_326 = arith.constant 0 : index
    %c0_327 = arith.constant 0 : index
    %243 = vector.load %arg12[%c0_326, %c0_327] : memref<49x128xf32, #tpu.memory_space<vmem>>, vector<49x128xf32>
    tpu.vector_store %arg12[%c0_326, %c0_327], %242 {strides = array<i32>} : memref<49x128xf32, #tpu.memory_space<vmem>>, vector<49x128xf32>,
    %244 = vector.extract_strided_slice %241 {offsets = [0, 0], sizes = [3, 128], strides = [1, 1]} : vector<9x128xf32> to vector<3x128xf32>
    %c16_328 = arith.constant 16 : index
    %c0_329 = arith.constant 0 : index
    %245 = vector.load %arg12[%c16_328, %c0_329] : memref<49x128xf32, #tpu.memory_space<vmem>>, vector<3x128xf32>
    tpu.vector_store %arg12[%c16_328, %c0_329], %244 {strides = array<i32>} : memref<49x128xf32, #tpu.memory_space<vmem>>, vector<3x128xf32>,
    %246 = vector.extract_strided_slice %241 {offsets = [3, 0], sizes = [3, 128], strides = [1, 1]} : vector<9x128xf32> to vector<3x128xf32>
    %c23_330 = arith.constant 23 : index
    %c0_331 = arith.constant 0 : index
    %247 = vector.load %arg12[%c23_330, %c0_331] : memref<49x128xf32, #tpu.memory_space<vmem>>, vector<3x128xf32>
    tpu.vector_store %arg12[%c23_330, %c0_331], %246 {strides = array<i32>} : memref<49x128xf32, #tpu.memory_space<vmem>>, vector<3x128xf32>,
    %248 = vector.extract_strided_slice %241 {offsets = [6, 0], sizes = [3, 128], strides = [1, 1]} : vector<9x128xf32> to vector<3x128xf32>
    %c30_332 = arith.constant 30 : index
    %c0_333 = arith.constant 0 : index
    %249 = vector.load %arg12[%c30_332, %c0_333] : memref<49x128xf32, #tpu.memory_space<vmem>>, vector<3x128xf32>
    tpu.vector_store %arg12[%c30_332, %c0_333], %248 {strides = array<i32>} : memref<49x128xf32, #tpu.memory_space<vmem>>, vector<3x128xf32>,
    %c0_334 = arith.constant 0 : index
    %c0_335 = arith.constant 0 : index
    %250 = vector.load %arg12[%c0_334, %c0_335] : memref<49x128xf32, #tpu.memory_space<vmem>>, vector<5x128xf32>
    %c0_336 = arith.constant 0 : index
    %c0_337 = arith.constant 0 : index
    %251 = vector.load %arg13[%c0_336, %c0_337] : memref<25x1152xf32, #tpu.memory_space<vmem>>, vector<5x128xf32>
    tpu.vector_store %arg13[%c0_336, %c0_337], %250 {strides = array<i32>} : memref<25x1152xf32, #tpu.memory_space<vmem>>, vector<5x128xf32>,
    %c7_338 = arith.constant 7 : index
    %c0_339 = arith.constant 0 : index
    %252 = vector.load %arg12[%c7_338, %c0_339] : memref<49x128xf32, #tpu.memory_space<vmem>>, vector<5x128xf32>
    %c5 = arith.constant 5 : index
    %c0_340 = arith.constant 0 : index
    %253 = vector.load %arg13[%c5, %c0_340] : memref<25x1152xf32, #tpu.memory_space<vmem>>, vector<5x128xf32>
    tpu.vector_store %arg13[%c5, %c0_340], %252 {strides = array<i32>} : memref<25x1152xf32, #tpu.memory_space<vmem>>, vector<5x128xf32>,
    %c14_341 = arith.constant 14 : index
    %c0_342 = arith.constant 0 : index
    %254 = vector.load %arg12[%c14_341, %c0_342] : memref<49x128xf32, #tpu.memory_space<vmem>>, vector<5x128xf32>
    %c10_343 = arith.constant 10 : index
    %c0_344 = arith.constant 0 : index
    %255 = vector.load %arg13[%c10_343, %c0_344] : memref<25x1152xf32, #tpu.memory_space<vmem>>, vector<5x128xf32>
    tpu.vector_store %arg13[%c10_343, %c0_344], %254 {strides = array<i32>} : memref<25x1152xf32, #tpu.memory_space<vmem>>, vector<5x128xf32>,
    %c21_345 = arith.constant 21 : index
    %c0_346 = arith.constant 0 : index
    %256 = vector.load %arg12[%c21_345, %c0_346] : memref<49x128xf32, #tpu.memory_space<vmem>>, vector<5x128xf32>
    %c15_347 = arith.constant 15 : index
    %c0_348 = arith.constant 0 : index
    %257 = vector.load %arg13[%c15_347, %c0_348] : memref<25x1152xf32, #tpu.memory_space<vmem>>, vector<5x128xf32>
    tpu.vector_store %arg13[%c15_347, %c0_348], %256 {strides = array<i32>} : memref<25x1152xf32, #tpu.memory_space<vmem>>, vector<5x128xf32>,
    %c28_349 = arith.constant 28 : index
    %c0_350 = arith.constant 0 : index
    %258 = vector.load %arg12[%c28_349, %c0_350] : memref<49x128xf32, #tpu.memory_space<vmem>>, vector<5x128xf32>
    %c20_351 = arith.constant 20 : index
    %c0_352 = arith.constant 0 : index
    %259 = vector.load %arg13[%c20_351, %c0_352] : memref<25x1152xf32, #tpu.memory_space<vmem>>, vector<5x128xf32>
    tpu.vector_store %arg13[%c20_351, %c0_352], %258 {strides = array<i32>} : memref<25x1152xf32, #tpu.memory_space<vmem>>, vector<5x128xf32>,
    %c1_353 = arith.constant 1 : index
    %c0_354 = arith.constant 0 : index
    %260 = vector.load %arg12[%c1_353, %c0_354] : memref<49x128xf32, #tpu.memory_space<vmem>>, vector<5x128xf32>
    %c0_355 = arith.constant 0 : index
    %c128_356 = arith.constant 128 : index
    %261 = vector.load %arg13[%c0_355, %c128_356] : memref<25x1152xf32, #tpu.memory_space<vmem>>, vector<5x128xf32>
    tpu.vector_store %arg13[%c0_355, %c128_356], %260 {strides = array<i32>} : memref<25x1152xf32, #tpu.memory_space<vmem>>, vector<5x128xf32>,
    %c8_357 = arith.constant 8 : index
    %c0_358 = arith.constant 0 : index
    %262 = vector.load %arg12[%c8_357, %c0_358] : memref<49x128xf32, #tpu.memory_space<vmem>>, vector<5x128xf32>
    %c5_359 = arith.constant 5 : index
    %c128_360 = arith.constant 128 : index
    %263 = vector.load %arg13[%c5_359, %c128_360] : memref<25x1152xf32, #tpu.memory_space<vmem>>, vector<5x128xf32>
    tpu.vector_store %arg13[%c5_359, %c128_360], %262 {strides = array<i32>} : memref<25x1152xf32, #tpu.memory_space<vmem>>, vector<5x128xf32>,
    %c15_361 = arith.constant 15 : index
    %c0_362 = arith.constant 0 : index
    %264 = vector.load %arg12[%c15_361, %c0_362] : memref<49x128xf32, #tpu.memory_space<vmem>>, vector<5x128xf32>
    %c10_363 = arith.constant 10 : index
    %c128_364 = arith.constant 128 : index
    %265 = vector.load %arg13[%c10_363, %c128_364] : memref<25x1152xf32, #tpu.memory_space<vmem>>, vector<5x128xf32>
    tpu.vector_store %arg13[%c10_363, %c128_364], %264 {strides = array<i32>} : memref<25x1152xf32, #tpu.memory_space<vmem>>, vector<5x128xf32>,
    %c22_365 = arith.constant 22 : index
    %c0_366 = arith.constant 0 : index
    %266 = vector.load %arg12[%c22_365, %c0_366] : memref<49x128xf32, #tpu.memory_space<vmem>>, vector<5x128xf32>
    %c15_367 = arith.constant 15 : index
    %c128_368 = arith.constant 128 : index
    %267 = vector.load %arg13[%c15_367, %c128_368] : memref<25x1152xf32, #tpu.memory_space<vmem>>, vector<5x128xf32>
    tpu.vector_store %arg13[%c15_367, %c128_368], %266 {strides = array<i32>} : memref<25x1152xf32, #tpu.memory_space<vmem>>, vector<5x128xf32>,
    %c29_369 = arith.constant 29 : index
    %c0_370 = arith.constant 0 : index
    %268 = vector.load %arg12[%c29_369, %c0_370] : memref<49x128xf32, #tpu.memory_space<vmem>>, vector<5x128xf32>
    %c20_371 = arith.constant 20 : index
    %c128_372 = arith.constant 128 : index
    %269 = vector.load %arg13[%c20_371, %c128_372] : memref<25x1152xf32, #tpu.memory_space<vmem>>, vector<5x128xf32>
    tpu.vector_store %arg13[%c20_371, %c128_372], %268 {strides = array<i32>} : memref<25x1152xf32, #tpu.memory_space<vmem>>, vector<5x128xf32>,
    %c2_373 = arith.constant 2 : index
    %c0_374 = arith.constant 0 : index
    %270 = vector.load %arg12[%c2_373, %c0_374] : memref<49x128xf32, #tpu.memory_space<vmem>>, vector<5x128xf32>
    %c0_375 = arith.constant 0 : index
    %c256_376 = arith.constant 256 : index
    %271 = vector.load %arg13[%c0_375, %c256_376] : memref<25x1152xf32, #tpu.memory_space<vmem>>, vector<5x128xf32>
    tpu.vector_store %arg13[%c0_375, %c256_376], %270 {strides = array<i32>} : memref<25x1152xf32, #tpu.memory_space<vmem>>, vector<5x128xf32>,
    %c9_377 = arith.constant 9 : index
    %c0_378 = arith.constant 0 : index
    %272 = vector.load %arg12[%c9_377, %c0_378] : memref<49x128xf32, #tpu.memory_space<vmem>>, vector<5x128xf32>
    %c5_379 = arith.constant 5 : index
    %c256_380 = arith.constant 256 : index
    %273 = vector.load %arg13[%c5_379, %c256_380] : memref<25x1152xf32, #tpu.memory_space<vmem>>, vector<5x128xf32>
    tpu.vector_store %arg13[%c5_379, %c256_380], %272 {strides = array<i32>} : memref<25x1152xf32, #tpu.memory_space<vmem>>, vector<5x128xf32>,
    %c16_381 = arith.constant 16 : index
    %c0_382 = arith.constant 0 : index
    %274 = vector.load %arg12[%c16_381, %c0_382] : memref<49x128xf32, #tpu.memory_space<vmem>>, vector<5x128xf32>
    %c10_383 = arith.constant 10 : index
    %c256_384 = arith.constant 256 : index
    %275 = vector.load %arg13[%c10_383, %c256_384] : memref<25x1152xf32, #tpu.memory_space<vmem>>, vector<5x128xf32>
    tpu.vector_store %arg13[%c10_383, %c256_384], %274 {strides = array<i32>} : memref<25x1152xf32, #tpu.memory_space<vmem>>, vector<5x128xf32>,
    %c23_385 = arith.constant 23 : index
    %c0_386 = arith.constant 0 : index
    %276 = vector.load %arg12[%c23_385, %c0_386] : memref<49x128xf32, #tpu.memory_space<vmem>>, vector<5x128xf32>
    %c15_387 = arith.constant 15 : index
    %c256_388 = arith.constant 256 : index
    %277 = vector.load %arg13[%c15_387, %c256_388] : memref<25x1152xf32, #tpu.memory_space<vmem>>, vector<5x128xf32>
    tpu.vector_store %arg13[%c15_387, %c256_388], %276 {strides = array<i32>} : memref<25x1152xf32, #tpu.memory_space<vmem>>, vector<5x128xf32>,
    %c30_389 = arith.constant 30 : index
    %c0_390 = arith.constant 0 : index
    %278 = vector.load %arg12[%c30_389, %c0_390] : memref<49x128xf32, #tpu.memory_space<vmem>>, vector<5x128xf32>
    %c20_391 = arith.constant 20 : index
    %c256_392 = arith.constant 256 : index
    %279 = vector.load %arg13[%c20_391, %c256_392] : memref<25x1152xf32, #tpu.memory_space<vmem>>, vector<5x128xf32>
    tpu.vector_store %arg13[%c20_391, %c256_392], %278 {strides = array<i32>} : memref<25x1152xf32, #tpu.memory_space<vmem>>, vector<5x128xf32>,
    %c7_393 = arith.constant 7 : index
    %c0_394 = arith.constant 0 : index
    %280 = vector.load %arg12[%c7_393, %c0_394] : memref<49x128xf32, #tpu.memory_space<vmem>>, vector<5x128xf32>
    %c0_395 = arith.constant 0 : index
    %c384_396 = arith.constant 384 : index
    %281 = vector.load %arg13[%c0_395, %c384_396] : memref<25x1152xf32, #tpu.memory_space<vmem>>, vector<5x128xf32>
    tpu.vector_store %arg13[%c0_395, %c384_396], %280 {strides = array<i32>} : memref<25x1152xf32, #tpu.memory_space<vmem>>, vector<5x128xf32>,
    %c14_397 = arith.constant 14 : index
    %c0_398 = arith.constant 0 : index
    %282 = vector.load %arg12[%c14_397, %c0_398] : memref<49x128xf32, #tpu.memory_space<vmem>>, vector<5x128xf32>
    %c5_399 = arith.constant 5 : index
    %c384_400 = arith.constant 384 : index
    %283 = vector.load %arg13[%c5_399, %c384_400] : memref<25x1152xf32, #tpu.memory_space<vmem>>, vector<5x128xf32>
    tpu.vector_store %arg13[%c5_399, %c384_400], %282 {strides = array<i32>} : memref<25x1152xf32, #tpu.memory_space<vmem>>, vector<5x128xf32>,
    %c21_401 = arith.constant 21 : index
    %c0_402 = arith.constant 0 : index
    %284 = vector.load %arg12[%c21_401, %c0_402] : memref<49x128xf32, #tpu.memory_space<vmem>>, vector<5x128xf32>
    %c10_403 = arith.constant 10 : index
    %c384_404 = arith.constant 384 : index
    %285 = vector.load %arg13[%c10_403, %c384_404] : memref<25x1152xf32, #tpu.memory_space<vmem>>, vector<5x128xf32>
    tpu.vector_store %arg13[%c10_403, %c384_404], %284 {strides = array<i32>} : memref<25x1152xf32, #tpu.memory_space<vmem>>, vector<5x128xf32>,
    %c28_405 = arith.constant 28 : index
    %c0_406 = arith.constant 0 : index
    %286 = vector.load %arg12[%c28_405, %c0_406] : memref<49x128xf32, #tpu.memory_space<vmem>>, vector<5x128xf32>
    %c15_407 = arith.constant 15 : index
    %c384_408 = arith.constant 384 : index
    %287 = vector.load %arg13[%c15_407, %c384_408] : memref<25x1152xf32, #tpu.memory_space<vmem>>, vector<5x128xf32>
    tpu.vector_store %arg13[%c15_407, %c384_408], %286 {strides = array<i32>} : memref<25x1152xf32, #tpu.memory_space<vmem>>, vector<5x128xf32>,
    %c35_409 = arith.constant 35 : index
    %c0_410 = arith.constant 0 : index
    %288 = vector.load %arg12[%c35_409, %c0_410] : memref<49x128xf32, #tpu.memory_space<vmem>>, vector<5x128xf32>
    %c20_411 = arith.constant 20 : index
    %c384_412 = arith.constant 384 : index
    %289 = vector.load %arg13[%c20_411, %c384_412] : memref<25x1152xf32, #tpu.memory_space<vmem>>, vector<5x128xf32>
    tpu.vector_store %arg13[%c20_411, %c384_412], %288 {strides = array<i32>} : memref<25x1152xf32, #tpu.memory_space<vmem>>, vector<5x128xf32>,
    %c8_413 = arith.constant 8 : index
    %c0_414 = arith.constant 0 : index
    %290 = vector.load %arg12[%c8_413, %c0_414] : memref<49x128xf32, #tpu.memory_space<vmem>>, vector<5x128xf32>
    %c0_415 = arith.constant 0 : index
    %c512_416 = arith.constant 512 : index
    %291 = vector.load %arg13[%c0_415, %c512_416] : memref<25x1152xf32, #tpu.memory_space<vmem>>, vector<5x128xf32>
    tpu.vector_store %arg13[%c0_415, %c512_416], %290 {strides = array<i32>} : memref<25x1152xf32, #tpu.memory_space<vmem>>, vector<5x128xf32>,
    %c15_417 = arith.constant 15 : index
    %c0_418 = arith.constant 0 : index
    %292 = vector.load %arg12[%c15_417, %c0_418] : memref<49x128xf32, #tpu.memory_space<vmem>>, vector<5x128xf32>
    %c5_419 = arith.constant 5 : index
    %c512_420 = arith.constant 512 : index
    %293 = vector.load %arg13[%c5_419, %c512_420] : memref<25x1152xf32, #tpu.memory_space<vmem>>, vector<5x128xf32>
    tpu.vector_store %arg13[%c5_419, %c512_420], %292 {strides = array<i32>} : memref<25x1152xf32, #tpu.memory_space<vmem>>, vector<5x128xf32>,
    %c22_421 = arith.constant 22 : index
    %c0_422 = arith.constant 0 : index
    %294 = vector.load %arg12[%c22_421, %c0_422] : memref<49x128xf32, #tpu.memory_space<vmem>>, vector<5x128xf32>
    %c10_423 = arith.constant 10 : index
    %c512_424 = arith.constant 512 : index
    %295 = vector.load %arg13[%c10_423, %c512_424] : memref<25x1152xf32, #tpu.memory_space<vmem>>, vector<5x128xf32>
    tpu.vector_store %arg13[%c10_423, %c512_424], %294 {strides = array<i32>} : memref<25x1152xf32, #tpu.memory_space<vmem>>, vector<5x128xf32>,
    %c29_425 = arith.constant 29 : index
    %c0_426 = arith.constant 0 : index
    %296 = vector.load %arg12[%c29_425, %c0_426] : memref<49x128xf32, #tpu.memory_space<vmem>>, vector<5x128xf32>
    %c15_427 = arith.constant 15 : index
    %c512_428 = arith.constant 512 : index
    %297 = vector.load %arg13[%c15_427, %c512_428] : memref<25x1152xf32, #tpu.memory_space<vmem>>, vector<5x128xf32>
    tpu.vector_store %arg13[%c15_427, %c512_428], %296 {strides = array<i32>} : memref<25x1152xf32, #tpu.memory_space<vmem>>, vector<5x128xf32>,
    %c36_429 = arith.constant 36 : index
    %c0_430 = arith.constant 0 : index
    %298 = vector.load %arg12[%c36_429, %c0_430] : memref<49x128xf32, #tpu.memory_space<vmem>>, vector<5x128xf32>
    %c20_431 = arith.constant 20 : index
    %c512_432 = arith.constant 512 : index
    %299 = vector.load %arg13[%c20_431, %c512_432] : memref<25x1152xf32, #tpu.memory_space<vmem>>, vector<5x128xf32>
    tpu.vector_store %arg13[%c20_431, %c512_432], %298 {strides = array<i32>} : memref<25x1152xf32, #tpu.memory_space<vmem>>, vector<5x128xf32>,
    %c9_433 = arith.constant 9 : index
    %c0_434 = arith.constant 0 : index
    %300 = vector.load %arg12[%c9_433, %c0_434] : memref<49x128xf32, #tpu.memory_space<vmem>>, vector<5x128xf32>
    %c0_435 = arith.constant 0 : index
    %c640_436 = arith.constant 640 : index
    %301 = vector.load %arg13[%c0_435, %c640_436] : memref<25x1152xf32, #tpu.memory_space<vmem>>, vector<5x128xf32>
    tpu.vector_store %arg13[%c0_435, %c640_436], %300 {strides = array<i32>} : memref<25x1152xf32, #tpu.memory_space<vmem>>, vector<5x128xf32>,
    %c16_437 = arith.constant 16 : index
    %c0_438 = arith.constant 0 : index
    %302 = vector.load %arg12[%c16_437, %c0_438] : memref<49x128xf32, #tpu.memory_space<vmem>>, vector<5x128xf32>
    %c5_439 = arith.constant 5 : index
    %c640_440 = arith.constant 640 : index
    %303 = vector.load %arg13[%c5_439, %c640_440] : memref<25x1152xf32, #tpu.memory_space<vmem>>, vector<5x128xf32>
    tpu.vector_store %arg13[%c5_439, %c640_440], %302 {strides = array<i32>} : memref<25x1152xf32, #tpu.memory_space<vmem>>, vector<5x128xf32>,
    %c23_441 = arith.constant 23 : index
    %c0_442 = arith.constant 0 : index
    %304 = vector.load %arg12[%c23_441, %c0_442] : memref<49x128xf32, #tpu.memory_space<vmem>>, vector<5x128xf32>
    %c10_443 = arith.constant 10 : index
    %c640_444 = arith.constant 640 : index
    %305 = vector.load %arg13[%c10_443, %c640_444] : memref<25x1152xf32, #tpu.memory_space<vmem>>, vector<5x128xf32>
    tpu.vector_store %arg13[%c10_443, %c640_444], %304 {strides = array<i32>} : memref<25x1152xf32, #tpu.memory_space<vmem>>, vector<5x128xf32>,
    %c30_445 = arith.constant 30 : index
    %c0_446 = arith.constant 0 : index
    %306 = vector.load %arg12[%c30_445, %c0_446] : memref<49x128xf32, #tpu.memory_space<vmem>>, vector<5x128xf32>
    %c15_447 = arith.constant 15 : index
    %c640_448 = arith.constant 640 : index
    %307 = vector.load %arg13[%c15_447, %c640_448] : memref<25x1152xf32, #tpu.memory_space<vmem>>, vector<5x128xf32>
    tpu.vector_store %arg13[%c15_447, %c640_448], %306 {strides = array<i32>} : memref<25x1152xf32, #tpu.memory_space<vmem>>, vector<5x128xf32>,
    %c37_449 = arith.constant 37 : index
    %c0_450 = arith.constant 0 : index
    %308 = vector.load %arg12[%c37_449, %c0_450] : memref<49x128xf32, #tpu.memory_space<vmem>>, vector<5x128xf32>
    %c20_451 = arith.constant 20 : index
    %c640_452 = arith.constant 640 : index
    %309 = vector.load %arg13[%c20_451, %c640_452] : memref<25x1152xf32, #tpu.memory_space<vmem>>, vector<5x128xf32>
    tpu.vector_store %arg13[%c20_451, %c640_452], %308 {strides = array<i32>} : memref<25x1152xf32, #tpu.memory_space<vmem>>, vector<5x128xf32>,
    %c14_453 = arith.constant 14 : index
    %c0_454 = arith.constant 0 : index
    %310 = vector.load %arg12[%c14_453, %c0_454] : memref<49x128xf32, #tpu.memory_space<vmem>>, vector<5x128xf32>
    %c0_455 = arith.constant 0 : index
    %c768_456 = arith.constant 768 : index
    %311 = vector.load %arg13[%c0_455, %c768_456] : memref<25x1152xf32, #tpu.memory_space<vmem>>, vector<5x128xf32>
    tpu.vector_store %arg13[%c0_455, %c768_456], %310 {strides = array<i32>} : memref<25x1152xf32, #tpu.memory_space<vmem>>, vector<5x128xf32>,
    %c21_457 = arith.constant 21 : index
    %c0_458 = arith.constant 0 : index
    %312 = vector.load %arg12[%c21_457, %c0_458] : memref<49x128xf32, #tpu.memory_space<vmem>>, vector<5x128xf32>
    %c5_459 = arith.constant 5 : index
    %c768_460 = arith.constant 768 : index
    %313 = vector.load %arg13[%c5_459, %c768_460] : memref<25x1152xf32, #tpu.memory_space<vmem>>, vector<5x128xf32>
    tpu.vector_store %arg13[%c5_459, %c768_460], %312 {strides = array<i32>} : memref<25x1152xf32, #tpu.memory_space<vmem>>, vector<5x128xf32>,
    %c28_461 = arith.constant 28 : index
    %c0_462 = arith.constant 0 : index
    %314 = vector.load %arg12[%c28_461, %c0_462] : memref<49x128xf32, #tpu.memory_space<vmem>>, vector<5x128xf32>
    %c10_463 = arith.constant 10 : index
    %c768_464 = arith.constant 768 : index
    %315 = vector.load %arg13[%c10_463, %c768_464] : memref<25x1152xf32, #tpu.memory_space<vmem>>, vector<5x128xf32>
    tpu.vector_store %arg13[%c10_463, %c768_464], %314 {strides = array<i32>} : memref<25x1152xf32, #tpu.memory_space<vmem>>, vector<5x128xf32>,
    %c35_465 = arith.constant 35 : index
    %c0_466 = arith.constant 0 : index
    %316 = vector.load %arg12[%c35_465, %c0_466] : memref<49x128xf32, #tpu.memory_space<vmem>>, vector<5x128xf32>
    %c15_467 = arith.constant 15 : index
    %c768_468 = arith.constant 768 : index
    %317 = vector.load %arg13[%c15_467, %c768_468] : memref<25x1152xf32, #tpu.memory_space<vmem>>, vector<5x128xf32>
    tpu.vector_store %arg13[%c15_467, %c768_468], %316 {strides = array<i32>} : memref<25x1152xf32, #tpu.memory_space<vmem>>, vector<5x128xf32>,
    %c42_469 = arith.constant 42 : index
    %c0_470 = arith.constant 0 : index
    %318 = vector.load %arg12[%c42_469, %c0_470] : memref<49x128xf32, #tpu.memory_space<vmem>>, vector<5x128xf32>
    %c20_471 = arith.constant 20 : index
    %c768_472 = arith.constant 768 : index
    %319 = vector.load %arg13[%c20_471, %c768_472] : memref<25x1152xf32, #tpu.memory_space<vmem>>, vector<5x128xf32>
    tpu.vector_store %arg13[%c20_471, %c768_472], %318 {strides = array<i32>} : memref<25x1152xf32, #tpu.memory_space<vmem>>, vector<5x128xf32>,
    %c15_473 = arith.constant 15 : index
    %c0_474 = arith.constant 0 : index
    %320 = vector.load %arg12[%c15_473, %c0_474] : memref<49x128xf32, #tpu.memory_space<vmem>>, vector<5x128xf32>
    %c0_475 = arith.constant 0 : index
    %c896_476 = arith.constant 896 : index
    %321 = vector.load %arg13[%c0_475, %c896_476] : memref<25x1152xf32, #tpu.memory_space<vmem>>, vector<5x128xf32>
    tpu.vector_store %arg13[%c0_475, %c896_476], %320 {strides = array<i32>} : memref<25x1152xf32, #tpu.memory_space<vmem>>, vector<5x128xf32>,
    %c22_477 = arith.constant 22 : index
    %c0_478 = arith.constant 0 : index
    %322 = vector.load %arg12[%c22_477, %c0_478] : memref<49x128xf32, #tpu.memory_space<vmem>>, vector<5x128xf32>
    %c5_479 = arith.constant 5 : index
    %c896_480 = arith.constant 896 : index
    %323 = vector.load %arg13[%c5_479, %c896_480] : memref<25x1152xf32, #tpu.memory_space<vmem>>, vector<5x128xf32>
    tpu.vector_store %arg13[%c5_479, %c896_480], %322 {strides = array<i32>} : memref<25x1152xf32, #tpu.memory_space<vmem>>, vector<5x128xf32>,
    %c29_481 = arith.constant 29 : index
    %c0_482 = arith.constant 0 : index
    %324 = vector.load %arg12[%c29_481, %c0_482] : memref<49x128xf32, #tpu.memory_space<vmem>>, vector<5x128xf32>
    %c10_483 = arith.constant 10 : index
    %c896_484 = arith.constant 896 : index
    %325 = vector.load %arg13[%c10_483, %c896_484] : memref<25x1152xf32, #tpu.memory_space<vmem>>, vector<5x128xf32>
    tpu.vector_store %arg13[%c10_483, %c896_484], %324 {strides = array<i32>} : memref<25x1152xf32, #tpu.memory_space<vmem>>, vector<5x128xf32>,
    %c36_485 = arith.constant 36 : index
    %c0_486 = arith.constant 0 : index
    %326 = vector.load %arg12[%c36_485, %c0_486] : memref<49x128xf32, #tpu.memory_space<vmem>>, vector<5x128xf32>
    %c15_487 = arith.constant 15 : index
    %c896_488 = arith.constant 896 : index
    %327 = vector.load %arg13[%c15_487, %c896_488] : memref<25x1152xf32, #tpu.memory_space<vmem>>, vector<5x128xf32>
    tpu.vector_store %arg13[%c15_487, %c896_488], %326 {strides = array<i32>} : memref<25x1152xf32, #tpu.memory_space<vmem>>, vector<5x128xf32>,
    %c43_489 = arith.constant 43 : index
    %c0_490 = arith.constant 0 : index
    %328 = vector.load %arg12[%c43_489, %c0_490] : memref<49x128xf32, #tpu.memory_space<vmem>>, vector<5x128xf32>
    %c20_491 = arith.constant 20 : index
    %c896_492 = arith.constant 896 : index
    %329 = vector.load %arg13[%c20_491, %c896_492] : memref<25x1152xf32, #tpu.memory_space<vmem>>, vector<5x128xf32>
    tpu.vector_store %arg13[%c20_491, %c896_492], %328 {strides = array<i32>} : memref<25x1152xf32, #tpu.memory_space<vmem>>, vector<5x128xf32>,
    %c16_493 = arith.constant 16 : index
    %c0_494 = arith.constant 0 : index
    %330 = vector.load %arg12[%c16_493, %c0_494] : memref<49x128xf32, #tpu.memory_space<vmem>>, vector<5x128xf32>
    %c0_495 = arith.constant 0 : index
    %c1024_496 = arith.constant 1024 : index
    %331 = vector.load %arg13[%c0_495, %c1024_496] : memref<25x1152xf32, #tpu.memory_space<vmem>>, vector<5x128xf32>
    tpu.vector_store %arg13[%c0_495, %c1024_496], %330 {strides = array<i32>} : memref<25x1152xf32, #tpu.memory_space<vmem>>, vector<5x128xf32>,
    %c23_497 = arith.constant 23 : index
    %c0_498 = arith.constant 0 : index
    %332 = vector.load %arg12[%c23_497, %c0_498] : memref<49x128xf32, #tpu.memory_space<vmem>>, vector<5x128xf32>
    %c5_499 = arith.constant 5 : index
    %c1024_500 = arith.constant 1024 : index
    %333 = vector.load %arg13[%c5_499, %c1024_500] : memref<25x1152xf32, #tpu.memory_space<vmem>>, vector<5x128xf32>
    tpu.vector_store %arg13[%c5_499, %c1024_500], %332 {strides = array<i32>} : memref<25x1152xf32, #tpu.memory_space<vmem>>, vector<5x128xf32>,
    %c30_501 = arith.constant 30 : index
    %c0_502 = arith.constant 0 : index
    %334 = vector.load %arg12[%c30_501, %c0_502] : memref<49x128xf32, #tpu.memory_space<vmem>>, vector<5x128xf32>
    %c10_503 = arith.constant 10 : index
    %c1024_504 = arith.constant 1024 : index
    %335 = vector.load %arg13[%c10_503, %c1024_504] : memref<25x1152xf32, #tpu.memory_space<vmem>>, vector<5x128xf32>
    tpu.vector_store %arg13[%c10_503, %c1024_504], %334 {strides = array<i32>} : memref<25x1152xf32, #tpu.memory_space<vmem>>, vector<5x128xf32>,
    %c37_505 = arith.constant 37 : index
    %c0_506 = arith.constant 0 : index
    %336 = vector.load %arg12[%c37_505, %c0_506] : memref<49x128xf32, #tpu.memory_space<vmem>>, vector<5x128xf32>
    %c15_507 = arith.constant 15 : index
    %c1024_508 = arith.constant 1024 : index
    %337 = vector.load %arg13[%c15_507, %c1024_508] : memref<25x1152xf32, #tpu.memory_space<vmem>>, vector<5x128xf32>
    tpu.vector_store %arg13[%c15_507, %c1024_508], %336 {strides = array<i32>} : memref<25x1152xf32, #tpu.memory_space<vmem>>, vector<5x128xf32>,
    %c44_509 = arith.constant 44 : index
    %c0_510 = arith.constant 0 : index
    %338 = vector.load %arg12[%c44_509, %c0_510] : memref<49x128xf32, #tpu.memory_space<vmem>>, vector<5x128xf32>
    %c20_511 = arith.constant 20 : index
    %c1024_512 = arith.constant 1024 : index
    %339 = vector.load %arg13[%c20_511, %c1024_512] : memref<25x1152xf32, #tpu.memory_space<vmem>>, vector<5x128xf32>
    tpu.vector_store %arg13[%c20_511, %c1024_512], %338 {strides = array<i32>} : memref<25x1152xf32, #tpu.memory_space<vmem>>, vector<5x128xf32>,
    %c0_513 = arith.constant 0 : index
    %c0_514 = arith.constant 0 : index
    %340 = vector.load %arg13[%c0_513, %c0_514] : memref<25x1152xf32, #tpu.memory_space<vmem>>, vector<25x1152xf32>
    %c0_515 = arith.constant 0 : index
    %c0_516 = arith.constant 0 : index
    %341 = vector.load %arg6[%c0_515, %c0_516] : memref<1152x128xf32, #tpu.memory_space<vmem>>, vector<1152x128xf32>
    %cst_517 = arith.constant dense<0.000000e+00> : vector<25x128xf32>
    %342 = tpu.matmul %340, %341, %cst_517 {dimension_numbers = #tpu.dot_dimension_numbers<[1], [0], [0], [1], [0, 0, 1, 1], [], []>} : vector<25x1152xf32>, vector<1152x128xf32>, vector<25x128xf32> -> vector<25x128xf32>
    %c0_518 = arith.constant 0 : index
    %c0_519 = arith.constant 0 : index
    %343 = vector.load %arg7[%c0_518, %c0_519] : memref<1x128xf32, #tpu.memory_space<vmem>>, vector<1x128xf32>
    %344 = vector.broadcast %343 : vector<1x128xf32> to vector<25x128xf32>
    %345 = arith.addf %342, %344 : vector<25x128xf32>
    %cst_520 = arith.constant 0.000000e+00 : f32
    %346 = vector.broadcast %cst_520 : f32 to vector<25x128xf32>
    %347 = arith.maximumf %345, %346 : vector<25x128xf32>
    %c0_521 = arith.constant 0 : index
    %c0_522 = arith.constant 0 : index
    %c0_523 = arith.constant 0 : index
    %348 = vector.load %arg8[%c0_521, %c0_522, %c0_523] : memref<1x25x128xf32, #tpu.memory_space<vmem>>, vector<1x25x128xf32>
    %349 = vector.shape_cast %348 : vector<1x25x128xf32> to vector<25x128xf32>
    %350 = vector.shape_cast %347 : vector<25x128xf32> to vector<1x25x128xf32>
    tpu.vector_store %arg8[%c0_521, %c0_522, %c0_523], %350 {strides = array<i32>} : memref<1x25x128xf32, #tpu.memory_space<vmem>>, vector<1x25x128xf32>,
    return
  }
  func.func @transform_0(%arg0: i32) -> (i32, i32, i32) {
    %c0_i32 = arith.constant 0 : i32
    %c0_i32_0 = arith.constant 0 : i32
    %c0_i32_1 = arith.constant 0 : i32
    return %arg0, %c0_i32, %c0_i32_0 : i32, i32, i32
  }
  func.func @transform_1(%arg0: i32) -> (i32, i32) {
    %c0_i32 = arith.constant 0 : i32
    %c0_i32_0 = arith.constant 0 : i32
    %c0_i32_1 = arith.constant 0 : i32
    return %c0_i32, %c0_i32_0 : i32, i32
  }
  func.func @transform_2(%arg0: i32) -> (i32, i32) {
    %c0_i32 = arith.constant 0 : i32
    %c0_i32_0 = arith.constant 0 : i32
    %c0_i32_1 = arith.constant 0 : i32
    return %c0_i32, %c0_i32_0 : i32, i32
  }
  func.func @transform_3(%arg0: i32) -> (i32, i32) {
    %c0_i32 = arith.constant 0 : i32
    %c0_i32_0 = arith.constant 0 : i32
    %c0_i32_1 = arith.constant 0 : i32
    return %c0_i32, %c0_i32_0 : i32, i32
  }
  func.func @transform_4(%arg0: i32) -> (i32, i32) {
    %c0_i32 = arith.constant 0 : i32
    %c0_i32_0 = arith.constant 0 : i32
    %c0_i32_1 = arith.constant 0 : i32
    return %c0_i32, %c0_i32_0 : i32, i32
  }
  func.func @transform_5(%arg0: i32) -> (i32, i32) {
    %c0_i32 = arith.constant 0 : i32
    %c0_i32_0 = arith.constant 0 : i32
    %c0_i32_1 = arith.constant 0 : i32
    return %c0_i32, %c0_i32_0 : i32, i32
  }
  func.func @transform_6(%arg0: i32) -> (i32, i32) {
    %c0_i32 = arith.constant 0 : i32
    %c0_i32_0 = arith.constant 0 : i32
    %c0_i32_1 = arith.constant 0 : i32
    return %c0_i32, %c0_i32_0 : i32, i32
  }
  func.func @transform_7(%arg0: i32) -> (i32, i32, i32) {
    %c0_i32 = arith.constant 0 : i32
    %c0_i32_0 = arith.constant 0 : i32
    %c0_i32_1 = arith.constant 0 : i32
    return %arg0, %c0_i32, %c0_i32_0 : i32, i32, i32
  }
}

</mosaic_0001>

<bundles_post_ra>
// kernel: descriptor_forward.1
= control target key start
LH: loop header
LB: loop body
LE: loop exit
PB: predicated region body
PF: predicated region fallthrough
CT: control target
= control target key end

     0   :  { %s4700_s24 = smov 0   ;;  %s6899_s0 = inlined_call_operand.vmem [shape: f32[2,100,768], index: 0, kind: input, shape index: {}]   ;;  %s6900_s1 = inlined_call_operand.vmem [shape: f32[768,128], index: 1, kind: input, shape index: {}]   ;;  %s6901_s2 = inlined_call_operand.vmem [shape: f32[1,128], index: 2, kind: input, shape index: {}]   ;;  %s6902_s3 = inlined_call_operand.vmem [shape: f32[3200,128], index: 3, kind: input, shape index: {}]   ;;  %s6903_s4 = inlined_call_operand.vmem [shape: f32[1,128], index: 4, kind: input, shape index: {}]   ;;  %s6904_s5 = inlined_call_operand.vmem [shape: f32[1152,128], index: 5, kind: input, shape index: {}]   ;;  %s6905_s6 = inlined_call_operand.vmem [shape: f32[1,128], index: 6, kind: input, shape index: {}]   ;;  %s6906_s7 = inlined_call_operand.vmem [shape: f32[2,25,128], index: 7, kind: output, shape index: {}]  }
   0x1 LB: > { %s3671_s25 = sadd.s32 4294967295, %s4657_s24   ;;  %p3675_p0 = scmp.ge.s32.totalorder %s4657_s24, 1  ;;  %s4657_s24 = sphi %s4700_s24, %s17_s24  }
   0x2   : > { %p237_p1 = scmp.lt.s32.totalorder %s4657_s24, 3 }
   0x4   : > { %p238_p2 = pnand %p3675_p0, %p237_p1 }
   0x5   : > { %p4803_p3 = scmp.lt.s32.totalorder (!%p238_p2), %s3671_s25, 1 }
   0x6   : > { %241 = sbr.rel (%p238_p2) target bundleno = 1054 (0x41e), region = 48 }
   0xb   : > { %v388_v0 = vld [vmem:[%s6900_s1 + $0xf8] sm:$0xff]  ;;  %v387_v2 = vld [vmem:[%s6900_s1 + $0xf0] sm:$0xff]  ;;  %v386_v6 = vld [vmem:[%s6900_s1 + $0xe8] sm:$0xff]  ;;  %s6909_s25 = smov (!%p4803_p3, %s3671_s25), 1  ;;  %vm888_vm0 = vcmask 1042432  }
   0xc   : > { %v372_v1 = vld [vmem:[%s6900_s1 + $0x78] sm:$0xff]  ;;  %3685 = vmatprep.subr.mxu0 %v388_v0  ;;  %v371_v4 = vld [vmem:[%s6900_s1 + $0x70] sm:$0xff]  ;;  %v370_v8 = vld [vmem:[%s6900_s1 + $0x68] sm:$0xff]  ;;  %s4641_s14 = smul.u32 624, %s6909_s25 }
   0xd   : > { %v420_v3 = vld [vmem:[%s6900_s1 + $0x1f8] sm:$0xff]  ;;  %3686 = vmatpush3.msra.mxu0 %v372_v1  ;;  %v419_v7 = vld [vmem:[%s6900_s1 + $0x1f0] sm:$0xff]  ;;  %v418_v10 = vld [vmem:[%s6900_s1 + $0x1e8] sm:$0xff] }
   0xe   : > { %v404_v5 = vld [vmem:[%s6900_s1 + $0x178] sm:$0xff]  ;;  %3756 = vmatprep.subr.mxu1 %v420_v3  ;;  %3687 = vmatprep.subr.mxu0 %v387_v2  ;;  %v403_v9 = vld [vmem:[%s6900_s1 + $0x170] sm:$0xff]  ;;  %v385_v11 = vld [vmem:[%s6900_s1 + $0xe0] sm:$0xff]  ;;  %s4889_s12 = scalar_lea.vmem %s6899_s0, %s4641_s14 }
   0xf   : > { %3757 = vmatpush3.msra.mxu1 %v404_v5  ;;  %3688 = vmatpush3.msra.mxu0 %v371_v4  ;;  %v402_v12 = vld [vmem:[%s6900_s1 + $0x168] sm:$0xff]  ;;  %v369_v13 = vld [vmem:[%s6900_s1 + $0x60] sm:$0xff]  ;;  %v384_v15 = vld [vmem:[%s6900_s1 + $0xd8] sm:$0xff] }
  0x10   : > { %3758 = vmatprep.subr.mxu1 %v419_v7  ;;  %3689 = vmatprep.subr.mxu0 %v386_v6  ;;  %v417_v14 = vld [vmem:[%s6900_s1 + $0x1e0] sm:$0xff]  ;;  %v368_v17 = vld [vmem:[%s6900_s1 + $0x58] sm:$0xff]  ;;  %v383_v19 = vld [vmem:[%s6900_s1 + $0xd0] sm:$0xff] }
  0x11   : > { %3759 = vmatpush3.msra.mxu1 %v403_v9  ;;  %3690 = vmatpush3.msra.mxu0 %v370_v8  ;;  %v401_v16 = vld [vmem:[%s6900_s1 + $0x160] sm:$0xff]  ;;  %v416_v18 = vld [vmem:[%s6900_s1 + $0x1d8] sm:$0xff]  ;;  %v367_v21 = vld [vmem:[%s6900_s1 + $0x50] sm:$0xff] }
  0x12   : > { %3760 = vmatprep.subr.mxu1 %v418_v10  ;;  %3691 = vmatprep.subr.mxu0 %v385_v11  ;;  %v400_v20 = vld [vmem:[%s6900_s1 + $0x158] sm:$0xff]  ;;  %v415_v22 = vld [vmem:[%s6900_s1 + $0x1d0] sm:$0xff]  ;;  %v382_v23 = vld [vmem:[%s6900_s1 + $0xc8] sm:$0xff] }
  0x13   : > { %3761 = vmatpush3.msra.mxu1 %v402_v12  ;;  %3692 = vmatpush3.msra.mxu0 %v369_v13  ;;  %v399_v24 = vld [vmem:[%s6900_s1 + $0x150] sm:$0xff]  ;;  %v366_v25 = vld [vmem:[%s6900_s1 + $0x48] sm:$0xff]  ;;  %v381_v27 = vld [vmem:[%s6900_s1 + $0xc0] sm:$0xff] }
  0x14   : > { %3762 = vmatprep.subr.mxu1 %v417_v14  ;;  %3693 = vmatprep.subr.mxu0 %v384_v15  ;;  %v414_v26 = vld [vmem:[%s6900_s1 + $0x1c8] sm:$0xff]  ;;  %v365_v29 = vld [vmem:[%s6900_s1 + $0x40] sm:$0xff]  ;;  %v380_v31 = vld [vmem:[%s6900_s1 + $0xb8] sm:$0xff] }
  0x15   : > { %3763 = vmatpush3.msra.mxu1 %v401_v16  ;;  %3694 = vmatpush3.msra.mxu0 %v368_v17  ;;  %v398_v28 = vld [vmem:[%s6900_s1 + $0x148] sm:$0xff]  ;;  %v413_v30 = vld [vmem:[%s6900_s1 + $0x1c0] sm:$0xff]  ;;  %v364_v33 = vld [vmem:[%s6900_s1 + $0x38] sm:$0xff] }
  0x16   : > { %3764 = vmatprep.subr.mxu1 %v416_v18  ;;  %3695 = vmatprep.subr.mxu0 %v383_v19  ;;  %v397_v32 = vld [vmem:[%s6900_s1 + $0x140] sm:$0xff]  ;;  %v412_v34 = vld [vmem:[%s6900_s1 + $0x1b8] sm:$0xff]  ;;  %v379_v35 = vld [vmem:[%s6900_s1 + $0xb0] sm:$0xff] }
  0x17   : > { %3765 = vmatpush3.msra.mxu1 %v400_v20  ;;  %3696 = vmatpush3.msra.mxu0 %v367_v21  ;;  %v396_v36 = vld [vmem:[%s6900_s1 + $0x138] sm:$0xff]  ;;  %v363_v37 = vld [vmem:[%s6900_s1 + $0x30] sm:$0xff]  ;;  %v378_v39 = vld [vmem:[%s6900_s1 + $0xa8] sm:$0xff] }
  0x18   : > { %3766 = vmatprep.subr.mxu1 %v415_v22  ;;  %3697 = vmatprep.subr.mxu0 %v382_v23  ;;  %v411_v38 = vld [vmem:[%s6900_s1 + $0x1b0] sm:$0xff]  ;;  %v362_v41 = vld [vmem:[%s6900_s1 + $0x28] sm:$0xff]  ;;  %v377_v43 = vld [vmem:[%s6900_s1 + $0xa0] sm:$0xff] }
  0x19   : > { %3767 = vmatpush3.msra.mxu1 %v399_v24  ;;  %3698 = vmatpush3.msra.mxu0 %v366_v25  ;;  %v395_v40 = vld [vmem:[%s6900_s1 + $0x130] sm:$0xff]  ;;  %v410_v42 = vld [vmem:[%s6900_s1 + $0x1a8] sm:$0xff]  ;;  %v361_v45 = vld [vmem:[%s6900_s1 + $0x20] sm:$0xff] }
  0x1a   : > { %3768 = vmatprep.subr.mxu1 %v414_v26  ;;  %3699 = vmatprep.subr.mxu0 %v381_v27  ;;  %v394_v44 = vld [vmem:[%s6900_s1 + $0x128] sm:$0xff]  ;;  %v409_v46 = vld [vmem:[%s6900_s1 + $0x1a0] sm:$0xff]  ;;  %v376_v47 = vld [vmem:[%s6900_s1 + $0x98] sm:$0xff] }
  0x1b   : > { %3769 = vmatpush3.msra.mxu1 %v398_v28  ;;  %3700 = vmatpush3.msra.mxu0 %v365_v29  ;;  %v393_v48 = vld [vmem:[%s6900_s1 + $0x120] sm:$0xff]  ;;  %v360_v49 = vld [vmem:[%s6900_s1 + $0x18] sm:$0xff]  ;;  %v375_v51 = vld [vmem:[%s6900_s1 + $0x90] sm:$0xff] }
  0x1c   : > { %3770 = vmatprep.subr.mxu1 %v413_v30  ;;  %3701 = vmatprep.subr.mxu0 %v380_v31  ;;  %v408_v50 = vld [vmem:[%s6900_s1 + $0x198] sm:$0xff]  ;;  %v359_v53 = vld [vmem:[%s6900_s1 + $0x10] sm:$0xff]  ;;  %v374_v55 = vld [vmem:[%s6900_s1 + $0x88] sm:$0xff] }
  0x1d   : > { %3771 = vmatpush3.msra.mxu1 %v397_v32  ;;  %3702 = vmatpush3.msra.mxu0 %v364_v33  ;;  %v392_v52 = vld [vmem:[%s6900_s1 + $0x118] sm:$0xff]  ;;  %v407_v54 = vld [vmem:[%s6900_s1 + $0x190] sm:$0xff]  ;;  %v358_v57 = vld [vmem:[%s6900_s1 + $0x8] sm:$0xff] }
  0x1e   : > { %3772 = vmatprep.subr.mxu1 %v412_v34  ;;  %3703 = vmatprep.subr.mxu0 %v379_v35  ;;  %v391_v56 = vld [vmem:[%s6900_s1 + $0x110] sm:$0xff]  ;;  %v406_v58 = vld [vmem:[%s6900_s1 + $0x188] sm:$0xff]  ;;  %v373_v59 = vld [vmem:[%s6900_s1 + $0x80] sm:$0xff] }
  0x1f   : > { %3773 = vmatpush3.msra.mxu1 %v396_v36  ;;  %3704 = vmatpush3.msra.mxu0 %v363_v37  ;;  %v280_v60 = vld [vmem:[%s4889_s12 + $0x8] sm:$0xff]  ;;  %v357_v61 = vld [vmem:[%s6900_s1] sm:$0xff]  ;;  %v452_v1 = vld [vmem:[%s6900_s1 + $0x2f8] sm:$0xff] }
  0x20   : > { %3774 = vmatprep.subr.mxu1 %v411_v38  ;;  %3705 = vmatprep.subr.mxu0 %v378_v39  ;;  %v390_v62 = vld [vmem:[%s6900_s1 + $0x108] sm:$0xff]  ;;  %v279_v63 = vld [vmem:[%s4889_s12] sm:$0xff]  ;;  %v282_v3 = vld [vmem:[%s4889_s12 + $0x18] sm:$0xff] }
  0x21   : > { %3775 = vmatpush3.msra.mxu1 %v395_v40  ;;  %3706 = vmatpush3.msra.mxu0 %v362_v41  ;;  %v405_v0 = vld [vmem:[%s6900_s1 + $0x180] sm:$0xff]  ;;  %v436_v4 = vld [vmem:[%s6900_s1 + $0x278] sm:$0xff]  ;;  %v281_v5 = vld [vmem:[%s4889_s12 + $0x10] sm:$0xff] }
  0x22   : > { %3776 = vmatprep.subr.mxu1 %v410_v42  ;;  %3707 = vmatprep.subr.mxu0 %v377_v43  ;;  %v389_v2 = vld [vmem:[%s6900_s1 + $0x100] sm:$0xff]  ;;  %v286_v6 = vld [vmem:[%s4889_s12 + $0x38] sm:$0xff]  ;;  %v285_v7 = vld [vmem:[%s4889_s12 + $0x30] sm:$0xff] }
  0x23   : > { %3777 = vmatpush3.msra.mxu1 %v394_v44  ;;  %3708 = vmatpush3.msra.mxu0 %v361_v45  ;;  %v451_v8 = vld [vmem:[%s6900_s1 + $0x2f0] sm:$0xff]  ;;  %v288_v9 = vld [vmem:[%s4889_s12 + $0x48] sm:$0xff]  ;;  %v287_v13 = vld [vmem:[%s4889_s12 + $0x40] sm:$0xff] }
  0x24   : > { %3778 = vmatprep.subr.mxu1 %v409_v46  ;;  %3709 = vmatprep.subr.mxu0 %v376_v47  ;;  %v435_v10 = vld [vmem:[%s6900_s1 + $0x270] sm:$0xff]  ;;  %v292_v11 = vld [vmem:[%s4889_s12 + $0x68] sm:$0xff]  ;;  %v291_v15 = vld [vmem:[%s4889_s12 + $0x60] sm:$0xff] }
  0x25   : > { %3779 = vmatpush3.msra.mxu1 %v393_v48  ;;  %3710 = vmatpush3.msra.mxu0 %v360_v49  ;;  %v450_v12 = vld [vmem:[%s6900_s1 + $0x2e8] sm:$0xff]  ;;  %v294_v16 = vld [vmem:[%s4889_s12 + $0x78] sm:$0xff]  ;;  %v449_v17 = vld [vmem:[%s6900_s1 + $0x2e0] sm:$0xff] }
  0x26   : > { %3780 = vmatprep.subr.mxu1 %v408_v50  ;;  %3711 = vmatprep.subr.mxu0 %v375_v51  ;;  %v434_v14 = vld [vmem:[%s6900_s1 + $0x268] sm:$0xff]  ;;  %v298_v18 = vld [vmem:[%s4889_s12 + $0x98] sm:$0xff]  ;;  %v433_v19 = vld [vmem:[%s6900_s1 + $0x260] sm:$0xff] }
  0x27   : > { %3781 = vmatpush3.msra.mxu1 %v392_v52  ;;  %3712 = vmatpush3.msra.mxu0 %v359_v53  ;;  %v293_v20 = vld [vmem:[%s4889_s12 + $0x70] sm:$0xff]  ;;  %v448_v21 = vld [vmem:[%s6900_s1 + $0x2d8] sm:$0xff]  ;;  %v300_v23 = vld [vmem:[%s4889_s12 + $0xa8] sm:$0xff] }
  0x28   : > { %3782 = vmatprep.subr.mxu1 %v407_v54  ;;  %3713 = vmatprep.subr.mxu0 %v374_v55  ;;  %v297_v22 = vld [vmem:[%s4889_s12 + $0x90] sm:$0xff]  ;;  %v432_v24 = vld [vmem:[%s6900_s1 + $0x258] sm:$0xff]  ;;  %v304_v25 = vld [vmem:[%s4889_s12 + $0xc8] sm:$0xff] }
  0x29   : > { %3783 = vmatpush3.msra.mxu1 %v391_v56  ;;  %3714 = vmatpush3.msra.mxu0 %v358_v57  ;;  %v447_v26 = vld [vmem:[%s6900_s1 + $0x2d0] sm:$0xff]  ;;  %v299_v27 = vld [vmem:[%s4889_s12 + $0xa0] sm:$0xff]  ;;  %v306_v30 = vld [vmem:[%s4889_s12 + $0xd8] sm:$0xff] }
  0x2a   : > { %3784 = vmatprep.subr.mxu1 %v406_v58  ;;  %3715 = vmatprep.subr.mxu0 %v373_v59  ;;  %v431_v28 = vld [vmem:[%s6900_s1 + $0x250] sm:$0xff]  ;;  %v303_v29 = vld [vmem:[%s4889_s12 + $0xc0] sm:$0xff]  ;;  %v310_v31 = vld [vmem:[%s4889_s12 + $0xf8] sm:$0xff] }
  0x2b   : > { %524 = vmatprep.mubr.f32.mxu0 %v280_v60  ;;  %3716 = vmatpush3.msra.mxu0 %v357_v61  ;;  %v446_v32 = vld [vmem:[%s6900_s1 + $0x2c8] sm:$0xff]  ;;  %v305_v34 = vld [vmem:[%s4889_s12 + $0xd0] sm:$0xff]  ;;  %v445_v35 = vld [vmem:[%s6900_s1 + $0x2c0] sm:$0xff] }
  0x2c   : > { %3785 = vmatpush3.msra.mxu1 %v390_v62  ;;  %525 = vmatmul.mubr.f32.vlgmr.msra.gmra.mxu0 %v279_v63  ;;  %v430_v33 = vld [vmem:[%s6900_s1 + $0x248] sm:$0xff]  ;;  %v309_v36 = vld [vmem:[%s4889_s12 + $0xf0] sm:$0xff]  ;;  %v429_v39 = vld [vmem:[%s6900_s1 + $0x240] sm:$0xff] }
  0x2d   : > { %3786 = vmatprep.subr.mxu1 %v405_v0  ;;  %3827 = vmatprep.subr.mxu0 %v452_v1  ;;  %v312_v37 = vld [vmem:[%s4889_s12 + $0x108] sm:$0xff]  ;;  %v444_v40 = vld [vmem:[%s6900_s1 + $0x2b8] sm:$0xff]  ;;  %v311_v41 = vld [vmem:[%s4889_s12 + $0x100] sm:$0xff] }
  0x2e   : > { %3787 = vmatpush3.msra.mxu1 %v389_v2  ;;  %654 = vmatprep.mubr.f32.mxu1 %v282_v3  ;;  %v316_v38 = vld [vmem:[%s4889_s12 + $0x128] sm:$0xff]  ;;  %v428_v42 = vld [vmem:[%s6900_s1 + $0x238] sm:$0xff]  ;;  %v315_v43 = vld [vmem:[%s4889_s12 + $0x120] sm:$0xff] }
  0x2f   : > { %3828 = vmatpush3.msra.mxu0 %v436_v4  ;;  %655 = vmatmul.mubr.f32.vlgmr.msra.gmra.mxu1 %v281_v5  ;;  %v318_v44 = vld [vmem:[%s4889_s12 + $0x138] sm:$0xff]  ;;  %v443_v46 = vld [vmem:[%s6900_s1 + $0x2b0] sm:$0xff]  ;;  %v442_v49 = vld [vmem:[%s6900_s1 + $0x2a8] sm:$0xff] }
  0x30   : > { %529 = vmatprep.mubr.f32.mxu0 %v286_v6  ;;  %3829 = vmatprep.subr.mxu0 %v451_v8  ;;  %v322_v45 = vld [vmem:[%s4889_s12 + $0x158] sm:$0xff]  ;;  %v427_v47 = vld [vmem:[%s6900_s1 + $0x230] sm:$0xff]  ;;  %v324_v51 = vld [vmem:[%s4889_s12 + $0x168] sm:$0xff] }
  0x31   : > { %530 = vmatmul.mubr.f32.gmra.mxu0 %v285_v7  ;;  %659 = vmatprep.mubr.f32.mxu1 %v288_v9  ;;  %v317_v48 = vld [vmem:[%s4889_s12 + $0x130] sm:$0xff]  ;;  %v328_v52 = vld [vmem:[%s4889_s12 + $0x188] sm:$0xff]  ;;  %v441_v54 = vld [vmem:[%s6900_s1 + $0x2a0] sm:$0xff] }
  0x32   : > { %3830 = vmatpush3.msra.mxu0 %v435_v10  ;;  %534 = vmatprep.mubr.f32.mxu0 %v292_v11  ;;  %v321_v50 = vld [vmem:[%s4889_s12 + $0x150] sm:$0xff]  ;;  %v426_v53 = vld [vmem:[%s6900_s1 + $0x228] sm:$0xff]  ;;  %v323_v55 = vld [vmem:[%s4889_s12 + $0x160] sm:$0xff] }
  0x33   : > { %3831 = vmatprep.subr.mxu0 %v450_v12  ;;  %660 = vmatmul.mubr.f32.gmra.mxu1 %v287_v13  ;;  %v425_v56 = vld [vmem:[%s6900_s1 + $0x220] sm:$0xff]  ;;  %v330_v58 = vld [vmem:[%s4889_s12 + $0x198] sm:$0xff]  ;;  %v329_v62 = vld [vmem:[%s4889_s12 + $0x190] sm:$0xff] }
  0x34   : > { %3832 = vmatpush3.msra.mxu0 %v434_v14  ;;  %664 = vmatprep.mubr.f32.mxu1 %v294_v16  ;;  %v327_v57 = vld [vmem:[%s4889_s12 + $0x180] sm:$0xff]  ;;  %v334_v59 = vld [vmem:[%s4889_s12 + $0x1b8] sm:$0xff]  ;;  %v439_v63 = vld [vmem:[%s6900_s1 + $0x290] sm:$0xff] }
  0x35   : > { %535 = vmatmul.mubr.f32.gmra.mxu0 %v291_v15  ;;  %3833 = vmatprep.subr.mxu0 %v449_v17  ;;  %v440_v60 = vld [vmem:[%s6900_s1 + $0x298] sm:$0xff]  ;;  %v333_v0 = vld [vmem:[%s4889_s12 + $0x1b0] sm:$0xff]  ;;  %v336_v1 = vld [vmem:[%s4889_s12 + $0x1c8] sm:$0xff] }
  0x36   : > { %539 = vmatprep.mubr.f32.mxu0 %v298_v18  ;;  %3834 = vmatpush3.msra.mxu0 %v433_v19  ;;  %v424_v61 = vld [vmem:[%s6900_s1 + $0x218] sm:$0xff]  ;;  %v340_v2 = vld [vmem:[%s4889_s12 + $0x1e8] sm:$0xff]  ;;  %v423_v3 = vld [vmem:[%s6900_s1 + $0x210] sm:$0xff] }
  0x37   : > { %665 = vmatmul.mubr.f32.gmra.mxu1 %v293_v20  ;;  %3835 = vmatprep.subr.mxu0 %v448_v21  ;;  %v438_v4 = vld [vmem:[%s6900_s1 + $0x288] sm:$0xff]  ;;  %v335_v5 = vld [vmem:[%s4889_s12 + $0x1c0] sm:$0xff]  ;;  %v342_v8 = vld [vmem:[%s4889_s12 + $0x1f8] sm:$0xff] }
  0x38   : > { %669 = vmatprep.mubr.f32.mxu1 %v300_v23  ;;  %3836 = vmatpush3.msra.mxu0 %v432_v24  ;;  %v422_v6 = vld [vmem:[%s6900_s1 + $0x208] sm:$0xff]  ;;  %v339_v7 = vld [vmem:[%s4889_s12 + $0x1e0] sm:$0xff]  ;;  %v346_v9 = vld [vmem:[%s4889_s12 + $0x218] sm:$0xff] }
  0x39   : > { %540 = vmatmul.mubr.f32.gmra.mxu0 %v297_v22  ;;  %3837 = vmatprep.subr.mxu0 %v447_v26  ;;  %v437_v10 = vld [vmem:[%s6900_s1 + $0x280] sm:$0xff]  ;;  %v341_v12 = vld [vmem:[%s4889_s12 + $0x1f0] sm:$0xff]  ;;  %v348_v14 = vld [vmem:[%s4889_s12 + $0x228] sm:$0xff] }
  0x3a   : > { %544 = vmatprep.mubr.f32.mxu0 %v304_v25  ;;  %3838 = vmatpush3.msra.mxu0 %v431_v28  ;;  %v421_v11 = vld [vmem:[%s6900_s1 + $0x200] sm:$0xff]  ;;  %v345_v13 = vld [vmem:[%s4889_s12 + $0x210] sm:$0xff]  ;;  %v352_v15 = vld [vmem:[%s4889_s12 + $0x248] sm:$0xf] }
  0x3b   : > { %670 = vmatmul.mubr.f32.gmra.mxu1 %v299_v27  ;;  %3839 = vmatprep.subr.mxu0 %v446_v32  ;;  %v347_v16 = vld [vmem:[%s4889_s12 + $0x220] sm:$0xff]  ;;  %v354_v18 = vld [vmem:[%s4889_s12 + $0x258] sm:$0xf]  ;;  %v284_v19 = vld [vmem:[%s4889_s12 + $0x28] sm:$0xff] }
  0x3c   : > { %674 = vmatprep.mubr.f32.mxu1 %v306_v30  ;;  %3840 = vmatpush3.msra.mxu0 %v430_v33  ;;  %v351_v17 = vld [vmem:[%s4889_s12 + $0x240] sm:$0xf]  ;;  %v353_v20 = vld [vmem:[%s4889_s12 + $0x250] sm:$0xf]  ;;  %v290_v22 = vld [vmem:[%s4889_s12 + $0x58] sm:$0xff] }
  0x3d   : > { %545 = vmatmul.mubr.f32.gmra.mxu0 %v303_v29  ;;  %3841 = vmatprep.subr.mxu0 %v445_v35  ;;  %v283_v21 = vld [vmem:[%s4889_s12 + $0x20] sm:$0xff]  ;;  %v289_v23 = vld [vmem:[%s4889_s12 + $0x50] sm:$0xff]  ;;  %v296_v24 = vld [vmem:[%s4889_s12 + $0x88] sm:$0xff] }
  0x3e   : > { %549 = vmatprep.mubr.f32.mxu0 %v310_v31  ;;  %3842 = vmatpush3.msra.mxu0 %v429_v39  ;;  %v295_v25 = vld [vmem:[%s4889_s12 + $0x80] sm:$0xff]  ;;  %v302_v26 = vld [vmem:[%s4889_s12 + $0xb8] sm:$0xff]  ;;  %v301_v27 = vld [vmem:[%s4889_s12 + $0xb0] sm:$0xff] }
  0x3f   : > { %675 = vmatmul.mubr.f32.gmra.mxu1 %v305_v34  ;;  %3843 = vmatprep.subr.mxu0 %v444_v40  ;;  %v308_v28 = vld [vmem:[%s4889_s12 + $0xe8] sm:$0xff]  ;;  %v307_v29 = vld [vmem:[%s4889_s12 + $0xe0] sm:$0xff]  ;;  %v314_v30 = vld [vmem:[%s4889_s12 + $0x118] sm:$0xff] }
  0x40   : > { %679 = vmatprep.mubr.f32.mxu1 %v312_v37  ;;  %3844 = vmatpush3.msra.mxu0 %v428_v42  ;;  %v313_v31 = vld [vmem:[%s4889_s12 + $0x110] sm:$0xff]  ;;  %v320_v32 = vld [vmem:[%s4889_s12 + $0x148] sm:$0xff]  ;;  %v319_v33 = vld [vmem:[%s4889_s12 + $0x140] sm:$0xff] }
  0x41   : > { %550 = vmatmul.mubr.f32.gmra.mxu0 %v309_v36  ;;  %3845 = vmatprep.subr.mxu0 %v443_v46  ;;  %v326_v34 = vld [vmem:[%s4889_s12 + $0x178] sm:$0xff]  ;;  %v325_v35 = vld [vmem:[%s4889_s12 + $0x170] sm:$0xff]  ;;  %v332_v36 = vld [vmem:[%s4889_s12 + $0x1a8] sm:$0xff]  ;;  %v4659_v46 = vmov 0.0  }
  0x42   : > { %554 = vmatprep.mubr.f32.mxu0 %v316_v38  ;;  %3846 = vmatpush3.msra.mxu0 %v427_v47  ;;  %v331_v37 = vld [vmem:[%s4889_s12 + $0x1a0] sm:$0xff]  ;;  %v338_v38 = vld [vmem:[%s4889_s12 + $0x1d8] sm:$0xff]  ;;  %v337_v39 = vld [vmem:[%s4889_s12 + $0x1d0] sm:$0xff]  ;;  %878 = vst [vmem:[#allocation3 + $0x10] sm:$0xff] %v4659_v46 }
  0x43   : > { %680 = vmatmul.mubr.f32.gmra.mxu1 %v311_v41  ;;  %3847 = vmatprep.subr.mxu0 %v442_v49  ;;  %v344_v40 = vld [vmem:[%s4889_s12 + $0x208] sm:$0xff]  ;;  %v343_v41 = vld [vmem:[%s4889_s12 + $0x200] sm:$0xff]  ;;  %v350_v42 = vld [vmem:[%s4889_s12 + $0x238] sm:$0xff]  ;;  %876 = vst [vmem:[#allocation3] sm:$0xff] %v4659_v46 }
  0x44   : > { %684 = vmatprep.mubr.f32.mxu1 %v318_v44  ;;  %3848 = vmatpush3.msra.mxu0 %v426_v53  ;;  %v356_v44 = vld [vmem:[%s4889_s12 + $0x268] sm:$0xf]  ;;  %877 = vst [vmem:[#allocation3 + $0x8] sm:$0xff] %v4659_v46  ;;  %879 = vst [vmem:[#allocation3 + $0x18] sm:$0xff] %v4659_v46  ;;  %v1407_v47 = vld [vmem:[%s6902_s3 + $0xf8] sm:$0xff] }
  0x45   : > { %555 = vmatmul.mubr.f32.gmra.mxu0 %v315_v43  ;;  %3849 = vmatprep.subr.mxu0 %v441_v54  ;;  %v349_v43 = vld [vmem:[%s4889_s12 + $0x230] sm:$0xff]  ;;  %880 = vst [vmem:[#allocation3 + $0x20] sm:$0xff] %v4659_v46  ;;  %881 = vst [vmem:[#allocation3 + $0x28] sm:$0xff] %v4659_v46  ;;  %v1404_v53 = vld [vmem:[%s6902_s3 + $0xe0] sm:$0xff] }
  0x46   : > { %559 = vmatprep.mubr.f32.mxu0 %v322_v45  ;;  %3850 = vmatpush3.msra.mxu0 %v425_v56  ;;  %v355_v45 = vld [vmem:[%s4889_s12 + $0x260] sm:$0xf]  ;;  %882 = vst [vmem:[#allocation3 + $0x30] sm:$0x1] %v4659_v46  ;;  %2760 = vst [vmem:[#allocation5] sm:$0xff] %v4659_v46  ;;  %v1406_v49 = vld [vmem:[%s6902_s3 + $0xf0] sm:$0xff] }
  0x47   : > { %685 = vmatmul.mubr.f32.gmra.mxu1 %v317_v48  ;;  %3851 = vmatprep.subr.mxu0 %v440_v60  ;;  %2761 = vst [vmem:[#allocation5 + $0x8] sm:$0xff] %v4659_v46  ;;  %2762 = vst [vmem:[#allocation5 + $0x10] sm:$0xff] %v4659_v46  ;;  %v1391_v48 = vld [vmem:[%s6902_s3 + $0x78] sm:$0xff]  ;;  %v1388_v54 = vld [vmem:[%s6902_s3 + $0x60] sm:$0xff]  ;;  %s3684_s12 = sshll.u32 %s6909_s25, 5 }
  0x48   : > { %689 = vmatprep.mubr.f32.mxu1 %v324_v51  ;;  %3852 = vmatpush3.msra.mxu0 %v424_v61  ;;  %2763 = vst [vmem:[#allocation5 + $0x18] sm:$0xff] %v4659_v46  ;;  %2764 = vst [vmem:[#allocation5 + $0x20] sm:$0xff] %v4659_v46  ;;  %v1405_v51 = vld [vmem:[%s6902_s3 + $0xe8] sm:$0xff]  ;;  %v1387_v56 = vld [vmem:[%s6902_s3 + $0x58] sm:$0xff]  ;;  %s278_s14 = scalar_lea.vmem %s6906_s7, %s3684_s12 }
  0x49   : > { %560 = vmatmul.mubr.f32.gmra.mxu0 %v321_v50  ;;  %3853 = vmatprep.subr.mxu0 %v439_v63  ;;  %2765 = vst [vmem:[#allocation5 + $0x28] sm:$0xff] %v4659_v46  ;;  %2766 = vst [vmem:[#allocation5 + $0x30] sm:$0x1] %v4659_v46  ;;  %v1390_v50 = vld [vmem:[%s6902_s3 + $0x70] sm:$0xff]  ;;  %v1385_v60 = vld [vmem:[%s6902_s3 + $0x48] sm:$0xff] }
  0x4a   : > { %564 = vmatprep.mubr.f32.mxu0 %v328_v52  ;;  %3854 = vmatpush3.msra.mxu0 %v423_v3  ;;  %v1389_v52 = vld [vmem:[%s6902_s3 + $0x68] sm:$0xff]  ;;  %v1471_v61 = vld [vmem:[%s6902_s3 + $0x2f8] sm:$0xff]  ;;  %v1454_v3 = vld [vmem:[%s6902_s3 + $0x270] sm:$0xff] }
  0x4b   : > { %690 = vmatmul.mubr.f32.gmra.mxu1 %v323_v55  ;;  %3855 = vmatprep.subr.mxu0 %v438_v4  ;;  %v1403_v55 = vld [vmem:[%s6902_s3 + $0xd8] sm:$0xff]  ;;  %v1469_v4 = vld [vmem:[%s6902_s3 + $0x2e8] sm:$0xff]  ;;  %v1462_v46 = vld [vmem:[%s6902_s3 + $0x2b0] sm:$0xff] }
  0x4c   : > { %694 = vmatprep.mubr.f32.mxu1 %v330_v58  ;;  %3856 = vmatpush3.msra.mxu0 %v422_v6  ;;  %v1386_v58 = vld [vmem:[%s6902_s3 + $0x50] sm:$0xff]  ;;  %v1455_v63 = vld [vmem:[%s6902_s3 + $0x278] sm:$0xff]  ;;  %v1453_v6 = vld [vmem:[%s6902_s3 + $0x268] sm:$0xff] }
  0x4d   : > { %565 = vmatmul.mubr.f32.gmra.mxu0 %v327_v57  ;;  %3857 = vmatprep.subr.mxu0 %v437_v10  ;;  %v1402_v57 = vld [vmem:[%s6902_s3 + $0xd0] sm:$0xff] }
  0x4e   : > { %569 = vmatprep.mubr.f32.mxu0 %v334_v59  ;;  %3858 = vmatpush3.msra.mxu0 %v421_v11  ;;  %v1401_v59 = vld [vmem:[%s6902_s3 + $0xc8] sm:$0xff]  ;;  %v1382_v10 = vld [vmem:[%s6902_s3 + $0x30] sm:$0xff]  ;;  %v1452_v11 = vld [vmem:[%s6902_s3 + $0x260] sm:$0xff] }
  0x4f   : > { %695 = vmatmul.mubr.f32.gmra.mxu1 %v329_v62  ;;  %3898 = vmatprep.subr.mxu1 %v1407_v47  ;;  %v1400_v62 = vld [vmem:[%s6902_s3 + $0xc0] sm:$0xff] }
  0x50   : > { %699 = vmatprep.mubr.f32.mxu1 %v336_v1  ;;  %3899 = vmatpush3.msra.mxu1 %v1391_v48  ;;  %v1470_v1 = vld [vmem:[%s6902_s3 + $0x2f0] sm:$0xff]  ;;  %v1376_v48 = vld [vmem:[%s6902_s3] sm:$0xff] }
  0x51   : > { %570 = vmatmul.mubr.f32.gmra.mxu0 %v333_v0  ;;  %3900 = vmatprep.subr.mxu1 %v1406_v49  ;;  %v1384_v0 = vld [vmem:[%s6902_s3 + $0x40] sm:$0xff]  ;;  %v1446_v49 = vld [vmem:[%s6902_s3 + $0x230] sm:$0xff] }
  0x52   : > { %574 = vmatprep.mubr.f32.mxu0 %v340_v2  ;;  %3901 = vmatpush3.msra.mxu1 %v1390_v50  ;;  %v1399_v2 = vld [vmem:[%s6902_s3 + $0xb8] sm:$0xff] }
  0x53   : > { %700 = vmatmul.mubr.f32.gmra.mxu1 %v335_v5  ;;  %3902 = vmatprep.subr.mxu1 %v1405_v51  ;;  %v1383_v5 = vld [vmem:[%s6902_s3 + $0x38] sm:$0xff]  ;;  %v1461_v51 = vld [vmem:[%s6902_s3 + $0x2a8] sm:$0xff] }
  0x54   : > { %704 = vmatprep.mubr.f32.mxu1 %v342_v8  ;;  %3903 = vmatpush3.msra.mxu1 %v1389_v52  ;;  %v1468_v8 = vld [vmem:[%s6902_s3 + $0x2e0] sm:$0xff]  ;;  %v1439_v50 = vld [vmem:[%s6902_s3 + $0x1f8] sm:$0xff]  ;;  %v1445_v52 = vld [vmem:[%s6902_s3 + $0x228] sm:$0xff] }
  0x55   : > { %575 = vmatmul.mubr.f32.gmra.mxu0 %v339_v7  ;;  %3904 = vmatprep.subr.mxu1 %v1404_v53  ;;  %v1398_v7 = vld [vmem:[%s6902_s3 + $0xb0] sm:$0xff]  ;;  %v1460_v53 = vld [vmem:[%s6902_s3 + $0x2a0] sm:$0xff] }
  0x56   : > { %579 = vmatprep.mubr.f32.mxu0 %v346_v9  ;;  %3905 = vmatpush3.msra.mxu1 %v1388_v54  ;;  %v1003_v9 = vld [vmem:[#allocation3 + $0x7] sm:$0x7]  ;;  %v1444_v54 = vld [vmem:[%s6902_s3 + $0x220] sm:$0xff] }
  0x57   : > { %705 = vmatmul.mubr.f32.gmra.mxu1 %v341_v12  ;;  %3906 = vmatprep.subr.mxu1 %v1403_v55  ;;  %v1005_v12 = vrot.slane %v1003_v9, 5  ;;  %v1459_v55 = vld [vmem:[%s6902_s3 + $0x298] sm:$0xff] }
  0x58   : > { %709 = vmatprep.mubr.f32.mxu1 %v348_v14  ;;  %3907 = vmatpush3.msra.mxu1 %v1387_v56  ;;  %v1467_v14 = vld [vmem:[%s6902_s3 + $0x2d8] sm:$0xff]  ;;  %v1066_v56 = vld [vmem:[#allocation3 + $0x7] sm:$0x7] }
  0x59   : > { %580 = vmatmul.mubr.f32.gmra.mxu0 %v345_v13  ;;  %3908 = vmatprep.subr.mxu1 %v1402_v57  ;;  %v1397_v13 = vld [vmem:[%s6902_s3 + $0xa8] sm:$0xff]  ;;  %1007 = vst [vmem:[#allocation4 + $0x58] sm:$0x38] %v1005_v12  ;;  %v1443_v57 = vld [vmem:[%s6902_s3 + $0x218] sm:$0xff]  ;;  %1067 = vst [vmem:[#allocation4 + $0x48] sm:$0x7] %v1066_v56 }
  0x5a   : > { %584 = vmatprep.mubr.f32.mxu0 %v352_v15  ;;  %3909 = vmatpush3.msra.mxu1 %v1386_v58  ;;  %v1001_v15 = vld [vmem:[#allocation3] sm:$0x7]  ;;  %v1458_v58 = vld [vmem:[%s6902_s3 + $0x290] sm:$0xff] }
  0x5b   : > { %710 = vmatmul.mubr.f32.gmra.mxu1 %v347_v16  ;;  %3910 = vmatprep.subr.mxu1 %v1401_v59  ;;  %v1381_v16 = vld [vmem:[%s6902_s3 + $0x28] sm:$0xff]  ;;  %1002 = vst [vmem:[#allocation4 + $0x58] sm:$0x7] %v1001_v15  ;;  %v1442_v59 = vld [vmem:[%s6902_s3 + $0x210] sm:$0xff] }
  0x5c   : > { %714 = vmatprep.mubr.f32.mxu1 %v354_v18  ;;  %3911 = vmatpush3.msra.mxu1 %v1385_v60  ;;  %v1396_v18 = vld [vmem:[%s6902_s3 + $0xa0] sm:$0xff]  ;;  %v1457_v60 = vld [vmem:[%s6902_s3 + $0x288] sm:$0xff] }
  0x5d   : > { %585 = vmatmul.mubr.f32.gmra.mxu0 %v351_v17  ;;  %3974 = vmatprep.subr.mxu0 %v1471_v61  ;;  %v1451_v17 = vld [vmem:[%s6902_s3 + $0x258] sm:$0xff]  ;;  %v1441_v61 = vld [vmem:[%s6902_s3 + $0x208] sm:$0xff] }
  0x5e   : > { %784 = vmatprep.mubr.f32.mxu0 %v284_v19  ;;  %3912 = vmatprep.subr.mxu1 %v1400_v62  ;;  %v1466_v19 = vld [vmem:[%s6902_s3 + $0x2d0] sm:$0xff] }
  0x5f   : > { %715 = vmatmul.mubr.f32.gmra.mxu1 %v353_v20  ;;  %v1016_v20 = vld [vmem:[#allocation3 + $0x8] sm:$0x7] }
  0x60   : > { %3913 = vmatpush3.msra.mxu1 %v1384_v0  ;;  %v1079_v62 = vld [vmem:[#allocation3 + $0x8] sm:$0x7]  ;;  %v1118_v0 = vld [vmem:[#allocation3 + $0xb] sm:$0x7] }
  0x61   : > { %785 = vmatmul.mubr.f32.vlgmr.msra.gmra.mxu0 %v283_v21  ;;  %3914 = vmatprep.subr.mxu1 %v1399_v2  ;;  %v1380_v21 = vld [vmem:[%s6902_s3 + $0x20] sm:$0xff]  ;;  %1080 = vst [vmem:[#allocation4 + $0x168] sm:$0x7] %v1079_v62  ;;  %1119 = vst [vmem:[#allocation4 + $0x160] sm:$0x7] %v1118_v0 }
  0x62   : > { %789 = vmatprep.mubr.f32.mxu0 %v290_v22  ;;  %3975 = vmatpush3.msra.mxu0 %v1455_v63  ;;  %v1450_v22 = vld [vmem:[%s6902_s3 + $0x250] sm:$0xff]  ;;  %v1456_v63 = vld [vmem:[%s6902_s3 + $0x280] sm:$0xff] }
  0x63   : > { %3976 = vmatprep.subr.mxu0 %v1470_v1  ;;  %3915 = vmatpush3.msra.mxu1 %v1383_v5  ;;  %v1440_v1 = vld [vmem:[%s6902_s3 + $0x200] sm:$0xff]  ;;  %v1092_v2 = vld [vmem:[#allocation3 + $0x9] sm:$0x7]  ;;  %v1320_v62 = vld [vmem:[#allocation3 + $0x2e] sm:$0x7] }
  0x64   : > { %3977 = vmatpush3.msra.mxu0 %v1454_v3  ;;  %3916 = vmatprep.subr.mxu1 %v1398_v7  ;;  %v1535_v3 = vld [vmem:[%s6902_s3 + $0x4f8] sm:$0xff]  ;;  %1093 = vst [vmem:[#allocation4 + $0xf0] sm:$0x7] %v1092_v2  ;;  %v1255_v2 = vld [vmem:[#allocation3 + $0x27] sm:$0x7] }
  0x65   : > { %790 = vmatmul.mubr.f32.gmra.mxu0 %v289_v23  ;;  %3978 = vmatprep.subr.mxu0 %v1469_v4  ;;  %v1018_v23 = vrot.slane %v1016_v20, 5  ;;  %v1105_v4 = vld [vmem:[#allocation3 + $0xa] sm:$0x7] }
  0x66   : > { %794 = vmatprep.mubr.f32.mxu0 %v296_v24  ;;  %3979 = vmatpush3.msra.mxu0 %v1453_v6  ;;  %v1042_v24 = vld [vmem:[#allocation3 + $0xa] sm:$0x7]  ;;  %1106 = vst [vmem:[#allocation4 + $0xc0] sm:$0x7] %v1105_v4 }
  0x67   : > { %3980 = vmatprep.subr.mxu0 %v1468_v8  ;;  %3917 = vmatpush3.msra.mxu1 %v1382_v10  ;;  %1020 = vst [vmem:[#allocation4 + $0x8] sm:$0x38] %v1018_v23  ;;  %v1229_v23 = vld [vmem:[#allocation3 + $0x25] sm:$0x7] }
  0x68   : > { %3981 = vmatpush3.msra.mxu0 %v1452_v11  ;;  %3918 = vmatprep.subr.mxu1 %v1397_v13 }
  0x69   : > { %795 = vmatmul.mubr.f32.gmra.mxu0 %v295_v25  ;;  %3982 = vmatprep.subr.mxu0 %v1467_v14  ;;  %v1395_v25 = vld [vmem:[%s6902_s3 + $0x98] sm:$0xff] }
  0x6a   : > { %799 = vmatprep.mubr.f32.mxu0 %v302_v26  ;;  %3919 = vmatpush3.msra.mxu1 %v1381_v16  ;;  %v1465_v26 = vld [vmem:[%s6902_s3 + $0x2c8] sm:$0xff] }
  0x6b   : > { %3983 = vmatpush3.msra.mxu0 %v1451_v17  ;;  %3920 = vmatprep.subr.mxu1 %v1396_v18  ;;  %v1203_v18 = vld [vmem:[#allocation3 + $0x23] sm:$0x7] }
  0x6c   : > { %3984 = vmatprep.subr.mxu0 %v1466_v19  ;;  %3921 = vmatpush3.msra.mxu1 %v1380_v21  ;;  %v1205_v21 = vrot.slane %v1203_v18, 2 }
  0x6d   : > { %800 = vmatmul.mubr.f32.gmra.mxu0 %v301_v27  ;;  %v1014_v27 = vld [vmem:[#allocation3 + $0x1] sm:$0x7]  ;;  %3922 = vmatprep.subr.mxu1 %v1395_v25 }
  0x6e   : > { %804 = vmatprep.mubr.f32.mxu0 %v308_v28  ;;  %3985 = vmatpush3.msra.mxu0 %v1450_v22  ;;  %v1044_v28 = vrot.slane %v1042_v24, 5  ;;  %1015 = vst [vmem:[#allocation4 + $0x8] sm:$0x7] %v1014_v27  ;;  %v1216_v22 = vld [vmem:[#allocation3 + $0x24] sm:$0x7] }
  0x6f   : > { %3986 = vmatprep.subr.mxu0 %v1465_v26  ;;  %v1218_v24 = vrot.slane %v1216_v22, 2  ;;  %v1231_v26 = vrot.slane %v1229_v23, 2  ;;  %1207 = vst [vmem:[#allocation4 + $0xa0] ss:$-36 sps:$4 sm:$0xc1] %v1205_v21  }
  0x70   : > { %1046 = vst [vmem:[#allocation4 + $0x20] sm:$0x38] %v1044_v28  ;;  %v1276_v27 = vld [vmem:[#allocation3 + $0x24] sm:$0x7]  ;;  %v1307_v23 = vld [vmem:[#allocation3 + $0x2d] sm:$0x7] }
  0x71   : > { %805 = vmatmul.mubr.f32.gmra.mxu0 %v307_v29  ;;  %v1379_v29 = vld [vmem:[%s6902_s3 + $0x18] sm:$0xff]  ;;  %1220 = vst [vmem:[#allocation4] ss:$44 sps:$4 sm:$0xc1] %v1218_v24   ;;  %v1278_v28 = vrot.slane %v1276_v27, 5  ;;  %v1309_v27 = vrot.slane %v1307_v23, 2 }
  0x72   : > { %809 = vmatprep.mubr.f32.mxu0 %v314_v30  ;;  %v1449_v30 = vld [vmem:[%s6902_s3 + $0x248] sm:$0xff]  ;;  %3923 = vmatpush3.msra.mxu1 %v1379_v29  ;;  %v1281_v29 = vld [vmem:[#allocation3 + $0x2b] sm:$0x7]  ;;  %1233 = vst [vmem:[#allocation4 + $0x60] ss:$108 sps:$4 sm:$0xc1] %v1231_v26  }
  0x73   : > { %3987 = vmatpush3.msra.mxu0 %v1449_v30  ;;  %1280 = vst [vmem:[#allocation4 + $0xe0] sm:$0x38] %v1278_v28  ;;  %v1302_v21 = vld [vmem:[#allocation3 + $0x26] sm:$0x7] }
  0x74   : > { %v1304_v22 = vrot.slane %v1302_v21, 5  ;;  %v1242_v26 = vld [vmem:[#allocation3 + $0x26] sm:$0x7]  ;;  %1311 = vst [vmem:[#allocation4 + $0x30] ss:$252 sps:$4 sm:$0xc1] %v1309_v27  }
  0x75   : > { %810 = vmatmul.mubr.f32.gmra.mxu0 %v313_v31  ;;  %v1040_v31 = vld [vmem:[#allocation3 + $0x3] sm:$0x7] }
  0x76   : > { %814 = vmatprep.mubr.f32.mxu0 %v320_v32  ;;  %v1394_v32 = vld [vmem:[%s6902_s3 + $0x90] sm:$0xff]  ;;  %1041 = vst [vmem:[#allocation4 + $0x20] sm:$0x7] %v1040_v31  ;;  %1306 = vst [vmem:[#allocation4 + $0x128] sm:$0x38] %v1304_v22 }
  0x77   : > { %3924 = vmatprep.subr.mxu1 %v1394_v32  ;;  %v1283_v32 = vrot.slane %v1281_v29, 2  ;;  %v1244_v29 = vrot.slane %v1242_v26, 2 }
  0x79   : > { %815 = vmatmul.mubr.f32.gmra.mxu0 %v319_v33  ;;  %v1464_v33 = vld [vmem:[%s6902_s3 + $0x2c0] sm:$0xff]  ;;  %1285 = vst [vmem:[#allocation4 + $0x38] ss:$172 sps:$4 sm:$0xc1] %v1283_v32   ;;  %v1289_v32 = vld [vmem:[#allocation3 + $0x25] sm:$0x7] }
  0x7a   : > { %819 = vmatprep.mubr.f32.mxu0 %v326_v34  ;;  %v1053_v34 = vld [vmem:[#allocation3 + $0x4] sm:$0x7]  ;;  %3988 = vmatprep.subr.mxu0 %v1464_v33  ;;  %1246 = vst [vmem:[#allocation4 + $0x18] ss:$252 sps:$4 sm:$0xc1] %v1244_v29  }
  0x7b   : > { %1054 = vst [vmem:[#allocation4 + $0x148] sm:$0x7] %v1053_v34 }
  0x7d   : > { %820 = vmatmul.mubr.f32.gmra.mxu0 %v325_v35  ;;  %v1378_v35 = vld [vmem:[%s6902_s3 + $0x10] sm:$0xff] }
  0x7e   : > { %824 = vmatprep.mubr.f32.mxu0 %v332_v36  ;;  %v1448_v36 = vld [vmem:[%s6902_s3 + $0x240] sm:$0xff]  ;;  %3925 = vmatpush3.msra.mxu1 %v1378_v35 }
  0x7f   : > { %3989 = vmatpush3.msra.mxu0 %v1448_v36 }
  0x81   : > { %825 = vmatmul.mubr.f32.gmra.mxu0 %v331_v37  ;;  %v1055_v37 = vld [vmem:[#allocation3 + $0xb] sm:$0x7] }
  0x82   : > { %829 = vmatprep.mubr.f32.mxu0 %v338_v38  ;;  %v1393_v38 = vld [vmem:[%s6902_s3 + $0x88] sm:$0xff] }
  0x83   : > { %3926 = vmatprep.subr.mxu1 %v1393_v38 }
  0x85   : > { %830 = vmatmul.mubr.f32.gmra.mxu0 %v337_v39  ;;  %v1463_v39 = vld [vmem:[%s6902_s3 + $0x2b8] sm:$0xff] }
  0x86   : > { %834 = vmatprep.mubr.f32.mxu0 %v344_v40  ;;  %v1057_v40 = vrot.slane %v1055_v37, 5  ;;  %3990 = vmatprep.subr.mxu0 %v1463_v39 }
  0x88   : > { %1059 = vst [vmem:[#allocation4 + $0x148] sm:$0x38] %v1057_v40 }
  0x89   : > { %835 = vmatmul.mubr.f32.gmra.mxu0 %v343_v41  ;;  %v1027_v41 = vld [vmem:[#allocation3 + $0x2] sm:$0x7] }
  0x8a   : > { %839 = vmatprep.mubr.f32.mxu0 %v350_v42  ;;  %v1377_v42 = vld [vmem:[%s6902_s3 + $0x8] sm:$0xff]  ;;  %1028 = vst [vmem:[#allocation4 + $0xb0] sm:$0x7] %v1027_v41 }
  0x8b   : > { %3927 = vmatpush3.msra.mxu1 %v1377_v42 }
  0x8d   : > { %840 = vmatmul.mubr.f32.gmra.mxu0 %v349_v43  ;;  %v1447_v43 = vld [vmem:[%s6902_s3 + $0x238] sm:$0xff] }
  0x8e   : > { %844 = vmatprep.mubr.f32.mxu0 %v356_v44  ;;  %v1029_v44 = vld [vmem:[#allocation3 + $0x9] sm:$0x7]  ;;  %3991 = vmatpush3.msra.mxu0 %v1447_v43 }
  0x8f   : > { %v1031_v47 = vrot.slane %v1029_v44, 5  ;;  %3992 = vmatprep.subr.mxu0 %v1462_v46 }
  0x90   : > { %3993 = vmatpush3.msra.mxu0 %v1446_v49 }
  0x91   : > { %845 = vmatmul.mubr.f32.gmra.mxu0 %v355_v45  ;;  %v1392_v45 = vld [vmem:[%s6902_s3 + $0x80] sm:$0xff]  ;;  %1033 = vst [vmem:[#allocation4 + $0xb0] sm:$0x38] %v1031_v47  ;;  %3994 = vmatprep.subr.mxu0 %v1461_v51  ;;  %v1263_v51 = vld [vmem:[#allocation3 + $0x23] sm:$0x7] }
  0x92   : > { %3928 = vmatprep.subr.mxu1 %v1392_v45  ;;  %3995 = vmatpush3.msra.mxu0 %v1445_v52  ;;  %v1265_v52 = vrot.slane %v1263_v51, 5 }
  0x93   : > { %3929 = vmatpush3.msra.mxu1 %v1376_v48  ;;  %3996 = vmatprep.subr.mxu0 %v1460_v53  ;;  %v1268_v53 = vld [vmem:[#allocation3 + $0x2a] sm:$0x7] }
  0x94   : > { %3936 = vmatprep.subr.mxu1 %v1439_v50  ;;  %3997 = vmatpush3.msra.mxu0 %v1444_v54  ;;  %v1270_v56 = vrot.slane %v1268_v53, 2  ;;  %1267 = vst [vmem:[#allocation4 + $0xd8] sm:$0x38] %v1265_v52  ;;  %v1291_v53 = vrot.slane %v1289_v32, 5 }
  0x95   : > { %3998 = vmatprep.subr.mxu0 %v1459_v55 }
  0x96   : > { %3999 = vmatpush3.msra.mxu0 %v1443_v57  ;;  %v5361_v57 = vld [vmem:[%s6901_s2] ss:$0 sm:$0xff]  ;;  %1272 = vst [vmem:[#allocation4 + $0x170] ss:$-148 sps:$4 sm:$0xc1] %v1270_v56  }
  0x97   : > { %4000 = vmatprep.subr.mxu0 %v1458_v58  ;;  %1293 = vst [vmem:[#allocation4 + $0xf8] sm:$0x38] %v1291_v53 }
  0x98   : > { %4001 = vmatpush3.msra.mxu0 %v1442_v59 }
  0x99   : > { %4002 = vmatprep.subr.mxu0 %v1457_v60  ;;  %v1315_v60 = vld [vmem:[#allocation3 + $0x27] sm:$0x7] }
  0x9a   : > { %4003 = vmatpush3.msra.mxu0 %v1441_v61  ;;  %v1317_v61 = vrot.slane %v1315_v60, 5 }
  0x9b   : > { %4004 = vmatprep.subr.mxu0 %v1456_v63 }
  0x9c   : > { %4005 = vmatpush3.msra.mxu0 %v1440_v1  ;;  %1319 = vst [vmem:[#allocation4 + $0x100] sm:$0x38] %v1317_v61 }
  0x9d   : > { %4050 = vmatprep.subr.mxu0 %v1535_v3  ;;  %v1322_v3 = vrot.slane %v1320_v62, 2 }
  0x9f   : > { %1324 = vst [vmem:[#allocation4 + $0xa8] ss:$92 sps:$4 sm:$0xc1] %v1322_v3  }
  0xec   : > { %v3717_v5 = vpop.f32.mrf.mxu0 }
  0xee   : > { %v3718_v6 = vpop.f32.mrf.mxu0 }
  0xef   : > { %v5290_v7 = vpop.f32.mrf.mxu1  ;;  %v3719_v54 = vadd.f32 %v3718_v6, %v3717_v5  ;;  %v1257_v5 = vrot.slane %v1255_v2, 2 }
  0xf1   : > { %v5292_v8 = vpop.f32.mrf.mxu0  ;;  %v3789_v9 = vpop.f32.mrf.mxu1  ;;  %v527_v63 = vadd.f32 %v3719_v54, %v5361_v57  ;;  %1259 = vst [vmem:[#allocation4 + $0xd0] ss:$188 sps:$4 sm:$0xc1] %v1257_v5   ;;  %v1294_v54 = vld [vmem:[#allocation3 + $0x2c] sm:$0x7] }
  0xf2   : > { %v3790_v0 = vadd.f32 %v3789_v9, %v5290_v7 }
  0xf3   : > { %v5294_v10 = vpop.f32.mrf.mxu0  ;;  %v5296_v11 = vpop.f32.mrf.mxu1 }
  0xf4   : > { %v3722_v4 = vadd.f32 %v5294_v10, %v5292_v8  ;;  %v657_v24 = vadd.f32 %v3790_v0, %v527_v63 }
  0xf5   : > { %v5298_v12 = vpop.f32.mrf.mxu0  ;;  %v5300_v13 = vpop.f32.mrf.mxu1 }
  0xf6   : > { %v532_v28 = vadd.f32 %v3722_v4, %v5361_v57  ;;  %v3793_v8 = vadd.f32 %v5300_v13, %v5296_v11 }
  0xf7   : > { %v5302_v14 = vpop.f32.mrf.mxu0  ;;  %v5304_v15 = vpop.f32.mrf.mxu1 }
  0xf8   : > { %v3725_v7 = vadd.f32 %v5302_v14, %v5298_v12  ;;  %v1296_v12 = vrot.slane %v1294_v54, 2  ;;  %v662_v11 = vadd.f32 %v3793_v8, %v532_v28 }
  0xf9   : > { %v5306_v16 = vpop.f32.mrf.mxu0  ;;  %v5310_v19 = vpop.f32.mrf.mxu1 }
  0xfa   : > { %v537_v14 = vadd.f32 %v3725_v7, %v5361_v57  ;;  %1298 = vst [vmem:[#allocation4 + $0x40] ss:$188 sps:$4 sm:$0xc1] %v1296_v12  }
  0xfb   : > { %v5308_v17 = vpop.f32.mrf.mxu0  ;;  %v5316_v30 = vpop.f32.mrf.mxu1 }
  0xfc   : > { %v3728_v13 = vadd.f32 %v5308_v17, %v5306_v16 }
  0xfd   : > { %v5312_v20 = vpop.f32.mrf.mxu0  ;;  %v5322_v34 = vpop.f32.mrf.mxu1 }
  0xff   : > { %v5314_v25 = vpop.f32.mrf.mxu0  ;;  %v5328_v37 = vpop.f32.mrf.mxu1 }
 0x100   : > { %v3731_v3 = vadd.f32 %v5314_v25, %v5312_v20 }
 0x101   : > { %v5318_v31 = vpop.f32.mrf.mxu0  ;;  %v5334_v40 = vpop.f32.mrf.mxu1 }
 0x102   : > { %v547_v22 = vadd.f32 %v3731_v3, %v5361_v57  ;;  %v3802_v23 = vadd.f32 %v5334_v40, %v5328_v37 }
 0x103   : > { %v5320_v33 = vpop.f32.mrf.mxu0  ;;  %v5340_v43 = vpop.f32.mrf.mxu1 }
 0x104   : > { %v3734_v20 = vadd.f32 %v5320_v33, %v5318_v31  ;;  %v677_v27 = vadd.f32 %v3802_v23, %v547_v22 }
 0x105   : > { %v5324_v35 = vpop.f32.mrf.mxu0  ;;  %v5346_v46 = vpop.f32.mrf.mxu1 }
 0x106   : > { %v3805_v37 = vadd.f32 %v5346_v46, %v5340_v43 }
 0x107   : > { %v5326_v36 = vpop.f32.mrf.mxu0  ;;  %v5352_v49 = vpop.f32.mrf.mxu1 }
 0x108   : > { %v3737_v28 = vadd.f32 %v5326_v36, %v5324_v35 }
 0x109   : > { %v5330_v38 = vpop.f32.mrf.mxu0  ;;  %v5363_v58 = vpop.f32.mrf.mxu1 }
 0x10a   : > { %v557_v53 = vadd.f32 %v3737_v28, %v5361_v57  ;;  %v3808_v54 = vadd.f32 %v5363_v58, %v5352_v49 }
 0x10b   : > { %v5332_v39 = vpop.f32.mrf.mxu0  ;;  %v5369_v6 = vpop.f32.mrf.mxu1 }
 0x10c   : > { %v3740_v35 = vadd.f32 %v5332_v39, %v5330_v38  ;;  %v687_v38 = vadd.f32 %v3808_v54, %v557_v53 }
 0x10d   : > { %v5336_v41 = vpop.f32.mrf.mxu0  ;;  %v5376_v51 = vpop.f32.mrf.mxu1 }
 0x10e   : > { %v562_v39 = vadd.f32 %v3740_v35, %v5361_v57 }
 0x10f   : > { %v5338_v42 = vpop.f32.mrf.mxu0  ;;  %v5383_v63 = vpop.f32.mrf.mxu1 }
 0x111   : > { %v5342_v44 = vpop.f32.mrf.mxu0  ;;  %v3813_v17 = vpop.f32.mrf.mxu1 }
 0x113   : > { %v5344_v45 = vpop.f32.mrf.mxu0  ;;  %v5395_v26 = vpop.f32.mrf.mxu1 }
 0x115   : > { %v5348_v47 = vpop.f32.mrf.mxu0  ;;  %v5402_v31 = vpop.f32.mrf.mxu1 }
 0x117   : > { %v5350_v48 = vpop.f32.mrf.mxu0 }
 0x119   : > { %v5354_v50 = vpop.f32.mrf.mxu0 }
 0x11b   : > { %v5356_v55 = vpop.f32.mrf.mxu0 }
 0x11d   : > { %v3753_v59 = vpop.f32.mrf.mxu0 }
 0x11e   : > { %v3796_v59 = vadd.f32 %v5310_v19, %v5304_v15  ;;  %v542_v15 = vadd.f32 %v3728_v13, %v5361_v57  ;;  %v3799_v19 = vadd.f32 %v5322_v34, %v5316_v30 }
 0x11f   : > { %v3754_v1 = vpop.f32.mrf.mxu0 }
 0x120   : > { %v667_v2 = vadd.f32 %v3796_v59, %v537_v14  ;;  %v672_v7 = vadd.f32 %v3799_v19, %v542_v15 }
 0x121   : > { %v3859_v18 = vpop.f32.mrf.mxu0 }
 0x123   : > { %v3860_v9 = vpop.f32.mrf.mxu0 }
 0x124   : > { %v3861_v10 = vadd.f32 %v3860_v9, %v3859_v18 }
 0x125   : > { %v3862_v52 = vpop.f32.mrf.mxu0 }
 0x126   : > { %v787_v56 = vadd.f32 %v3861_v10, %v657_v24  ;;  %v552_v10 = vadd.f32 %v3734_v20, %v5361_v57 }
 0x127   : > { %v3863_v60 = vpop.f32.mrf.mxu0 }
 0x128   : > { %v850_v61 = vmax.f32 %v787_v56, 0.0  ;;  %v3864_v62 = vadd.f32 %v3863_v60, %v3862_v52  ;;  %v682_v12 = vadd.f32 %v3805_v37, %v552_v10  ;;  %v3743_v60 = vadd.f32 %v5338_v42, %v5336_v41 }
 0x129   : > { %v3865_v0 = vpop.f32.mrf.mxu0 }
 0x12a   : > { %863 = vst [vmem:[#allocation2] sm:$0xff] %v850_v61  ;;  %v792_v1 = vadd.f32 %v3864_v62, %v662_v11  ;;  %v3818_v11 = vpop.f32.mrf.mxu1 }
 0x12b   : > { %v3866_v4 = vpop.f32.mrf.mxu0 }
 0x12c   : > { %v851_v5 = vmax.f32 %v792_v1, 0.0  ;;  %v3867_v16 = vadd.f32 %v3866_v4, %v3865_v0  ;;  %v3811_v1 = vadd.f32 %v5376_v51, %v5369_v6  ;;  %v3746_v6 = vadd.f32 %v5344_v45, %v5342_v44 }
 0x12d   : > { %v3868_v18 = vpop.f32.mrf.mxu0 }
 0x12e   : > { %864 = vst [vmem:[#allocation2 + $0x8] sm:$0xff] %v851_v5  ;;  %v797_v21 = vadd.f32 %v3867_v16, %v667_v2  ;;  %v567_v5 = vadd.f32 %v3743_v60, %v5361_v57  ;;  %v3814_v16 = vadd.f32 %v3813_v17, %v5383_v63 }
 0x12f   : > { %v3869_v24 = vpop.f32.mrf.mxu0 }
 0x130   : > { %v852_v25 = vmax.f32 %v797_v21, 0.0  ;;  %v3870_v9 = vadd.f32 %v3869_v24, %v3868_v18  ;;  %v3819_v18 = vpop.f32.mrf.mxu1 }
 0x131   : > { %v3871_v30 = vpop.f32.mrf.mxu0  ;;  %v883_v36 = vld [vmem:[#allocation2] sm:$0x7]  ;;  %v897_v0 = vld [vmem:[#allocation2 + $0x3] sm:$0x7]  ;;  %v3820_v35 = vadd.f32 %v3819_v18, %v3818_v11 }
 0x132   : > { %865 = vst [vmem:[#allocation2 + $0x10] sm:$0xff] %v852_v25  ;;  %v802_v34 = vadd.f32 %v3870_v9, %v672_v7  ;;  %v692_v25 = vadd.f32 %v3811_v1, %v562_v39  ;;  %v3749_v9 = vadd.f32 %v5350_v48, %v5348_v47  ;;  %v3817_v47 = vadd.f32 %v5402_v31, %v5395_v26 }
 0x133   : > { %v3872_v8 = vpop.f32.mrf.mxu0 }
 0x134   : > { %v853_v40 = vmax.f32 %v802_v34, 0.0  ;;  %v3873_v29 = vadd.f32 %v3872_v8, %v3871_v30  ;;  %v3821_v8 = vpop.f32.mrf.mxu1  ;;  %v577_v54 = vadd.f32 %v3749_v9, %v5361_v57 }
 0x135   : > { %v884_v33 = vld [vmem:[#allocation2 + $0xa] sm:$0x7]  ;;  %v3874_v32 = vpop.f32.mrf.mxu0  ;;  %v898_v46 = vld [vmem:[#allocation2 + $0xd] sm:$0x7]  ;;  %v910_v3 = vld [vmem:[#allocation2 + $0x6] sm:$0x7] }
 0x136   : > { %866 = vst [vmem:[#allocation2 + $0x18] sm:$0xff] %v853_v40  ;;  %v807_v52 = vadd.f32 %v3873_v29, %v677_v27  ;;  %v885_v43 = vmax.f32 %v883_v36, %v884_v33  ;;  %v899_v2 = vmax.f32 %v897_v0, %v898_v46  ;;  %v697_v40 = vadd.f32 %v3814_v16, %v567_v5 }
 0x137   : > { %v3875_v56 = vpop.f32.mrf.mxu0  ;;  %v572_v29 = vadd.f32 %v3746_v6, %v5361_v57 }
 0x138   : > { %v854_v14 = vmax.f32 %v807_v52, 0.0  ;;  %v3876_v59 = vadd.f32 %v3875_v56, %v3874_v32 }
 0x139   : > { %v886_v13 = vld [vmem:[#allocation2 + $0x14] sm:$0x7]  ;;  %v911_v61 = vld [vmem:[#allocation2 + $0x10] sm:$0x7]  ;;  %v3877_v62 = vpop.f32.mrf.mxu0  ;;  %v702_v31 = vadd.f32 %v3817_v47, %v572_v29 }
 0x13a   : > { %v887_v49 = vmax.f32 %v885_v43, %v886_v13  ;;  %867 = vst [vmem:[#allocation2 + $0x20] sm:$0xff] %v854_v14  ;;  %v812_v58 = vadd.f32 %v3876_v59, %v682_v12  ;;  %v912_v42 = vmax.f32 %v910_v3, %v911_v61  ;;  %v3752_v12 = vadd.f32 %v5356_v55, %v5354_v50  ;;  %v3822_v43 = vpop.f32.mrf.mxu1 }
 0x13b   : > { %v3878_v4 = vpop.f32.mrf.mxu0  ;;  %v707_v55 = vadd.f32 %v3820_v35, %v577_v54  ;;  %v3823_v16 = vadd.f32 %v3822_v43, %v3821_v8 }
 0x13c   : > { %v889_v41 = vsel %vm888_vm0, %v887_v49, -inf  ;;  %v855_v15 = vmax.f32 %v812_v58, 0.0  ;;  %v3879_v19 = vadd.f32 %v3878_v4, %v3877_v62  ;;  %v582_v3 = vadd.f32 %v3752_v12, %v5361_v57  ;;  %v3824_v4 = vpop.f32.mrf.mxu1 }
 0x13d   : > { %v890_v21 = vrot.slane %v889_v41, 4  ;;  %v900_v22 = vld [vmem:[#allocation2 + $0x17] sm:$0x7]  ;;  %v913_v23 = vld [vmem:[#allocation2 + $0x1a] sm:$0x7]  ;;  %v3880_v24 = vpop.f32.mrf.mxu0 }
 0x13e   : > { %v901_v51 = vmax.f32 %v899_v2, %v900_v22  ;;  %v914_v7 = vmax.f32 %v912_v42, %v913_v23  ;;  %868 = vst [vmem:[#allocation2 + $0x28] sm:$0xff] %v855_v15  ;;  %v817_v20 = vadd.f32 %v3879_v19, %v687_v38 }
 0x13f   : > { %v891_v30 = vmax.f32 %v889_v41, %v890_v21  ;;  %v3881_v34 = vpop.f32.mrf.mxu0 }
 0x140   : > { %v902_v63 = vsel %vm888_vm0, %v901_v51, -inf  ;;  %v915_v17 = vsel %vm888_vm0, %v914_v7, -inf  ;;  %v856_v27 = vmax.f32 %v817_v20, 0.0  ;;  %v3882_v28 = vadd.f32 %v3881_v34, %v3880_v24  ;;  %v3825_v34 = vpop.f32.mrf.mxu1 }
 0x141   : > { %v892_v10 = vrot.slane %v891_v30, 2  ;;  %v903_v37 = vrot.slane %v902_v63, 4  ;;  %v916_v44 = vrot.slane %v915_v17, 4  ;;  %v3883_v45 = vpop.f32.mrf.mxu0  ;;  %v923_v58 = vld [vmem:[#allocation2 + $0x1e] sm:$0x7] }
 0x142   : > { %869 = vst [vmem:[#allocation2 + $0x30] sm:$0xff] %v856_v27  ;;  %v822_v33 = vadd.f32 %v3882_v28, %v692_v25  ;;  %v936_v11 = vld [vmem:[#allocation2 + $0x21] sm:$0x7]  ;;  %v949_v18 = vld [vmem:[#allocation2 + $0x24] sm:$0x7] }
 0x143   : > { %v893_v48 = vmax.f32 %v891_v30, %v892_v10  ;;  %v904_v32 = vmax.f32 %v902_v63, %v903_v37  ;;  %v917_v52 = vmax.f32 %v915_v17, %v916_v44  ;;  %v3884_v53 = vpop.f32.mrf.mxu0  ;;  %v712_v37 = vadd.f32 %v3823_v16, %v582_v3 }
 0x144   : > { %v857_v36 = vmax.f32 %v822_v33, 0.0  ;;  %v3885_v56 = vadd.f32 %v3884_v53, %v3883_v45 }
 0x145   : > { %v894_v46 = vrot.slane %v893_v48, 1  ;;  %v905_v14 = vrot.slane %v904_v32, 2  ;;  %v918_v59 = vrot.slane %v917_v52, 2  ;;  %v924_v60 = vld [vmem:[#allocation2 + $0x28] sm:$0x7]  ;;  %v3886_v13 = vpop.f32.mrf.mxu0 }
 0x146   : > { %v937_v61 = vld [vmem:[#allocation2 + $0x2b] sm:$0x7]  ;;  %870 = vst [vmem:[#allocation2 + $0x38] sm:$0xff] %v857_v36  ;;  %v827_v26 = vadd.f32 %v3885_v56, %v697_v40  ;;  %v925_v39 = vmax.f32 %v923_v58, %v924_v60 }
 0x147   : > { %v895_v62 = vmax.f32 %v893_v48, %v894_v46  ;;  %v906_v0 = vmax.f32 %v904_v32, %v905_v14  ;;  %v919_v49 = vmax.f32 %v917_v52, %v918_v59  ;;  %v3887_v38 = vpop.f32.mrf.mxu0  ;;  %v938_v1 = vmax.f32 %v936_v11, %v937_v61 }
 0x148   : > { %v858_v2 = vmax.f32 %v827_v26, 0.0  ;;  %v3888_v50 = vadd.f32 %v3887_v38, %v3886_v13 }
 0x149   : > { %896 = vst [vmem:[#allocation3 + $0x10] sm:$0x1] %v895_v62  ;;  %v907_v41 = vrot.slane %v906_v0, 1  ;;  %v920_v42 = vrot.slane %v919_v49, 1  ;;  %v926_v15 = vld [vmem:[#allocation2 + $0x32] sm:$0x7]  ;;  %v3889_v5 = vpop.f32.mrf.mxu0 }
 0x14a   : > { %v939_v19 = vld [vmem:[#allocation2 + $0x35] sm:$0x7]  ;;  %v927_v21 = vmax.f32 %v925_v39, %v926_v15  ;;  %v950_v23 = vld [vmem:[#allocation2 + $0x2e] sm:$0x7]  ;;  %871 = vst [vmem:[#allocation2 + $0x40] sm:$0xff] %v858_v2  ;;  %v832_v24 = vadd.f32 %v3888_v50, %v702_v31 }
 0x14b   : > { %v940_v22 = vmax.f32 %v938_v1, %v939_v19  ;;  %v908_v6 = vmax.f32 %v906_v0, %v907_v41  ;;  %v921_v51 = vmax.f32 %v919_v49, %v920_v42  ;;  %v951_v7 = vmax.f32 %v949_v18, %v950_v23  ;;  %v3890_v20 = vpop.f32.mrf.mxu0 }
 0x14c   : > { %v928_v57 = vsel %vm888_vm0, %v927_v21, -inf  ;;  %v859_v9 = vmax.f32 %v832_v24, 0.0  ;;  %v3891_v30 = vadd.f32 %v3890_v20, %v3889_v5 }
 0x14d   : > { %v941_v25 = vsel %vm888_vm0, %v940_v22, -inf  ;;  %909 = vst [vmem:[#allocation3 + $0x11] sm:$0x1] %v908_v6  ;;  %922 = vst [vmem:[#allocation3 + $0x12] sm:$0x1] %v921_v51  ;;  %v929_v63 = vrot.slane %v928_v57, 4  ;;  %v3892_v28 = vpop.f32.mrf.mxu0 }
 0x14e   : > { %v942_v17 = vrot.slane %v941_v25, 4  ;;  %v952_v27 = vld [vmem:[#allocation2 + $0x38] sm:$0x7]  ;;  %872 = vst [vmem:[#allocation2 + $0x48] sm:$0xff] %v859_v9  ;;  %v837_v10 = vadd.f32 %v3891_v30, %v707_v55  ;;  %v962_v13 = vld [vmem:[#allocation2 + $0x3c] sm:$0x7] }
 0x14f   : > { %v953_v8 = vmax.f32 %v951_v7, %v952_v27  ;;  %v930_v44 = vmax.f32 %v928_v57, %v929_v63  ;;  %v3893_v40 = vpop.f32.mrf.mxu0 }
 0x150   : > { %v943_v45 = vmax.f32 %v941_v25, %v942_v17  ;;  %v860_v33 = vmax.f32 %v837_v10, 0.0  ;;  %v3894_v47 = vadd.f32 %v3893_v40, %v3892_v28  ;;  %v1008_v48 = vld [vmem:[#allocation3 + $0xe] sm:$0x7] }
 0x151   : > { %v954_v29 = vsel %vm888_vm0, %v953_v8, -inf  ;;  %v1068_v32 = vld [vmem:[#allocation3 + $0xe] sm:$0x7]  ;;  %v931_v52 = vrot.slane %v930_v44, 2  ;;  %v3895_v35 = vpop.f32.mrf.mxu0  ;;  %v1010_v36 = vrot.slane %v1008_v48, 2 }
 0x152   : > { %v944_v53 = vrot.slane %v943_v45, 2  ;;  %v955_v54 = vrot.slane %v954_v29, 4  ;;  %873 = vst [vmem:[#allocation2 + $0x50] sm:$0xff] %v860_v33  ;;  %v842_v56 = vadd.f32 %v3894_v47, %v712_v37  ;;  %v1070_v12 = vrot.slane %v1068_v32, 5  ;;  %v1131_v43 = vld [vmem:[#allocation3 + $0xe] sm:$0x7] }
 0x153   : > { %v932_v46 = vmax.f32 %v930_v44, %v931_v52  ;;  %v3896_v60 = vpop.f32.mrf.mxu0  ;;  %1012 = vst [vmem:[#allocation4 + $0x68] ss:$-12 sps:$4 sm:$0xc1] %v1010_v36   ;;  %1132 = vst [vmem:[#allocation4 + $0x70] sm:$0x7] %v1131_v43  ;;  %v1423_v33 = vld [vmem:[%s6902_s3 + $0x178] sm:$0xff] }
 0x154   : > { %v945_v14 = vmax.f32 %v943_v45, %v944_v53  ;;  %v956_v59 = vmax.f32 %v954_v29, %v955_v54  ;;  %v861_v61 = vmax.f32 %v842_v56, 0.0  ;;  %v1021_v26 = vld [vmem:[#allocation3 + $0xf] sm:$0x7]  ;;  %1072 = vst [vmem:[#allocation4 + $0x48] sm:$0x38] %v1070_v12  ;;  %v1437_v36 = vld [vmem:[%s6902_s3 + $0x1e8] sm:$0xff] }
 0x155   : > { %v1047_v31 = vld [vmem:[#allocation3 + $0x11] sm:$0x7]  ;;  %v933_v62 = vrot.slane %v932_v46, 1  ;;  %v963_v58 = vld [vmem:[#allocation2 + $0x46] sm:$0x7]  ;;  %v1023_v11 = vrot.slane %v1021_v26, 2 }
 0x156   : > { %v946_v0 = vrot.slane %v945_v14, 1  ;;  %v957_v49 = vrot.slane %v956_v59, 2  ;;  %v975_v38 = vld [vmem:[#allocation2 + $0x3f] sm:$0x7]  ;;  %v976_v39 = vld [vmem:[#allocation2 + $0x49] sm:$0x7]  ;;  %v964_v3 = vmax.f32 %v962_v13, %v963_v58 }
 0x157   : > { %874 = vst [vmem:[#allocation2 + $0x58] sm:$0xff] %v861_v61  ;;  %v1049_v1 = vrot.slane %v1047_v31, 2  ;;  %v934_v2 = vmax.f32 %v932_v46, %v933_v62  ;;  %v989_v4 = vld [vmem:[#allocation2 + $0x4c] sm:$0x7]  ;;  %v1060_v41 = vld [vmem:[#allocation3 + $0x12] sm:$0x7]  ;;  %v977_v19 = vmax.f32 %v975_v38, %v976_v39 }
 0x158   : > { %v947_v50 = vmax.f32 %v945_v14, %v946_v0  ;;  %v958_v55 = vmax.f32 %v956_v59, %v957_v49  ;;  %1025 = vst [vmem:[#allocation4 + $0xe8] ss:$-220 sps:$4 sm:$0xc1] %v1023_v11   ;;  %v1120_v42 = vld [vmem:[#allocation3 + $0x12] sm:$0x7]  ;;  %v1062_v5 = vrot.slane %v1060_v41, 2 }
 0x159   : > { %v1034_v15 = vld [vmem:[#allocation3 + $0x10] sm:$0x7]  ;;  %1051 = vst [vmem:[#allocation4 + $0x180] ss:$-348 sps:$4 sm:$0xc1] %v1049_v1   ;;  %v1122_v16 = vrot.slane %v1120_v42, 5 }
 0x15a   : > { %v1094_v18 = vld [vmem:[#allocation3 + $0x10] sm:$0x7]  ;;  %935 = vst [vmem:[#allocation3 + $0x17] sm:$0x1] %v934_v2  ;;  %948 = vst [vmem:[#allocation3 + $0x18] sm:$0x1] %v947_v50 }
 0x15b   : > { %v959_v21 = vrot.slane %v958_v55, 1  ;;  %v965_v22 = vld [vmem:[#allocation2 + $0x50] sm:$0x7]  ;;  %v978_v23 = vld [vmem:[#allocation2 + $0x53] sm:$0x7]  ;;  %v1036_v24 = vrot.slane %v1034_v15, 2 }
 0x15c   : > { %v988_v6 = vld [vmem:[#allocation2 + $0x42] sm:$0x7]  ;;  %v966_v51 = vmax.f32 %v964_v3, %v965_v22  ;;  %v979_v7 = vmax.f32 %v977_v19, %v978_v23  ;;  %1064 = vst [vmem:[#allocation4 + $0x88] ss:$196 sps:$4 sm:$0xc1] %v1062_v5   ;;  %v1096_v20 = vrot.slane %v1094_v18, 5 }
 0x15d   : > { %1124 = vst [vmem:[#allocation4 + $0x160] sm:$0x38] %v1122_v16  ;;  %v1107_v57 = vld [vmem:[#allocation3 + $0x11] sm:$0x7]  ;;  %v960_v25 = vmax.f32 %v958_v55, %v959_v21  ;;  %v990_v63 = vmax.f32 %v988_v6, %v989_v4  ;;  %v1438_v47 = vld [vmem:[%s6902_s3 + $0x1f0] sm:$0xff]  ;;  %v1421_v59 = vld [vmem:[%s6902_s3 + $0x168] sm:$0xff] }
 0x15e   : > { %1038 = vst [vmem:[#allocation4 + $0x158] ss:$-164 sps:$4 sm:$0xc1] %v1036_v24   ;;  %v1109_v9 = vrot.slane %v1107_v57, 5  ;;  %v1170_v30 = vld [vmem:[#allocation3 + $0x11] sm:$0x7] }
 0x15f   : > { %v1081_v34 = vld [vmem:[#allocation3 + $0xf] sm:$0x7]  ;;  %v967_v17 = vsel %vm888_vm0, %v966_v51, -inf  ;;  %v980_v27 = vsel %vm888_vm0, %v979_v7, -inf  ;;  %1098 = vst [vmem:[#allocation4 + $0xf0] sm:$0x38] %v1096_v20 }
 0x160   : > { %1171 = vst [vmem:[#allocation4 + $0x10] sm:$0x7] %v1170_v30  ;;  %v1083_v28 = vrot.slane %v1081_v34, 5  ;;  %v1144_v8 = vld [vmem:[#allocation3 + $0xf] sm:$0x7]  ;;  %v968_v10 = vrot.slane %v967_v17, 4 }
 0x161   : > { %961 = vst [vmem:[#allocation3 + $0x19] sm:$0x1] %v960_v25  ;;  %v981_v37 = vrot.slane %v980_v27, 4  ;;  %v991_v44 = vld [vmem:[#allocation2 + $0x56] sm:$0x7]  ;;  %v1327_v29 = vld [vmem:[#allocation4 + $0x8] sm:$0xff] }
 0x162   : > { %1111 = vst [vmem:[#allocation4 + $0xc0] sm:$0x38] %v1109_v9  ;;  %1145 = vst [vmem:[#allocation4 + $0x120] sm:$0x7] %v1144_v8  ;;  %v1157_v45 = vld [vmem:[#allocation3 + $0x10] sm:$0x7]  ;;  %v992_v40 = vmax.f32 %v990_v63, %v991_v44  ;;  %v969_v48 = vmax.f32 %v967_v17, %v968_v10  ;;  %1847 = vmatprep.mubr.f32.mxu1 %v1327_v29 }
 0x163   : > { %1085 = vst [vmem:[#allocation4 + $0x168] sm:$0x38] %v1083_v28  ;;  %1158 = vst [vmem:[#allocation4 + $0x138] sm:$0x7] %v1157_v45  ;;  %v982_v32 = vmax.f32 %v980_v27, %v981_v37  ;;  %v1326_v52 = vld [vmem:[#allocation4 + $0x58] sm:$0xff]  ;;  %v1422_v54 = vld [vmem:[%s6902_s3 + $0x170] sm:$0xff] }
 0x164   : > { %v1352_v53 = vld [vmem:[#allocation4 + $0xe8] sm:$0x1]  ;;  %v993_v35 = vsel %vm888_vm0, %v992_v40, -inf  ;;  %1848 = vmatmul.mubr.f32.vlgmr.msra.gmra.mxu1 %v1326_v52  ;;  %v1073_v56 = vld [vmem:[#allocation3 + $0x15] sm:$0x7]  ;;  %v970_v43 = vrot.slane %v969_v48, 2 }
 0x165   : > { %v1086_v12 = vld [vmem:[#allocation3 + $0x16] sm:$0x7]  ;;  %v983_v46 = vrot.slane %v982_v32, 2  ;;  %v994_v14 = vrot.slane %v993_v35, 4  ;;  %3937 = vmatpush3.msra.mxu1 %v1423_v33  ;;  %1852 = vmatprep.mubr.f32.mxu1 %v1352_v53  ;;  %v1075_v13 = vrot.slane %v1073_v56, 2  ;;  %v1434_v51 = vld [vmem:[%s6902_s3 + $0x1d0] sm:$0xff] }
 0x166   : > { %v1436_v60 = vld [vmem:[%s6902_s3 + $0x1e0] sm:$0xff]  ;;  %3938 = vmatprep.subr.mxu1 %v1438_v47  ;;  %v1351_v61 = vld [vmem:[#allocation4 + $0x68] sm:$0x1]  ;;  %v1088_v62 = vrot.slane %v1086_v12, 2  ;;  %v971_v0 = vmax.f32 %v969_v48, %v970_v43  ;;  %v1435_v11 = vld [vmem:[%s6902_s3 + $0x1d8] sm:$0xff] }
 0x167   : > { %v1329_v26 = vld [vmem:[#allocation4 + $0x20] sm:$0xff]  ;;  %v984_v49 = vmax.f32 %v982_v32, %v983_v46  ;;  %v995_v58 = vmax.f32 %v993_v35, %v994_v14  ;;  %3939 = vmatpush3.msra.mxu1 %v1422_v54  ;;  %1077 = vst [vmem:[#allocation4 + $0x150] ss:$-260 sps:$4 sm:$0xc1] %v1075_v13   ;;  %v1133_v39 = vld [vmem:[#allocation3 + $0x15] sm:$0x7] }
 0x168   : > { %v1420_v31 = vld [vmem:[%s6902_s3 + $0x160] sm:$0xff]  ;;  %v1196_v1 = vld [vmem:[#allocation3 + $0x15] sm:$0x7]  ;;  %3940 = vmatprep.subr.mxu1 %v1437_v36  ;;  %1853 = vmatmul.mubr.f32.gmra.mxu1 %v1351_v61  ;;  %1090 = vst [vmem:[#allocation4 + $0x80] ss:$236 sps:$4 sm:$0xc1] %v1088_v62  }
 0x169   : > { %v1146_v38 = vld [vmem:[#allocation3 + $0x16] sm:$0x7]  ;;  %v1125_v50 = vld [vmem:[#allocation3 + $0x19] sm:$0x7]  ;;  %1197 = vst [vmem:[#allocation4 + $0x78] sm:$0x7] %v1196_v1  ;;  %3941 = vmatpush3.msra.mxu1 %v1421_v59  ;;  %1922 = vmatprep.mubr.f32.mxu1 %v1329_v26 }
 0x16a   : > { %v1419_v2 = vld [vmem:[%s6902_s3 + $0x158] sm:$0xff]  ;;  %v1112_v3 = vld [vmem:[#allocation3 + $0x18] sm:$0x7]  ;;  %v972_v4 = vrot.slane %v971_v0, 1  ;;  %v985_v41 = vrot.slane %v984_v49, 1  ;;  %v996_v42 = vrot.slane %v995_v58, 2  ;;  %3942 = vmatprep.subr.mxu1 %v1436_v60 }
 0x16b   : > { %v1099_v55 = vld [vmem:[#allocation3 + $0x17] sm:$0x7]  ;;  %v1127_v15 = vrot.slane %v1125_v50, 2  ;;  %v1114_v16 = vrot.slane %v1112_v3, 2  ;;  %v1148_v21 = vrot.slane %v1146_v38, 5  ;;  %3943 = vmatpush3.msra.mxu1 %v1420_v31  ;;  %v1418_v25 = vld [vmem:[%s6902_s3 + $0x150] sm:$0xff] }
 0x16c   : > { %v1172_v19 = vld [vmem:[#allocation3 + $0x18] sm:$0x7]  ;;  %v1101_v5 = vrot.slane %v1099_v55, 2  ;;  %v973_v23 = vmax.f32 %v971_v0, %v972_v4  ;;  %v986_v24 = vmax.f32 %v984_v49, %v985_v41  ;;  %v997_v6 = vmax.f32 %v995_v58, %v996_v42  ;;  %3944 = vmatprep.subr.mxu1 %v1435_v11  ;;  %v1433_v34 = vld [vmem:[%s6902_s3 + $0x1c8] sm:$0xff]  ;;  %v1519_v27 = vld [vmem:[%s6902_s3 + $0x478] sm:$0xff] }
 0x16d   : > { %v1174_v18 = vrot.slane %v1172_v19, 5  ;;  %v1159_v22 = vld [vmem:[#allocation3 + $0x17] sm:$0x7]  ;;  %1129 = vst [vmem:[#allocation4 + $0x90] ss:$212 sps:$4 sm:$0xc1] %v1127_v15   ;;  %3945 = vmatpush3.msra.mxu1 %v1419_v2 }
 0x16e   : > { %v1161_v7 = vrot.slane %v1159_v22, 5  ;;  %v1222_v20 = vld [vmem:[#allocation3 + $0x17] sm:$0x7]  ;;  %1103 = vst [vmem:[#allocation4 + $0x130] ss:$-60 sps:$4 sm:$0xc1] %v1101_v5   ;;  %3946 = vmatprep.subr.mxu1 %v1434_v51 }
 0x16f   : > { %v1209_v57 = vld [vmem:[#allocation3 + $0x16] sm:$0x7]  ;;  %1116 = vst [vmem:[#allocation4 + $0x98] ss:$44 sps:$4 sm:$0xc1] %v1114_v16   ;;  %v1135_v9 = vrot.slane %v1133_v39, 5  ;;  %3947 = vmatpush3.msra.mxu1 %v1418_v25 }
 0x170   : > { %1176 = vst [vmem:[#allocation4 + $0x10] sm:$0x38] %v1174_v18  ;;  %1150 = vst [vmem:[#allocation4 + $0x120] sm:$0x38] %v1148_v21  ;;  %v998_v30 = vrot.slane %v997_v6, 1  ;;  %v1331_v63 = vld [vmem:[#allocation4 + $0x48] sm:$0xff]  ;;  %3948 = vmatprep.subr.mxu1 %v1433_v34 }
 0x171   : > { %1223 = vst [vmem:[#allocation4 + $0xc8] sm:$0x7] %v1222_v20  ;;  %1210 = vst [vmem:[#allocation4 + $0x28] sm:$0x7] %v1209_v57  ;;  %v1417_v17 = vld [vmem:[%s6902_s3 + $0x148] sm:$0xff]  ;;  %1997 = vmatprep.mubr.f32.mxu0 %v1331_v63  ;;  %v1432_v10 = vld [vmem:[%s6902_s3 + $0x1c0] sm:$0xff] }
 0x172   : > { %974 = vst [vmem:[#allocation3 + $0x1e] sm:$0x1] %v973_v23  ;;  %987 = vst [vmem:[#allocation3 + $0x1f] sm:$0x1] %v986_v24  ;;  %v999_v28 = vmax.f32 %v997_v6, %v998_v30  ;;  %v1330_v8 = vld [vmem:[#allocation4 + $0x148] sm:$0xff]  ;;  %v1534_v37 = vld [vmem:[%s6902_s3 + $0x4f0] sm:$0xff]  ;;  %3949 = vmatpush3.msra.mxu1 %v1417_v17 }
 0x173   : > { %1163 = vst [vmem:[#allocation4 + $0x138] sm:$0x38] %v1161_v7  ;;  %1137 = vst [vmem:[#allocation4 + $0x70] sm:$0x38] %v1135_v9  ;;  %1998 = vmatmul.mubr.f32.vlgmr.msra.gmra.mxu0 %v1330_v8  ;;  %v1416_v44 = vld [vmem:[%s6902_s3 + $0x140] sm:$0xff]  ;;  %v1518_v40 = vld [vmem:[%s6902_s3 + $0x470] sm:$0xff]  ;;  %3950 = vmatprep.subr.mxu1 %v1432_v10 }
 0x174   : > { %1000 = vst [vmem:[#allocation3 + $0x20] sm:$0x1] %v999_v28  ;;  %4051 = vmatpush3.msra.mxu0 %v1519_v27  ;;  %v1356_v45 = vld [vmem:[#allocation4 + $0x150] sm:$0x1]  ;;  %v1431_v29 = vld [vmem:[%s6902_s3 + $0x1b8] sm:$0xff]  ;;  %v1533_v33 = vld [vmem:[%s6902_s3 + $0x4e8] sm:$0xff]  ;;  %3951 = vmatpush3.msra.mxu1 %v1416_v44 }
 0x175   : > { %2002 = vmatprep.mubr.f32.mxu0 %v1356_v45  ;;  %v1415_v47 = vld [vmem:[%s6902_s3 + $0x138] sm:$0xff]  ;;  %v1517_v48 = vld [vmem:[%s6902_s3 + $0x468] sm:$0xff]  ;;  %4052 = vmatprep.subr.mxu0 %v1534_v37  ;;  %v1430_v32 = vld [vmem:[%s6902_s3 + $0x1b0] sm:$0xff] }
 0x176   : > { %v1532_v52 = vld [vmem:[%s6902_s3 + $0x4e0] sm:$0xff]  ;;  %v1414_v53 = vld [vmem:[%s6902_s3 + $0x130] sm:$0xff]  ;;  %4053 = vmatpush3.msra.mxu0 %v1518_v40  ;;  %3952 = vmatprep.subr.mxu1 %v1431_v29  ;;  %v1355_v54 = vld [vmem:[#allocation4 + $0x88] sm:$0x1] }
 0x177   : > { %v1516_v35 = vld [vmem:[%s6902_s3 + $0x460] sm:$0xff]  ;;  %v1429_v36 = vld [vmem:[%s6902_s3 + $0x1a8] sm:$0xff]  ;;  %4054 = vmatprep.subr.mxu0 %v1533_v33  ;;  %3953 = vmatpush3.msra.mxu1 %v1415_v47  ;;  %v1531_v13 = vld [vmem:[%s6902_s3 + $0x4d8] sm:$0xff] }
 0x178   : > { %2003 = vmatmul.mubr.f32.gmra.mxu0 %v1355_v54  ;;  %3954 = vmatprep.subr.mxu1 %v1430_v32  ;;  %v1335_v60 = vld [vmem:[#allocation4 + $0x160] sm:$0xff]  ;;  %v1413_v62 = vld [vmem:[%s6902_s3 + $0x128] sm:$0xff]  ;;  %v1515_v0 = vld [vmem:[%s6902_s3 + $0x458] sm:$0xff] }
 0x179   : > { %v1151_v56 = vld [vmem:[#allocation3 + $0x1d] sm:$0x7]  ;;  %4055 = vmatpush3.msra.mxu0 %v1517_v48  ;;  %2147 = vmatprep.mubr.f32.mxu0 %v1335_v60  ;;  %v1530_v39 = vld [vmem:[%s6902_s3 + $0x4d0] sm:$0xff]  ;;  %v1427_v4 = vld [vmem:[%s6902_s3 + $0x198] sm:$0xff] }
 0x17a   : > { %v1138_v12 = vld [vmem:[#allocation3 + $0x1c] sm:$0x7]  ;;  %v1153_v43 = vrot.slane %v1151_v56, 2  ;;  %4056 = vmatprep.subr.mxu0 %v1532_v52  ;;  %3955 = vmatpush3.msra.mxu1 %v1414_v53  ;;  %v1514_v3 = vld [vmem:[%s6902_s3 + $0x450] sm:$0xff]  ;;  %v1529_v41 = vld [vmem:[%s6902_s3 + $0x4c8] sm:$0xff] }
 0x17b   : > { %v1140_v46 = vrot.slane %v1138_v12, 2  ;;  %v1198_v14 = vld [vmem:[#allocation3 + $0x1c] sm:$0x7]  ;;  %v1177_v58 = vld [vmem:[#allocation3 + $0x1f] sm:$0x7]  ;;  %4057 = vmatpush3.msra.mxu0 %v1516_v35  ;;  %3956 = vmatprep.subr.mxu1 %v1429_v36  ;;  %v1411_v42 = vld [vmem:[%s6902_s3 + $0x118] sm:$0xff] }
 0x17c   : > { %v1211_v59 = vld [vmem:[#allocation3 + $0x1d] sm:$0x7]  ;;  %v1200_v61 = vrot.slane %v1198_v14, 5  ;;  %1155 = vst [vmem:[#allocation4 + $0x178] ss:$-84 sps:$4 sm:$0xc1] %v1153_v43   ;;  %4058 = vmatprep.subr.mxu0 %v1531_v13  ;;  %3957 = vmatpush3.msra.mxu1 %v1413_v62 }
 0x17d   : > { %v1213_v26 = vrot.slane %v1211_v59, 5  ;;  %v1274_v31 = vld [vmem:[#allocation3 + $0x1d] sm:$0x7]  ;;  %1142 = vst [vmem:[#allocation4 + $0x118] ss:$-164 sps:$4 sm:$0xc1] %v1140_v46   ;;  %4059 = vmatpush3.msra.mxu0 %v1515_v0 }
 0x17e   : > { %v1428_v49 = vld [vmem:[%s6902_s3 + $0x1a0] sm:$0xff]  ;;  %1275 = vst [vmem:[#allocation4 + $0xe0] sm:$0x7] %v1274_v31  ;;  %1202 = vst [vmem:[#allocation4 + $0x78] sm:$0x38] %v1200_v61  ;;  %v1179_v2 = vrot.slane %v1177_v58, 2  ;;  %4060 = vmatprep.subr.mxu0 %v1530_v39 }
 0x17f   : > { %v1164_v11 = vld [vmem:[#allocation3 + $0x1e] sm:$0x7]  ;;  %1215 = vst [vmem:[#allocation4 + $0x28] sm:$0x38] %v1213_v26  ;;  %3958 = vmatprep.subr.mxu1 %v1428_v49  ;;  %v1426_v19 = vld [vmem:[%s6902_s3 + $0x190] sm:$0xff]  ;;  %4061 = vmatpush3.msra.mxu0 %v1514_v3  ;;  %v1527_v22 = vld [vmem:[%s6902_s3 + $0x4b8] sm:$0xff] }
 0x180   : > { %v1224_v38 = vld [vmem:[#allocation3 + $0x1e] sm:$0x7]  ;;  %v1166_v50 = vrot.slane %v1164_v11, 2  ;;  %1181 = vst [vmem:[#allocation4 + $0x108] ss:$-244 sps:$4 sm:$0xc1] %v1179_v2   ;;  %4062 = vmatprep.subr.mxu0 %v1529_v41 }
 0x181   : > { %v1412_v1 = vld [vmem:[%s6902_s3 + $0x120] sm:$0xff]  ;;  %v1226_v55 = vrot.slane %v1224_v38, 5  ;;  %v1513_v15 = vld [vmem:[%s6902_s3 + $0x448] sm:$0xff]  ;;  %v1410_v16 = vld [vmem:[%s6902_s3 + $0x110] sm:$0xff] }
 0x182   : > { %1168 = vst [vmem:[#allocation4 + $0x140] ss:$-4 sps:$4 sm:$0xc1] %v1166_v50   ;;  %3959 = vmatpush3.msra.mxu1 %v1412_v1  ;;  %v1528_v5 = vld [vmem:[%s6902_s3 + $0x4c0] sm:$0xff]  ;;  %v1425_v21 = vld [vmem:[%s6902_s3 + $0x188] sm:$0xff]  ;;  %4063 = vmatpush3.msra.mxu0 %v1513_v15  ;;  %v1511_v24 = vld [vmem:[%s6902_s3 + $0x438] sm:$0xff] }
 0x183   : > { %1228 = vst [vmem:[#allocation4 + $0xc8] sm:$0x38] %v1226_v55  ;;  %3960 = vmatprep.subr.mxu1 %v1427_v4  ;;  %v1512_v18 = vld [vmem:[%s6902_s3 + $0x440] sm:$0xff]  ;;  %v1409_v23 = vld [vmem:[%s6902_s3 + $0x108] sm:$0xff]  ;;  %4064 = vmatprep.subr.mxu0 %v1528_v5  ;;  %v1526_v51 = vld [vmem:[%s6902_s3 + $0x4b0] sm:$0xff] }
 0x184   : > { %3961 = vmatpush3.msra.mxu1 %v1411_v42  ;;  %v1424_v6 = vld [vmem:[%s6902_s3 + $0x180] sm:$0xff]  ;;  %4065 = vmatpush3.msra.mxu0 %v1512_v18  ;;  %v1510_v20 = vld [vmem:[%s6902_s3 + $0x430] sm:$0xff]  ;;  %v1503_v57 = vld [vmem:[%s6902_s3 + $0x3f8] sm:$0xff] }
 0x185   : > { %3962 = vmatprep.subr.mxu1 %v1426_v19  ;;  %v1408_v7 = vld [vmem:[%s6902_s3 + $0x100] sm:$0xff]  ;;  %4066 = vmatprep.subr.mxu0 %v1527_v22  ;;  %v1525_v25 = vld [vmem:[%s6902_s3 + $0x4a8] sm:$0xff]  ;;  %v1487_v9 = vld [vmem:[%s6902_s3 + $0x378] sm:$0xff] }
 0x186   : > { %3963 = vmatpush3.msra.mxu1 %v1410_v16  ;;  %4067 = vmatpush3.msra.mxu0 %v1511_v24  ;;  %v1183_v30 = vld [vmem:[#allocation3 + $0x12] sm:$0x7]  ;;  %v1328_v34 = vld [vmem:[#allocation4 + $0xb0] sm:$0xff]  ;;  %v1185_v63 = vld [vmem:[#allocation3 + $0x19] sm:$0x7] }
 0x187   : > { %3964 = vmatprep.subr.mxu1 %v1425_v21  ;;  %4068 = vmatprep.subr.mxu0 %v1526_v51  ;;  %1184 = vst [vmem:[#allocation4 + $0x50] sm:$0x7] %v1183_v30  ;;  %v1190_v17 = vld [vmem:[#allocation3 + $0x20] sm:$0x7]  ;;  %v1502_v28 = vld [vmem:[%s6902_s3 + $0x3f0] sm:$0xff]  ;;  %v1187_v8 = vrot.slane %v1185_v63, 5 }
 0x188   : > { %3965 = vmatpush3.msra.mxu1 %v1409_v23  ;;  %4069 = vmatpush3.msra.mxu0 %v1510_v20  ;;  %v1509_v27 = vld [vmem:[%s6902_s3 + $0x428] sm:$0xff]  ;;  %v1192_v10 = vrot.slane %v1190_v17, 2  ;;  %v1354_v37 = vld [vmem:[#allocation4 + $0x180] sm:$0x1]  ;;  %v1486_v45 = vld [vmem:[%s6902_s3 + $0x370] sm:$0xff] }
 0x189   : > { %3966 = vmatprep.subr.mxu1 %v1424_v6  ;;  %4070 = vmatprep.subr.mxu0 %v1525_v25  ;;  %v1524_v44 = vld [vmem:[%s6902_s3 + $0x4a0] sm:$0xff]  ;;  %1189 = vst [vmem:[#allocation4 + $0x50] sm:$0x38] %v1187_v8  ;;  %v1501_v29 = vld [vmem:[%s6902_s3 + $0x3e8] sm:$0xff]  ;;  %v1523_v33 = vld [vmem:[%s6902_s3 + $0x498] sm:$0xff] }
 0x18a   : > { %3967 = vmatpush3.msra.mxu1 %v1408_v7  ;;  %v1508_v40 = vld [vmem:[%s6902_s3 + $0x420] sm:$0xff]  ;;  %1194 = vst [vmem:[#allocation4 + $0xb8] ss:$-100 sps:$4 sm:$0xc1] %v1192_v10   ;;  %4071 = vmatpush3.msra.mxu0 %v1509_v27  ;;  %v1353_v48 = vld [vmem:[#allocation4 + $0x158] sm:$0x1] }
 0x18b   : > { %1923 = vmatmul.mubr.f32.vlgmr.msra.gmra.mxu1 %v1328_v34  ;;  %4012 = vmatprep.subr.mxu1 %v1503_v57  ;;  %v1248_v47 = vld [vmem:[#allocation3 + $0x19] sm:$0x7]  ;;  %v1485_v32 = vld [vmem:[%s6902_s3 + $0x368] sm:$0xff]  ;;  %v1507_v53 = vld [vmem:[%s6902_s3 + $0x418] sm:$0xff] }
 0x18c   : > { %1927 = vmatprep.mubr.f32.mxu1 %v1354_v37  ;;  %4013 = vmatpush3.msra.mxu1 %v1487_v9  ;;  %1249 = vst [vmem:[#allocation4 + $0x188] sm:$0x7] %v1248_v47  ;;  %v1250_v52 = vld [vmem:[#allocation3 + $0x20] sm:$0x7]  ;;  %v1500_v54 = vld [vmem:[%s6902_s3 + $0x3e0] sm:$0xff]  ;;  %v1333_v36 = vld [vmem:[#allocation4 + $0xf0] sm:$0xff] }
 0x18d   : > { %4014 = vmatprep.subr.mxu1 %v1502_v28  ;;  %4072 = vmatprep.subr.mxu0 %v1524_v44  ;;  %v1252_v35 = vrot.slane %v1250_v52, 5  ;;  %v1522_v56 = vld [vmem:[%s6902_s3 + $0x490] sm:$0xff]  ;;  %v1484_v12 = vld [vmem:[%s6902_s3 + $0x360] sm:$0xff]  ;;  %v1499_v46 = vld [vmem:[%s6902_s3 + $0x3d8] sm:$0xff] }
 0x18e   : > { %4015 = vmatpush3.msra.mxu1 %v1486_v45  ;;  %4073 = vmatpush3.msra.mxu0 %v1508_v40  ;;  %v1506_v43 = vld [vmem:[%s6902_s3 + $0x410] sm:$0xff]  ;;  %v1521_v14 = vld [vmem:[%s6902_s3 + $0x488] sm:$0xff]  ;;  %v1483_v59 = vld [vmem:[%s6902_s3 + $0x358] sm:$0xff] }
 0x18f   : > { %1928 = vmatmul.mubr.f32.gmra.mxu1 %v1353_v48  ;;  %4016 = vmatprep.subr.mxu1 %v1501_v29  ;;  %1254 = vst [vmem:[#allocation4 + $0x188] sm:$0x38] %v1252_v35  ;;  %v1505_v60 = vld [vmem:[%s6902_s3 + $0x408] sm:$0xff]  ;;  %v1498_v13 = vld [vmem:[%s6902_s3 + $0x3d0] sm:$0xff]  ;;  %v1261_v61 = vld [vmem:[#allocation3 + $0x1c] sm:$0x7] }
 0x190   : > { %4074 = vmatprep.subr.mxu0 %v1523_v33  ;;  %4017 = vmatpush3.msra.mxu1 %v1485_v32  ;;  %v1520_v26 = vld [vmem:[%s6902_s3 + $0x480] sm:$0xff]  ;;  %v1482_v31 = vld [vmem:[%s6902_s3 + $0x350] sm:$0xff]  ;;  %1262 = vst [vmem:[#allocation4 + $0xd8] sm:$0x7] %v1261_v61  ;;  %v1497_v0 = vld [vmem:[%s6902_s3 + $0x3c8] sm:$0xff] }
 0x191   : > { %2072 = vmatprep.mubr.f32.mxu1 %v1333_v36  ;;  %4075 = vmatpush3.msra.mxu0 %v1507_v53  ;;  %v1504_v62 = vld [vmem:[%s6902_s3 + $0x400] sm:$0xff]  ;;  %v1599_v49 = vld [vmem:[%s6902_s3 + $0x6f8] sm:$0xff]  ;;  %v1313_v58 = vld [vmem:[#allocation3 + $0x20] sm:$0x7] }
 0x192   : > { %4018 = vmatprep.subr.mxu1 %v1500_v54  ;;  %4076 = vmatprep.subr.mxu0 %v1522_v56  ;;  %v1481_v11 = vld [vmem:[%s6902_s3 + $0x348] sm:$0xff]  ;;  %1314 = vst [vmem:[#allocation4 + $0x100] sm:$0x7] %v1313_v58  ;;  %v1334_v38 = vld [vmem:[#allocation4 + $0xc0] sm:$0xff]  ;;  %v1583_v39 = vld [vmem:[%s6902_s3 + $0x678] sm:$0xff] }
 0x193   : > { %4019 = vmatpush3.msra.mxu1 %v1484_v12  ;;  %4077 = vmatpush3.msra.mxu0 %v1506_v43  ;;  %v1496_v1 = vld [vmem:[%s6902_s3 + $0x3c0] sm:$0xff]  ;;  %v1360_v2 = vld [vmem:[#allocation4 + $0x90] sm:$0x1]  ;;  %v1495_v4 = vld [vmem:[%s6902_s3 + $0x3b8] sm:$0xff] }
 0x194   : > { %4020 = vmatprep.subr.mxu1 %v1499_v46  ;;  %4078 = vmatprep.subr.mxu0 %v1521_v14  ;;  %v1598_v50 = vld [vmem:[%s6902_s3 + $0x6f0] sm:$0xff]  ;;  %v1480_v55 = vld [vmem:[%s6902_s3 + $0x340] sm:$0xff]  ;;  %v1597_v41 = vld [vmem:[%s6902_s3 + $0x6e8] sm:$0xff] }
 0x195   : > { %4021 = vmatpush3.msra.mxu1 %v1483_v59  ;;  %4079 = vmatpush3.msra.mxu0 %v1505_v60  ;;  %v1582_v3 = vld [vmem:[%s6902_s3 + $0x670] sm:$0xff]  ;;  %v1479_v42 = vld [vmem:[%s6902_s3 + $0x338] sm:$0xff]  ;;  %v1581_v15 = vld [vmem:[%s6902_s3 + $0x668] sm:$0xff] }
 0x196   : > { %4022 = vmatprep.subr.mxu1 %v1498_v13  ;;  %4080 = vmatprep.subr.mxu0 %v1520_v26  ;;  %v1235_v19 = vld [vmem:[#allocation3 + $0x18] sm:$0x7]  ;;  %v1237_v5 = vld [vmem:[#allocation3 + $0x1f] sm:$0x7]  ;;  %v1359_v16 = vld [vmem:[#allocation4 + $0x98] sm:$0x1] }
 0x197   : > { %4023 = vmatpush3.msra.mxu1 %v1482_v31  ;;  %4081 = vmatpush3.msra.mxu0 %v1504_v62  ;;  %v1494_v18 = vld [vmem:[%s6902_s3 + $0x3b0] sm:$0xff]  ;;  %1236 = vst [vmem:[#allocation4 + $0x110] sm:$0x7] %v1235_v19  ;;  %v1239_v21 = vrot.slane %v1237_v5, 5  ;;  %v1596_v22 = vld [vmem:[%s6902_s3 + $0x6e0] sm:$0xff]  ;;  %v1493_v51 = vld [vmem:[%s6902_s3 + $0x3a8] sm:$0xff] }
 0x198   : > { %4024 = vmatprep.subr.mxu1 %v1497_v0  ;;  %2148 = vmatmul.mubr.f32.vlgmr.msra.gmra.mxu0 %v1334_v38  ;;  %v1478_v23 = vld [vmem:[%s6902_s3 + $0x330] sm:$0xff]  ;;  %v1580_v6 = vld [vmem:[%s6902_s3 + $0x660] sm:$0xff]  ;;  %v1595_v7 = vld [vmem:[%s6902_s3 + $0x6d8] sm:$0xff] }
 0x199   : > { %4126 = vmatprep.subr.mxu0 %v1599_v49  ;;  %4025 = vmatpush3.msra.mxu1 %v1481_v11  ;;  %v1339_v24 = vld [vmem:[#allocation4 + $0x10] sm:$0xff]  ;;  %1241 = vst [vmem:[#allocation4 + $0x110] sm:$0x38] %v1239_v21  ;;  %v1477_v20 = vld [vmem:[%s6902_s3 + $0x328] sm:$0xff]  ;;  %v1579_v25 = vld [vmem:[%s6902_s3 + $0x658] sm:$0xff] }
 0x19a   : > { %2152 = vmatprep.mubr.f32.mxu0 %v1360_v2  ;;  %4127 = vmatpush3.msra.mxu0 %v1583_v39  ;;  %v1300_v57 = vld [vmem:[#allocation3 + $0x1f] sm:$0x7]  ;;  %v1594_v30 = vld [vmem:[%s6902_s3 + $0x6d0] sm:$0xff]  ;;  %v1491_v17 = vld [vmem:[%s6902_s3 + $0x398] sm:$0xff] }
 0x19b   : > { %4026 = vmatprep.subr.mxu1 %v1496_v1  ;;  %4128 = vmatprep.subr.mxu0 %v1598_v50  ;;  %v1492_v9 = vld [vmem:[%s6902_s3 + $0x3a0] sm:$0xff]  ;;  %1301 = vst [vmem:[#allocation4 + $0x128] sm:$0x7] %v1300_v57  ;;  %v1578_v63 = vld [vmem:[%s6902_s3 + $0x650] sm:$0xff]  ;;  %v1593_v27 = vld [vmem:[%s6902_s3 + $0x6c8] sm:$0xff] }
 0x19c   : > { %4027 = vmatpush3.msra.mxu1 %v1480_v55  ;;  %4129 = vmatpush3.msra.mxu0 %v1582_v3  ;;  %v1476_v34 = vld [vmem:[%s6902_s3 + $0x320] sm:$0xff]  ;;  %v1475_v28 = vld [vmem:[%s6902_s3 + $0x318] sm:$0xff]  ;;  %v1577_v10 = vld [vmem:[%s6902_s3 + $0x648] sm:$0xff] }
 0x19d   : > { %4028 = vmatprep.subr.mxu1 %v1495_v4  ;;  %2153 = vmatmul.mubr.f32.gmra.mxu0 %v1359_v16  ;;  %v1287_v8 = vld [vmem:[#allocation3 + $0x1e] sm:$0x7]  ;;  %v1490_v37 = vld [vmem:[%s6902_s3 + $0x390] sm:$0xff]  ;;  %v1591_v33 = vld [vmem:[%s6902_s3 + $0x6b8] sm:$0xff] }
 0x19e   : > { %4130 = vmatprep.subr.mxu0 %v1597_v41  ;;  %4029 = vmatpush3.msra.mxu1 %v1479_v42  ;;  %1288 = vst [vmem:[#allocation4 + $0xf8] sm:$0x7] %v1287_v8  ;;  %v1592_v44 = vld [vmem:[%s6902_s3 + $0x6c0] sm:$0xff]  ;;  %v1474_v45 = vld [vmem:[%s6902_s3 + $0x310] sm:$0xff]  ;;  %v1489_v29 = vld [vmem:[%s6902_s3 + $0x388] sm:$0xff] }
 0x19f   : > { %4131 = vmatpush3.msra.mxu0 %v1581_v15  ;;  %2297 = vmatprep.mubr.f32.mxu0 %v1339_v24  ;;  %v1576_v40 = vld [vmem:[%s6902_s3 + $0x640] sm:$0xff]  ;;  %v1473_v47 = vld [vmem:[%s6902_s3 + $0x308] sm:$0xff]  ;;  %v1575_v48 = vld [vmem:[%s6902_s3 + $0x638] sm:$0xff] }
 0x1a0   : > { %4030 = vmatprep.subr.mxu1 %v1494_v18  ;;  %4132 = vmatprep.subr.mxu0 %v1596_v22  ;;  %v1488_v32 = vld [vmem:[%s6902_s3 + $0x380] sm:$0xff]  ;;  %v1590_v52 = vld [vmem:[%s6902_s3 + $0x6b0] sm:$0xff]  ;;  %v1567_v35 = vld [vmem:[%s6902_s3 + $0x5f8] sm:$0xff] }
 0x1a1   : > { %4031 = vmatpush3.msra.mxu1 %v1478_v23  ;;  %4133 = vmatpush3.msra.mxu0 %v1580_v6  ;;  %v1472_v53 = vld [vmem:[%s6902_s3 + $0x300] sm:$0xff]  ;;  %v1574_v54 = vld [vmem:[%s6902_s3 + $0x630] sm:$0xff]  ;;  %v1589_v36 = vld [vmem:[%s6902_s3 + $0x6a8] sm:$0xff] }
 0x1a2   : > { %4032 = vmatprep.subr.mxu1 %v1493_v51  ;;  %4134 = vmatprep.subr.mxu0 %v1595_v7  ;;  %v1332_v56 = vld [vmem:[#allocation4 + $0x168] sm:$0xff]  ;;  %v1551_v12 = vld [vmem:[%s6902_s3 + $0x578] sm:$0xff]  ;;  %v1566_v46 = vld [vmem:[%s6902_s3 + $0x5f0] sm:$0xff] }
 0x1a3   : > { %4033 = vmatpush3.msra.mxu1 %v1477_v20  ;;  %4135 = vmatpush3.msra.mxu0 %v1579_v25  ;;  %v1573_v43 = vld [vmem:[%s6902_s3 + $0x628] sm:$0xff]  ;;  %v1358_v14 = vld [vmem:[#allocation4 + $0x130] sm:$0x1]  ;;  %v1588_v59 = vld [vmem:[%s6902_s3 + $0x6a0] sm:$0xff] }
 0x1a4   : > { %4034 = vmatprep.subr.mxu1 %v1492_v9  ;;  %4136 = vmatprep.subr.mxu0 %v1594_v30  ;;  %v1550_v60 = vld [vmem:[%s6902_s3 + $0x570] sm:$0xff]  ;;  %v1572_v13 = vld [vmem:[%s6902_s3 + $0x620] sm:$0xff]  ;;  %v1565_v61 = vld [vmem:[%s6902_s3 + $0x5e8] sm:$0xff] }
 0x1a5   : > { %4035 = vmatpush3.msra.mxu1 %v1476_v34  ;;  %4137 = vmatpush3.msra.mxu0 %v1578_v63  ;;  %v1587_v26 = vld [vmem:[%s6902_s3 + $0x698] sm:$0xff]  ;;  %v1357_v31 = vld [vmem:[#allocation4 + $0x80] sm:$0x1]  ;;  %v1549_v62 = vld [vmem:[%s6902_s3 + $0x568] sm:$0xff] }
 0x1a6   : > { %4036 = vmatprep.subr.mxu1 %v1491_v17  ;;  %4138 = vmatprep.subr.mxu0 %v1593_v27  ;;  %v1571_v0 = vld [vmem:[%s6902_s3 + $0x618] sm:$0xff]  ;;  %v1564_v49 = vld [vmem:[%s6902_s3 + $0x5e0] sm:$0xff]  ;;  %v1586_v11 = vld [vmem:[%s6902_s3 + $0x690] sm:$0xff] }
 0x1a7   : > { %4037 = vmatpush3.msra.mxu1 %v1475_v28  ;;  %4139 = vmatpush3.msra.mxu0 %v1577_v10  ;;  %v1337_v58 = vld [vmem:[#allocation4 + $0x120] sm:$0xff]  ;;  %v1570_v39 = vld [vmem:[%s6902_s3 + $0x610] sm:$0xff]  ;;  %v1563_v1 = vld [vmem:[%s6902_s3 + $0x5d8] sm:$0xff] }
 0x1a8   : > { %4038 = vmatprep.subr.mxu1 %v1490_v37  ;;  %4140 = vmatprep.subr.mxu0 %v1592_v44  ;;  %v1548_v38 = vld [vmem:[%s6902_s3 + $0x560] sm:$0xff]  ;;  %v1585_v2 = vld [vmem:[%s6902_s3 + $0x688] sm:$0xff]  ;;  %v1547_v50 = vld [vmem:[%s6902_s3 + $0x558] sm:$0xff] }
 0x1a9   : > { %4039 = vmatpush3.msra.mxu1 %v1474_v45  ;;  %4141 = vmatpush3.msra.mxu0 %v1576_v40  ;;  %v1569_v55 = vld [vmem:[%s6902_s3 + $0x608] sm:$0xff]  ;;  %v1562_v3 = vld [vmem:[%s6902_s3 + $0x5d0] sm:$0xff]  ;;  %v1584_v4 = vld [vmem:[%s6902_s3 + $0x680] sm:$0xff] }
 0x1aa   : > { %4040 = vmatprep.subr.mxu1 %v1489_v29  ;;  %4142 = vmatprep.subr.mxu0 %v1591_v33  ;;  %v1546_v41 = vld [vmem:[%s6902_s3 + $0x550] sm:$0xff]  ;;  %v1568_v42 = vld [vmem:[%s6902_s3 + $0x600] sm:$0xff]  ;;  %v1561_v15 = vld [vmem:[%s6902_s3 + $0x5c8] sm:$0xff] }
 0x1ab   : > { %4041 = vmatpush3.msra.mxu1 %v1473_v47  ;;  %4143 = vmatpush3.msra.mxu0 %v1575_v48  ;;  %v1663_v19 = vld [vmem:[%s6902_s3 + $0x8f8] sm:$0xff]  ;;  %v1545_v5 = vld [vmem:[%s6902_s3 + $0x548] sm:$0xff]  ;;  %v1560_v21 = vld [vmem:[%s6902_s3 + $0x5c0] sm:$0xff] }
 0x1ac   : > { %4042 = vmatprep.subr.mxu1 %v1488_v32  ;;  %4144 = vmatprep.subr.mxu0 %v1590_v52  ;;  %v1338_v16 = vld [vmem:[#allocation4 + $0x138] sm:$0xff]  ;;  %v1364_v22 = vld [vmem:[#allocation4 + $0x108] sm:$0x1]  ;;  %v1662_v23 = vld [vmem:[%s6902_s3 + $0x8f0] sm:$0xff] }
 0x1ad   : > { %4043 = vmatpush3.msra.mxu1 %v1472_v53  ;;  %4145 = vmatpush3.msra.mxu0 %v1574_v54  ;;  %v1647_v18 = vld [vmem:[%s6902_s3 + $0x878] sm:$0xff]  ;;  %v1544_v24 = vld [vmem:[%s6902_s3 + $0x540] sm:$0xff]  ;;  %v1646_v6 = vld [vmem:[%s6902_s3 + $0x870] sm:$0xff] }
 0x1ae   : > { %2073 = vmatmul.mubr.f32.vlgmr.msra.gmra.mxu1 %v1332_v56  ;;  %4088 = vmatprep.subr.mxu1 %v1567_v35  ;;  %v1559_v51 = vld [vmem:[%s6902_s3 + $0x5b8] sm:$0xff]  ;;  %v1661_v7 = vld [vmem:[%s6902_s3 + $0x8e8] sm:$0xff]  ;;  %v1363_v25 = vld [vmem:[#allocation4 + $0x140] sm:$0x1] }
 0x1af   : > { %4146 = vmatprep.subr.mxu0 %v1589_v36  ;;  %2077 = vmatprep.mubr.f32.mxu1 %v1358_v14  ;;  %v1543_v20 = vld [vmem:[%s6902_s3 + $0x538] sm:$0xff]  ;;  %v1645_v57 = vld [vmem:[%s6902_s3 + $0x868] sm:$0xff]  ;;  %v1558_v9 = vld [vmem:[%s6902_s3 + $0x5b0] sm:$0xff] }
 0x1b0   : > { %4089 = vmatpush3.msra.mxu1 %v1551_v12  ;;  %4147 = vmatpush3.msra.mxu0 %v1573_v43  ;;  %v1660_v30 = vld [vmem:[%s6902_s3 + $0x8e0] sm:$0xff]  ;;  %v1542_v34 = vld [vmem:[%s6902_s3 + $0x530] sm:$0xff]  ;;  %v1343_v63 = vld [vmem:[#allocation4 + $0xc8] sm:$0xff] }
 0x1b1   : > { %4090 = vmatprep.subr.mxu1 %v1566_v46  ;;  %4148 = vmatprep.subr.mxu0 %v1588_v59  ;;  %v1644_v17 = vld [vmem:[%s6902_s3 + $0x860] sm:$0xff]  ;;  %v1557_v27 = vld [vmem:[%s6902_s3 + $0x5a8] sm:$0xff]  ;;  %v1659_v28 = vld [vmem:[%s6902_s3 + $0x8d8] sm:$0xff] }
 0x1b2   : > { %4091 = vmatpush3.msra.mxu1 %v1550_v60  ;;  %4149 = vmatpush3.msra.mxu0 %v1572_v13  ;;  %v1541_v8 = vld [vmem:[%s6902_s3 + $0x528] sm:$0xff]  ;;  %v1643_v10 = vld [vmem:[%s6902_s3 + $0x858] sm:$0xff]  ;;  %v1556_v37 = vld [vmem:[%s6902_s3 + $0x5a0] sm:$0xff] }
 0x1b3   : > { %2078 = vmatmul.mubr.f32.gmra.mxu1 %v1357_v31  ;;  %4092 = vmatprep.subr.mxu1 %v1565_v61  ;;  %v1658_v44 = vld [vmem:[%s6902_s3 + $0x8d0] sm:$0xff]  ;;  %v1540_v45 = vld [vmem:[%s6902_s3 + $0x520] sm:$0xff]  ;;  %v1555_v29 = vld [vmem:[%s6902_s3 + $0x598] sm:$0xff] }
 0x1b4   : > { %4150 = vmatprep.subr.mxu0 %v1587_v26  ;;  %4093 = vmatpush3.msra.mxu1 %v1549_v62  ;;  %v1642_v40 = vld [vmem:[%s6902_s3 + $0x850] sm:$0xff]  ;;  %v1657_v33 = vld [vmem:[%s6902_s3 + $0x8c8] sm:$0xff]  ;;  %v1539_v47 = vld [vmem:[%s6902_s3 + $0x518] sm:$0xff] }
 0x1b5   : > { %2222 = vmatprep.mubr.f32.mxu1 %v1337_v58  ;;  %4151 = vmatpush3.msra.mxu0 %v1571_v0  ;;  %v1641_v48 = vld [vmem:[%s6902_s3 + $0x848] sm:$0xff]  ;;  %v1554_v32 = vld [vmem:[%s6902_s3 + $0x590] sm:$0xff]  ;;  %v1656_v52 = vld [vmem:[%s6902_s3 + $0x8c0] sm:$0xff] }
 0x1b6   : > { %4094 = vmatprep.subr.mxu1 %v1564_v49  ;;  %4152 = vmatprep.subr.mxu0 %v1586_v11  ;;  %v1538_v53 = vld [vmem:[%s6902_s3 + $0x510] sm:$0xff]  ;;  %v1640_v54 = vld [vmem:[%s6902_s3 + $0x840] sm:$0xff]  ;;  %v1553_v35 = vld [vmem:[%s6902_s3 + $0x588] sm:$0xff] }
 0x1b7   : > { %4095 = vmatpush3.msra.mxu1 %v1548_v38  ;;  %4153 = vmatpush3.msra.mxu0 %v1570_v39  ;;  %v1655_v36 = vld [vmem:[%s6902_s3 + $0x8b8] sm:$0xff]  ;;  %v1537_v56 = vld [vmem:[%s6902_s3 + $0x508] sm:$0xff]  ;;  %v1552_v43 = vld [vmem:[%s6902_s3 + $0x580] sm:$0xff] }
 0x1b8   : > { %4096 = vmatprep.subr.mxu1 %v1563_v1  ;;  %4154 = vmatprep.subr.mxu0 %v1585_v2  ;;  %v1639_v12 = vld [vmem:[%s6902_s3 + $0x838] sm:$0xff]  ;;  %v1654_v46 = vld [vmem:[%s6902_s3 + $0x8b0] sm:$0xff]  ;;  %v1536_v14 = vld [vmem:[%s6902_s3 + $0x500] sm:$0xff] }
 0x1b9   : > { %4097 = vmatpush3.msra.mxu1 %v1547_v50  ;;  %4155 = vmatpush3.msra.mxu0 %v1569_v55  ;;  %v1638_v59 = vld [vmem:[%s6902_s3 + $0x830] sm:$0xff]  ;;  %v1631_v60 = vld [vmem:[%s6902_s3 + $0x7f8] sm:$0xff]  ;;  %v1653_v13 = vld [vmem:[%s6902_s3 + $0x8a8] sm:$0xff] }
 0x1ba   : > { %4098 = vmatprep.subr.mxu1 %v1562_v3  ;;  %4156 = vmatprep.subr.mxu0 %v1584_v4  ;;  %v1336_v61 = vld [vmem:[#allocation4 + $0x70] sm:$0xff]  ;;  %v1615_v26 = vld [vmem:[%s6902_s3 + $0x778] sm:$0xff]  ;;  %v1637_v31 = vld [vmem:[%s6902_s3 + $0x828] sm:$0xff] }
 0x1bb   : > { %4099 = vmatpush3.msra.mxu1 %v1546_v41  ;;  %4157 = vmatpush3.msra.mxu0 %v1568_v42  ;;  %v1630_v62 = vld [vmem:[%s6902_s3 + $0x7f0] sm:$0xff]  ;;  %v1362_v0 = vld [vmem:[#allocation4 + $0x178] sm:$0x1]  ;;  %v1652_v49 = vld [vmem:[%s6902_s3 + $0x8a0] sm:$0xff] }
 0x1bc   : > { %4100 = vmatprep.subr.mxu1 %v1561_v15  ;;  %2298 = vmatmul.mubr.f32.vlgmr.msra.gmra.mxu0 %v1338_v16  ;;  %v1614_v58 = vld [vmem:[%s6902_s3 + $0x770] sm:$0xff]  ;;  %v1636_v11 = vld [vmem:[%s6902_s3 + $0x820] sm:$0xff]  ;;  %v1629_v38 = vld [vmem:[%s6902_s3 + $0x7e8] sm:$0xff] }
 0x1bd   : > { %4202 = vmatprep.subr.mxu0 %v1663_v19  ;;  %4101 = vmatpush3.msra.mxu1 %v1545_v5  ;;  %v1651_v39 = vld [vmem:[%s6902_s3 + $0x898] sm:$0xff]  ;;  %v1613_v2 = vld [vmem:[%s6902_s3 + $0x768] sm:$0xff]  ;;  %v1628_v55 = vld [vmem:[%s6902_s3 + $0x7e0] sm:$0xff] }
 0x1be   : > { %2302 = vmatprep.mubr.f32.mxu0 %v1364_v22  ;;  %4203 = vmatpush3.msra.mxu0 %v1647_v18  ;;  %v1361_v1 = vld [vmem:[#allocation4 + $0x118] sm:$0x1]  ;;  %v1650_v4 = vld [vmem:[%s6902_s3 + $0x890] sm:$0xff]  ;;  %v1612_v41 = vld [vmem:[%s6902_s3 + $0x760] sm:$0xff] }
 0x1bf   : > { %4102 = vmatprep.subr.mxu1 %v1560_v21  ;;  %4204 = vmatprep.subr.mxu0 %v1662_v23  ;;  %v1635_v50 = vld [vmem:[%s6902_s3 + $0x818] sm:$0xff]  ;;  %v1634_v42 = vld [vmem:[%s6902_s3 + $0x810] sm:$0xff]  ;;  %v1649_v19 = vld [vmem:[%s6902_s3 + $0x888] sm:$0xff] }
 0x1c0   : > { %4103 = vmatpush3.msra.mxu1 %v1544_v24  ;;  %4205 = vmatpush3.msra.mxu0 %v1646_v6  ;;  %v1341_v3 = vld [vmem:[#allocation4 + $0x78] sm:$0xff]  ;;  %v1633_v16 = vld [vmem:[%s6902_s3 + $0x808] sm:$0xff]  ;;  %v1626_v18 = vld [vmem:[%s6902_s3 + $0x7d0] sm:$0xff] }
 0x1c1   : > { %4104 = vmatprep.subr.mxu1 %v1559_v51  ;;  %2303 = vmatmul.mubr.f32.gmra.mxu0 %v1363_v25  ;;  %v1627_v15 = vld [vmem:[%s6902_s3 + $0x7d8] sm:$0xff]  ;;  %v1648_v21 = vld [vmem:[%s6902_s3 + $0x880] sm:$0xff]  ;;  %v1610_v22 = vld [vmem:[%s6902_s3 + $0x750] sm:$0xff] }
 0x1c2   : > { %4206 = vmatprep.subr.mxu0 %v1661_v7  ;;  %4105 = vmatpush3.msra.mxu1 %v1543_v20  ;;  %v1611_v5 = vld [vmem:[%s6902_s3 + $0x758] sm:$0xff]  ;;  %v1632_v23 = vld [vmem:[%s6902_s3 + $0x800] sm:$0xff]  ;;  %v1625_v24 = vld [vmem:[%s6902_s3 + $0x7c8] sm:$0xff] }
 0x1c3   : > { %4207 = vmatpush3.msra.mxu0 %v1645_v57  ;;  %2447 = vmatprep.mubr.f32.mxu0 %v1343_v63  ;;  %v1727_v6 = vld [vmem:[%s6902_s3 + $0xaf8] sm:$0xff]  ;;  %v1609_v51 = vld [vmem:[%s6902_s3 + $0x748] sm:$0xff]  ;;  %v1624_v57 = vld [vmem:[%s6902_s3 + $0x7c0] sm:$0xff] }
 0x1c4   : > { %4106 = vmatprep.subr.mxu1 %v1558_v9  ;;  %4208 = vmatprep.subr.mxu0 %v1660_v30  ;;  %v1711_v7 = vld [vmem:[%s6902_s3 + $0xa78] sm:$0xff]  ;;  %v1342_v20 = vld [vmem:[#allocation4 + $0x28] sm:$0xff]  ;;  %v1726_v25 = vld [vmem:[%s6902_s3 + $0xaf0] sm:$0xff] }
 0x1c5   : > { %4107 = vmatpush3.msra.mxu1 %v1542_v34  ;;  %4209 = vmatpush3.msra.mxu0 %v1644_v17  ;;  %v1608_v9 = vld [vmem:[%s6902_s3 + $0x740] sm:$0xff]  ;;  %v1710_v34 = vld [vmem:[%s6902_s3 + $0xa70] sm:$0xff]  ;;  %v1623_v63 = vld [vmem:[%s6902_s3 + $0x7b8] sm:$0xff] }
 0x1c6   : > { %4108 = vmatprep.subr.mxu1 %v1557_v27  ;;  %4210 = vmatprep.subr.mxu0 %v1659_v28  ;;  %v1368_v30 = vld [vmem:[#allocation4 + $0x60] sm:$0x1]  ;;  %v1725_v27 = vld [vmem:[%s6902_s3 + $0xae8] sm:$0xff]  ;;  %v1607_v28 = vld [vmem:[%s6902_s3 + $0x738] sm:$0xff] }
 0x1c7   : > { %4109 = vmatpush3.msra.mxu1 %v1541_v8  ;;  %4211 = vmatpush3.msra.mxu0 %v1643_v10  ;;  %v1367_v17 = vld [vmem:[#allocation4] sm:$0x1]  ;;  %v1709_v8 = vld [vmem:[%s6902_s3 + $0xa68] sm:$0xff]  ;;  %v1622_v10 = vld [vmem:[%s6902_s3 + $0x7b0] sm:$0xff] }
 0x1c8   : > { %4110 = vmatprep.subr.mxu1 %v1556_v37  ;;  %4212 = vmatprep.subr.mxu0 %v1658_v44  ;;  %v1724_v37 = vld [vmem:[%s6902_s3 + $0xae0] sm:$0xff]  ;;  %v1606_v44 = vld [vmem:[%s6902_s3 + $0x730] sm:$0xff] }
 0x1c9   : > { %4111 = vmatpush3.msra.mxu1 %v1540_v45  ;;  %4213 = vmatpush3.msra.mxu0 %v1642_v40  ;;  %v1347_v45 = vld [vmem:[#allocation4 + $0xe0] sm:$0xff] }
 0x1ca   : > { %4112 = vmatprep.subr.mxu1 %v1555_v29  ;;  %4214 = vmatprep.subr.mxu0 %v1657_v33  ;;  %v1708_v40 = vld [vmem:[%s6902_s3 + $0xa60] sm:$0xff]  ;;  %v1621_v29 = vld [vmem:[%s6902_s3 + $0x7a8] sm:$0xff]  ;;  %v1723_v33 = vld [vmem:[%s6902_s3 + $0xad8] sm:$0xff] }
 0x1cb   : > { %4113 = vmatpush3.msra.mxu1 %v1539_v47  ;;  %4215 = vmatpush3.msra.mxu0 %v1641_v48  ;;  %v1605_v47 = vld [vmem:[%s6902_s3 + $0x728] sm:$0xff]  ;;  %v1707_v48 = vld [vmem:[%s6902_s3 + $0xa58] sm:$0xff] }
 0x1cc   : > { %4114 = vmatprep.subr.mxu1 %v1554_v32  ;;  %4216 = vmatprep.subr.mxu0 %v1656_v52  ;;  %v1620_v32 = vld [vmem:[%s6902_s3 + $0x7a0] sm:$0xff]  ;;  %v1722_v52 = vld [vmem:[%s6902_s3 + $0xad0] sm:$0xff] }
 0x1cd   : > { %4115 = vmatpush3.msra.mxu1 %v1538_v53  ;;  %4217 = vmatpush3.msra.mxu0 %v1640_v54  ;;  %v1604_v53 = vld [vmem:[%s6902_s3 + $0x720] sm:$0xff]  ;;  %v1706_v54 = vld [vmem:[%s6902_s3 + $0xa50] sm:$0xff] }
 0x1ce   : > { %4116 = vmatprep.subr.mxu1 %v1553_v35  ;;  %4218 = vmatprep.subr.mxu0 %v1655_v36  ;;  %v1619_v35 = vld [vmem:[%s6902_s3 + $0x798] sm:$0xff]  ;;  %v1721_v36 = vld [vmem:[%s6902_s3 + $0xac8] sm:$0xff] }
 0x1cf   : > { %4117 = vmatpush3.msra.mxu1 %v1537_v56  ;;  %4219 = vmatpush3.msra.mxu0 %v1639_v12  ;;  %v1603_v56 = vld [vmem:[%s6902_s3 + $0x718] sm:$0xff]  ;;  %v1705_v12 = vld [vmem:[%s6902_s3 + $0xa48] sm:$0xff] }
 0x1d0   : > { %4118 = vmatprep.subr.mxu1 %v1552_v43  ;;  %4220 = vmatprep.subr.mxu0 %v1654_v46  ;;  %v1618_v43 = vld [vmem:[%s6902_s3 + $0x790] sm:$0xff]  ;;  %v1720_v46 = vld [vmem:[%s6902_s3 + $0xac0] sm:$0xff] }
 0x1d1   : > { %4119 = vmatpush3.msra.mxu1 %v1536_v14  ;;  %4221 = vmatpush3.msra.mxu0 %v1638_v59  ;;  %v1602_v14 = vld [vmem:[%s6902_s3 + $0x710] sm:$0xff]  ;;  %v1704_v59 = vld [vmem:[%s6902_s3 + $0xa40] sm:$0xff] }
 0x1d2   : > { %2223 = vmatmul.mubr.f32.vlgmr.msra.gmra.mxu1 %v1336_v61  ;;  %4164 = vmatprep.subr.mxu1 %v1631_v60  ;;  %v1617_v60 = vld [vmem:[%s6902_s3 + $0x788] sm:$0xff] }
 0x1d3   : > { %4222 = vmatprep.subr.mxu0 %v1653_v13  ;;  %2227 = vmatprep.mubr.f32.mxu1 %v1362_v0  ;;  %v1719_v13 = vld [vmem:[%s6902_s3 + $0xab8] sm:$0xff]  ;;  %v1601_v61 = vld [vmem:[%s6902_s3 + $0x708] sm:$0xff]  ;;  %v1600_v0 = vld [vmem:[%s6902_s3 + $0x700] sm:$0xff] }
 0x1d4   : > { %4165 = vmatpush3.msra.mxu1 %v1615_v26  ;;  %4223 = vmatpush3.msra.mxu0 %v1637_v31  ;;  %v1703_v26 = vld [vmem:[%s6902_s3 + $0xa38] sm:$0xff]  ;;  %v1616_v31 = vld [vmem:[%s6902_s3 + $0x780] sm:$0xff] }
 0x1d5   : > { %4166 = vmatprep.subr.mxu1 %v1630_v62  ;;  %4224 = vmatprep.subr.mxu0 %v1652_v49  ;;  %v1718_v62 = vld [vmem:[%s6902_s3 + $0xab0] sm:$0xff] }
 0x1d6   : > { %4167 = vmatpush3.msra.mxu1 %v1614_v58  ;;  %4225 = vmatpush3.msra.mxu0 %v1636_v11  ;;  %v1702_v49 = vld [vmem:[%s6902_s3 + $0xa30] sm:$0xff]  ;;  %v1695_v58 = vld [vmem:[%s6902_s3 + $0x9f8] sm:$0xff]  ;;  %v1717_v11 = vld [vmem:[%s6902_s3 + $0xaa8] sm:$0xff] }
 0x1d7   : > { %2228 = vmatmul.mubr.f32.gmra.mxu1 %v1361_v1  ;;  %4168 = vmatprep.subr.mxu1 %v1629_v38  ;;  %v1340_v38 = vld [vmem:[#allocation4 + $0x50] sm:$0xff]  ;;  %v1701_v1 = vld [vmem:[%s6902_s3 + $0xa28] sm:$0xff] }
 0x1d8   : > { %4226 = vmatprep.subr.mxu0 %v1651_v39  ;;  %4169 = vmatpush3.msra.mxu1 %v1613_v2  ;;  %v1679_v39 = vld [vmem:[%s6902_s3 + $0x978] sm:$0xff]  ;;  %v1694_v2 = vld [vmem:[%s6902_s3 + $0x9f0] sm:$0xff] }
 0x1d9   : > { %2372 = vmatprep.mubr.f32.mxu1 %v1341_v3  ;;  %4227 = vmatpush3.msra.mxu0 %v1635_v50  ;;  %v1716_v50 = vld [vmem:[%s6902_s3 + $0xaa0] sm:$0xff]  ;;  %v1678_v3 = vld [vmem:[%s6902_s3 + $0x970] sm:$0xff] }
 0x1da   : > { %4170 = vmatprep.subr.mxu1 %v1628_v55  ;;  %4228 = vmatprep.subr.mxu0 %v1650_v4  ;;  %v1366_v55 = vld [vmem:[#allocation4 + $0xa0] sm:$0x1] }
 0x1db   : > { %4171 = vmatpush3.msra.mxu1 %v1612_v41  ;;  %4229 = vmatpush3.msra.mxu0 %v1634_v42  ;;  %v1700_v4 = vld [vmem:[%s6902_s3 + $0xa20] sm:$0xff]  ;;  %v1693_v41 = vld [vmem:[%s6902_s3 + $0x9e8] sm:$0xff]  ;;  %v1715_v42 = vld [vmem:[%s6902_s3 + $0xa98] sm:$0xff] }
 0x1dc   : > { %4172 = vmatprep.subr.mxu1 %v1627_v15  ;;  %4230 = vmatprep.subr.mxu0 %v1649_v19  ;;  %v1365_v15 = vld [vmem:[#allocation4 + $0xb8] sm:$0x1]  ;;  %v1677_v19 = vld [vmem:[%s6902_s3 + $0x968] sm:$0xff] }
 0x1dd   : > { %4173 = vmatpush3.msra.mxu1 %v1611_v5  ;;  %4231 = vmatpush3.msra.mxu0 %v1633_v16  ;;  %v1699_v5 = vld [vmem:[%s6902_s3 + $0xa18] sm:$0xff]  ;;  %v1692_v16 = vld [vmem:[%s6902_s3 + $0x9e0] sm:$0xff] }
 0x1de   : > { %4174 = vmatprep.subr.mxu1 %v1626_v18  ;;  %4232 = vmatprep.subr.mxu0 %v1648_v21  ;;  %v1345_v18 = vld [vmem:[#allocation4 + $0x188] sm:$0xff]  ;;  %v1714_v21 = vld [vmem:[%s6902_s3 + $0xa90] sm:$0xff] }
 0x1df   : > { %4175 = vmatpush3.msra.mxu1 %v1610_v22  ;;  %4233 = vmatpush3.msra.mxu0 %v1632_v23  ;;  %v1676_v22 = vld [vmem:[%s6902_s3 + $0x960] sm:$0xff]  ;;  %v1698_v23 = vld [vmem:[%s6902_s3 + $0xa10] sm:$0xff] }
 0x1e0   : > { %4176 = vmatprep.subr.mxu1 %v1625_v24  ;;  %2448 = vmatmul.mubr.f32.vlgmr.msra.gmra.mxu0 %v1342_v20  ;;  %v1691_v24 = vld [vmem:[%s6902_s3 + $0x9d8] sm:$0xff]  ;;  %v1690_v20 = vld [vmem:[%s6902_s3 + $0x9d0] sm:$0xff] }
 0x1e1   : > { %4278 = vmatprep.subr.mxu0 %v1727_v6  ;;  %4177 = vmatpush3.msra.mxu1 %v1609_v51  ;;  %v1713_v6 = vld [vmem:[%s6902_s3 + $0xa88] sm:$0xff]  ;;  %v1675_v51 = vld [vmem:[%s6902_s3 + $0x958] sm:$0xff] }
 0x1e2   : > { %4279 = vmatpush3.msra.mxu0 %v1711_v7  ;;  %4178 = vmatprep.subr.mxu1 %v1624_v57  ;;  %v1697_v7 = vld [vmem:[%s6902_s3 + $0xa08] sm:$0xff]  ;;  %v1712_v57 = vld [vmem:[%s6902_s3 + $0xa80] sm:$0xff] }
 0x1e3   : > { %4280 = vmatprep.subr.mxu0 %v1726_v25  ;;  %4179 = vmatpush3.msra.mxu1 %v1608_v9  ;;  %v1674_v25 = vld [vmem:[%s6902_s3 + $0x950] sm:$0xff]  ;;  %v1696_v9 = vld [vmem:[%s6902_s3 + $0xa00] sm:$0xff] }
 0x1e4   : > { %2452 = vmatprep.mubr.f32.mxu0 %v1368_v30  ;;  %4281 = vmatpush3.msra.mxu0 %v1710_v34  ;;  %v1689_v30 = vld [vmem:[%s6902_s3 + $0x9c8] sm:$0xff] }
 0x1e5   : > { %4180 = vmatprep.subr.mxu1 %v1623_v63  ;;  %2453 = vmatmul.mubr.f32.gmra.mxu0 %v1367_v17  ;;  %v1673_v34 = vld [vmem:[%s6902_s3 + $0x948] sm:$0xff]  ;;  %v1688_v63 = vld [vmem:[%s6902_s3 + $0x9c0] sm:$0xff]  ;;  %v1372_v17 = vld [vmem:[#allocation4 + $0x38] sm:$0x1] }
 0x1e6   : > { %4282 = vmatprep.subr.mxu0 %v1725_v27  ;;  %4181 = vmatpush3.msra.mxu1 %v1607_v28  ;;  %v1346_v27 = vld [vmem:[#allocation4 + $0xd8] sm:$0xff]  ;;  %v1672_v28 = vld [vmem:[%s6902_s3 + $0x940] sm:$0xff] }
 0x1e7   : > { %4283 = vmatpush3.msra.mxu0 %v1709_v8  ;;  %2597 = vmatprep.mubr.f32.mxu0 %v1347_v45  ;;  %v1775_v8 = vld [vmem:[%s6902_s3 + $0xc78] sm:$0xff]  ;;  %v1686_v45 = vld [vmem:[%s6902_s3 + $0x9b0] sm:$0xff] }
 0x1e8   : > { %4182 = vmatprep.subr.mxu1 %v1622_v10  ;;  %4284 = vmatprep.subr.mxu0 %v1724_v37  ;;  %v1687_v10 = vld [vmem:[%s6902_s3 + $0x9b8] sm:$0xff]  ;;  %v1371_v37 = vld [vmem:[#allocation4 + $0x170] sm:$0x1] }
 0x1e9   : > { %4183 = vmatpush3.msra.mxu1 %v1606_v44  ;;  %4285 = vmatpush3.msra.mxu0 %v1708_v40  ;;  %v1671_v44 = vld [vmem:[%s6902_s3 + $0x938] sm:$0xff]  ;;  %v1670_v40 = vld [vmem:[%s6902_s3 + $0x930] sm:$0xff] }
 0x1ea   : > { %4184 = vmatprep.subr.mxu1 %v1621_v29  ;;  %4286 = vmatprep.subr.mxu0 %v1723_v33  ;;  %v1774_v29 = vld [vmem:[%s6902_s3 + $0xc70] sm:$0xff]  ;;  %v1350_v33 = vld [vmem:[#allocation4 + $0x100] sm:$0xff] }
 0x1eb   : > { %4185 = vmatpush3.msra.mxu1 %v1605_v47  ;;  %4287 = vmatpush3.msra.mxu0 %v1707_v48  ;;  %v1685_v47 = vld [vmem:[%s6902_s3 + $0x9a8] sm:$0xff] }
 0x1ec   : > { %4186 = vmatprep.subr.mxu1 %v1620_v32  ;;  %4288 = vmatprep.subr.mxu0 %v1722_v52  ;;  %v1669_v48 = vld [vmem:[%s6902_s3 + $0x928] sm:$0xff]  ;;  %v1684_v52 = vld [vmem:[%s6902_s3 + $0x9a0] sm:$0xff] }
 0x1ed   : > { %4187 = vmatpush3.msra.mxu1 %v1604_v53  ;;  %4289 = vmatpush3.msra.mxu0 %v1706_v54  ;;  %v1773_v32 = vld [vmem:[%s6902_s3 + $0xc68] sm:$0xff]  ;;  %v1668_v53 = vld [vmem:[%s6902_s3 + $0x920] sm:$0xff] }
 0x1ee   : > { %4188 = vmatprep.subr.mxu1 %v1619_v35  ;;  %4290 = vmatprep.subr.mxu0 %v1721_v36  ;;  %v1772_v54 = vld [vmem:[%s6902_s3 + $0xc60] sm:$0xff]  ;;  %v1683_v35 = vld [vmem:[%s6902_s3 + $0x998] sm:$0xff] }
 0x1ef   : > { %4189 = vmatpush3.msra.mxu1 %v1603_v56  ;;  %4291 = vmatpush3.msra.mxu0 %v1705_v12  ;;  %v1667_v36 = vld [vmem:[%s6902_s3 + $0x918] sm:$0xff]  ;;  %v1682_v12 = vld [vmem:[%s6902_s3 + $0x990] sm:$0xff] }
 0x1f0   : > { %4190 = vmatprep.subr.mxu1 %v1618_v43  ;;  %4292 = vmatprep.subr.mxu0 %v1720_v46  ;;  %v1771_v56 = vld [vmem:[%s6902_s3 + $0xc58] sm:$0xff]  ;;  %v1666_v43 = vld [vmem:[%s6902_s3 + $0x910] sm:$0xff] }
 0x1f1   : > { %4191 = vmatpush3.msra.mxu1 %v1602_v14  ;;  %4293 = vmatpush3.msra.mxu0 %v1704_v59  ;;  %v1770_v46 = vld [vmem:[%s6902_s3 + $0xc50] sm:$0xff]  ;;  %v1681_v14 = vld [vmem:[%s6902_s3 + $0x988] sm:$0xff] }
 0x1f2   : > { %4192 = vmatprep.subr.mxu1 %v1617_v60  ;;  %4294 = vmatprep.subr.mxu0 %v1719_v13  ;;  %v1665_v59 = vld [vmem:[%s6902_s3 + $0x908] sm:$0xff]  ;;  %v1680_v13 = vld [vmem:[%s6902_s3 + $0x980] sm:$0xff] }
 0x1f3   : > { %4193 = vmatpush3.msra.mxu1 %v1601_v61  ;;  %4295 = vmatpush3.msra.mxu0 %v1703_v26  ;;  %v1769_v60 = vld [vmem:[%s6902_s3 + $0xc48] sm:$0xff]  ;;  %v1664_v61 = vld [vmem:[%s6902_s3 + $0x900] sm:$0xff] }
 0x1f4   : > { %4194 = vmatprep.subr.mxu1 %v1616_v31  ;;  %4296 = vmatprep.subr.mxu0 %v1718_v62  ;;  %v1768_v26 = vld [vmem:[%s6902_s3 + $0xc40] sm:$0xff]  ;;  %v1759_v31 = vld [vmem:[%s6902_s3 + $0xbf8] sm:$0xff] }
 0x1f5   : > { %4195 = vmatpush3.msra.mxu1 %v1600_v0  ;;  %4297 = vmatpush3.msra.mxu0 %v1702_v49  ;;  %v1743_v62 = vld [vmem:[%s6902_s3 + $0xb78] sm:$0xff]  ;;  %v1370_v0 = vld [vmem:[#allocation4 + $0xd0] sm:$0x1] }
 0x1f6   : > { %2373 = vmatmul.mubr.f32.vlgmr.msra.gmra.mxu1 %v1340_v38  ;;  %4240 = vmatprep.subr.mxu1 %v1695_v58  ;;  %v1344_v49 = vld [vmem:[#allocation4 + $0x110] sm:$0xff]  ;;  %v1767_v38 = vld [vmem:[%s6902_s3 + $0xc38] sm:$0xff] }
 0x1f7   : > { %4298 = vmatprep.subr.mxu0 %v1717_v11  ;;  %4241 = vmatpush3.msra.mxu1 %v1679_v39  ;;  %v1758_v58 = vld [vmem:[%s6902_s3 + $0xbf0] sm:$0xff]  ;;  %v1369_v39 = vld [vmem:[#allocation4 + $0x18] sm:$0x1] }
 0x1f8   : > { %4299 = vmatpush3.msra.mxu0 %v1701_v1  ;;  %4242 = vmatprep.subr.mxu1 %v1694_v2  ;;  %v1742_v11 = vld [vmem:[%s6902_s3 + $0xb70] sm:$0xff]  ;;  %v1757_v1 = vld [vmem:[%s6902_s3 + $0xbe8] sm:$0xff] }
 0x1f9   : > { %4300 = vmatprep.subr.mxu0 %v1716_v50  ;;  %2377 = vmatprep.mubr.f32.mxu1 %v1366_v55  ;;  %v1741_v2 = vld [vmem:[%s6902_s3 + $0xb68] sm:$0xff]  ;;  %v1756_v50 = vld [vmem:[%s6902_s3 + $0xbe0] sm:$0xff] }
 0x1fa   : > { %4243 = vmatpush3.msra.mxu1 %v1678_v3  ;;  %4301 = vmatpush3.msra.mxu0 %v1700_v4  ;;  %v1349_v55 = vld [vmem:[#allocation4 + $0x128] sm:$0xff]  ;;  %v1740_v3 = vld [vmem:[%s6902_s3 + $0xb60] sm:$0xff]  ;;  %v1766_v4 = vld [vmem:[%s6902_s3 + $0xc30] sm:$0xff] }
 0x1fb   : > { %2378 = vmatmul.mubr.f32.gmra.mxu1 %v1365_v15  ;;  %4244 = vmatprep.subr.mxu1 %v1693_v41  ;;  %v1755_v41 = vld [vmem:[%s6902_s3 + $0xbd8] sm:$0xff]  ;;  %v1765_v15 = vld [vmem:[%s6902_s3 + $0xc28] sm:$0xff] }
 0x1fc   : > { %4302 = vmatprep.subr.mxu0 %v1715_v42  ;;  %4245 = vmatpush3.msra.mxu1 %v1677_v19  ;;  %v1739_v42 = vld [vmem:[%s6902_s3 + $0xb58] sm:$0xff]  ;;  %v1754_v19 = vld [vmem:[%s6902_s3 + $0xbd0] sm:$0xff] }
 0x1fd   : > { %2522 = vmatprep.mubr.f32.mxu1 %v1345_v18  ;;  %4303 = vmatpush3.msra.mxu0 %v1699_v5  ;;  %v1738_v5 = vld [vmem:[%s6902_s3 + $0xb50] sm:$0xff]  ;;  %v1753_v18 = vld [vmem:[%s6902_s3 + $0xbc8] sm:$0xff] }
 0x1fe   : > { %4246 = vmatprep.subr.mxu1 %v1692_v16  ;;  %4304 = vmatprep.subr.mxu0 %v1714_v21  ;;  %v1764_v16 = vld [vmem:[%s6902_s3 + $0xc20] sm:$0xff]  ;;  %v1737_v21 = vld [vmem:[%s6902_s3 + $0xb48] sm:$0xff] }
 0x1ff   : > { %4247 = vmatpush3.msra.mxu1 %v1676_v22  ;;  %4305 = vmatpush3.msra.mxu0 %v1698_v23  ;;  %v1763_v22 = vld [vmem:[%s6902_s3 + $0xc18] sm:$0xff]  ;;  %v1752_v23 = vld [vmem:[%s6902_s3 + $0xbc0] sm:$0xff] }
 0x200   : > { %4248 = vmatprep.subr.mxu1 %v1691_v24  ;;  %4306 = vmatprep.subr.mxu0 %v1713_v6  ;;  %v1736_v24 = vld [vmem:[%s6902_s3 + $0xb40] sm:$0xff]  ;;  %v1762_v6 = vld [vmem:[%s6902_s3 + $0xc10] sm:$0xff] }
 0x201   : > { %4249 = vmatpush3.msra.mxu1 %v1675_v51  ;;  %4307 = vmatpush3.msra.mxu0 %v1697_v7  ;;  %v1751_v51 = vld [vmem:[%s6902_s3 + $0xbb8] sm:$0xff] }
 0x202   : > { %4250 = vmatprep.subr.mxu1 %v1690_v20  ;;  %4308 = vmatprep.subr.mxu0 %v1712_v57  ;;  %v1735_v7 = vld [vmem:[%s6902_s3 + $0xb38] sm:$0xff]  ;;  %v1761_v20 = vld [vmem:[%s6902_s3 + $0xc08] sm:$0xff]  ;;  %v1750_v57 = vld [vmem:[%s6902_s3 + $0xbb0] sm:$0xff] }
 0x203   : > { %4251 = vmatpush3.msra.mxu1 %v1674_v25  ;;  %4309 = vmatpush3.msra.mxu0 %v1696_v9  ;;  %v1734_v25 = vld [vmem:[%s6902_s3 + $0xb30] sm:$0xff]  ;;  %v1760_v9 = vld [vmem:[%s6902_s3 + $0xc00] sm:$0xff] }
 0x204   : > { %4252 = vmatprep.subr.mxu1 %v1689_v30  ;;  %2598 = vmatmul.mubr.f32.vlgmr.msra.gmra.mxu0 %v1346_v27  ;;  %v1749_v30 = vld [vmem:[%s6902_s3 + $0xba8] sm:$0xff]  ;;  %v1732_v27 = vld [vmem:[%s6902_s3 + $0xb20] sm:$0xff] }
 0x205   : > { %4253 = vmatpush3.msra.mxu1 %v1673_v34  ;;  %2602 = vmatprep.mubr.f32.mxu0 %v1372_v17  ;;  %v1733_v34 = vld [vmem:[%s6902_s3 + $0xb28] sm:$0xff]  ;;  %v1748_v17 = vld [vmem:[%s6902_s3 + $0xba0] sm:$0xff] }
 0x206   : > { %4254 = vmatprep.subr.mxu1 %v1688_v63  ;;  %4568 = vmatprep.subr.mxu0 %v1775_v8  ;;  %v1375_v63 = vld [vmem:[#allocation4 + $0xa8] sm:$0x1] }
 0x207   : > { %4255 = vmatpush3.msra.mxu1 %v1672_v28  ;;  %4569 = vmatpush3.msra.mxu0 %v1775_v8  ;;  %v1747_v28 = vld [vmem:[%s6902_s3 + $0xb98] sm:$0xff] }
 0x208   : > { %4256 = vmatprep.subr.mxu1 %v1687_v10  ;;  %2603 = vmatmul.mubr.f32.gmra.mxu0 %v1371_v37  ;;  %v1731_v8 = vld [vmem:[%s6902_s3 + $0xb18] sm:$0xff]  ;;  %v1746_v10 = vld [vmem:[%s6902_s3 + $0xb90] sm:$0xff] }
 0x209   : > { %4257 = vmatpush3.msra.mxu1 %v1671_v44  ;;  %4600 = vmatprep.mubr.f32.mxu0 %v1350_v33  ;;  %v1730_v37 = vld [vmem:[%s6902_s3 + $0xb10] sm:$0xff]  ;;  %v1745_v44 = vld [vmem:[%s6902_s3 + $0xb88] sm:$0xff] }
 0x20a   : > { %4258 = vmatprep.subr.mxu1 %v1686_v45  ;;  %4570 = vmatprep.subr.mxu0 %v1774_v29  ;;  %v1729_v45 = vld [vmem:[%s6902_s3 + $0xb08] sm:$0xff]  ;;  %v1374_v33 = vld [vmem:[#allocation4 + $0x30] sm:$0x1] }
 0x20b   : > { %4259 = vmatpush3.msra.mxu1 %v1670_v40  ;;  %4571 = vmatpush3.msra.mxu0 %v1774_v29  ;;  %v1744_v40 = vld [vmem:[%s6902_s3 + $0xb80] sm:$0xff] }
 0x20c   : > { %4260 = vmatprep.subr.mxu1 %v1685_v47  ;;  %4572 = vmatprep.subr.mxu0 %v1773_v32  ;;  %v1728_v29 = vld [vmem:[%s6902_s3 + $0xb00] sm:$0xff]  ;;  %v1348_v47 = vld [vmem:[#allocation4 + $0xf8] sm:$0xff] }
 0x20d   : > { %4261 = vmatpush3.msra.mxu1 %v1669_v48  ;;  %4573 = vmatpush3.msra.mxu0 %v1773_v32  ;;  %v1373_v48 = vld [vmem:[#allocation4 + $0x40] sm:$0x1]  ;;  %v3063_v32 = vld [vmem:[%s6904_s5 + $0xf8] sm:$0xff] }
 0x20e   : > { %4262 = vmatprep.subr.mxu1 %v1684_v52  ;;  %4574 = vmatprep.subr.mxu0 %v1772_v54  ;;  %v3047_v52 = vld [vmem:[%s6904_s5 + $0x78] sm:$0xff] }
 0x20f   : > { %4263 = vmatpush3.msra.mxu1 %v1668_v53  ;;  %4575 = vmatpush3.msra.mxu0 %v1772_v54  ;;  %v3062_v53 = vld [vmem:[%s6904_s5 + $0xf0] sm:$0xff] }
 0x210   : > { %4264 = vmatprep.subr.mxu1 %v1683_v35  ;;  %4576 = vmatprep.subr.mxu0 %v1771_v56  ;;  %v3046_v54 = vld [vmem:[%s6904_s5 + $0x70] sm:$0xff]  ;;  %v3061_v35 = vld [vmem:[%s6904_s5 + $0xe8] sm:$0xff] }
 0x211   : > { %4265 = vmatpush3.msra.mxu1 %v1667_v36  ;;  %4577 = vmatpush3.msra.mxu0 %v1771_v56  ;;  %v3045_v36 = vld [vmem:[%s6904_s5 + $0x68] sm:$0xff]  ;;  %v3060_v56 = vld [vmem:[%s6904_s5 + $0xe0] sm:$0xff] }
 0x212   : > { %4266 = vmatprep.subr.mxu1 %v1682_v12  ;;  %4578 = vmatprep.subr.mxu0 %v1770_v46  ;;  %v3044_v12 = vld [vmem:[%s6904_s5 + $0x60] sm:$0xff] }
 0x213   : > { %4267 = vmatpush3.msra.mxu1 %v1666_v43  ;;  %4579 = vmatpush3.msra.mxu0 %v1770_v46  ;;  %v3059_v43 = vld [vmem:[%s6904_s5 + $0xd8] sm:$0xff] }
 0x214   : > { %4268 = vmatprep.subr.mxu1 %v1681_v14  ;;  %4580 = vmatprep.subr.mxu0 %v1769_v60  ;;  %v3043_v46 = vld [vmem:[%s6904_s5 + $0x58] sm:$0xff] }
 0x215   : > { %4269 = vmatpush3.msra.mxu1 %v1665_v59  ;;  %4581 = vmatpush3.msra.mxu0 %v1769_v60  ;;  %v3095_v14 = vld [vmem:[%s6904_s5 + $0x1f8] sm:$0xff]  ;;  %v3058_v60 = vld [vmem:[%s6904_s5 + $0xd0] sm:$0xff] }
 0x216   : > { %4270 = vmatprep.subr.mxu1 %v1680_v13  ;;  %4582 = vmatprep.subr.mxu0 %v1768_v26  ;;  %v3079_v59 = vld [vmem:[%s6904_s5 + $0x178] sm:$0xff]  ;;  %v3094_v13 = vld [vmem:[%s6904_s5 + $0x1f0] sm:$0xff] }
 0x217   : > { %4271 = vmatpush3.msra.mxu1 %v1664_v61  ;;  %4583 = vmatpush3.msra.mxu0 %v1768_v26  ;;  %v3042_v61 = vld [vmem:[%s6904_s5 + $0x50] sm:$0xff]  ;;  %v3057_v26 = vld [vmem:[%s6904_s5 + $0xc8] sm:$0xff] }
 0x218   : > { %2523 = vmatmul.mubr.f32.vlgmr.msra.gmra.mxu1 %v1344_v49  ;;  %4316 = vmatprep.subr.mxu1 %v1759_v31  ;;  %v3041_v31 = vld [vmem:[%s6904_s5 + $0x48] sm:$0xff]  ;;  %v3055_v49 = vld [vmem:[%s6904_s5 + $0xb8] sm:$0xff] }
 0x219   : > { %4317 = vmatpush3.msra.mxu1 %v1743_v62  ;;  %2527 = vmatprep.mubr.f32.mxu1 %v1370_v0  ;;  %v3056_v62 = vld [vmem:[%s6904_s5 + $0xc0] sm:$0xff] }
 0x21a   : > { %4318 = vmatprep.subr.mxu1 %v1758_v58  ;;  %4584 = vmatprep.subr.mxu0 %v1767_v38  ;;  %v3040_v0 = vld [vmem:[%s6904_s5 + $0x40] sm:$0xff]  ;;  %v3039_v58 = vld [vmem:[%s6904_s5 + $0x38] sm:$0xff] }
 0x21b   : > { %4319 = vmatpush3.msra.mxu1 %v1742_v11  ;;  %4585 = vmatpush3.msra.mxu0 %v1767_v38  ;;  %v3054_v11 = vld [vmem:[%s6904_s5 + $0xb0] sm:$0xff] }
 0x21c   : > { %2528 = vmatmul.mubr.f32.gmra.mxu1 %v1369_v39  ;;  %4320 = vmatprep.subr.mxu1 %v1757_v1  ;;  %v3038_v38 = vld [vmem:[%s6904_s5 + $0x30] sm:$0xff]  ;;  %v3053_v39 = vld [vmem:[%s6904_s5 + $0xa8] sm:$0xff] }
 0x21d   : > { %4321 = vmatpush3.msra.mxu1 %v1741_v2  ;;  %2672 = vmatprep.mubr.f32.mxu1 %v1349_v55  ;;  %v3037_v1 = vld [vmem:[%s6904_s5 + $0x28] sm:$0xff]  ;;  %v3052_v2 = vld [vmem:[%s6904_s5 + $0xa0] sm:$0xff]  ;;  %v3078_v55 = vld [vmem:[%s6904_s5 + $0x170] sm:$0xff] }
 0x21e   : > { %4322 = vmatprep.subr.mxu1 %v1756_v50  ;;  %4586 = vmatprep.subr.mxu0 %v1766_v4  ;;  %v3036_v50 = vld [vmem:[%s6904_s5 + $0x20] sm:$0xff] }
 0x21f   : > { %4323 = vmatpush3.msra.mxu1 %v1740_v3  ;;  %4587 = vmatpush3.msra.mxu0 %v1766_v4  ;;  %v3051_v3 = vld [vmem:[%s6904_s5 + $0x98] sm:$0xff]  ;;  %v3093_v4 = vld [vmem:[%s6904_s5 + $0x1e8] sm:$0xff] }
 0x220   : > { %4324 = vmatprep.subr.mxu1 %v1755_v41  ;;  %4588 = vmatprep.subr.mxu0 %v1765_v15  ;;  %v3035_v41 = vld [vmem:[%s6904_s5 + $0x18] sm:$0xff] }
 0x221   : > { %4325 = vmatpush3.msra.mxu1 %v1739_v42  ;;  %4589 = vmatpush3.msra.mxu0 %v1765_v15  ;;  %v3077_v42 = vld [vmem:[%s6904_s5 + $0x168] sm:$0xff]  ;;  %v3050_v15 = vld [vmem:[%s6904_s5 + $0x90] sm:$0xff] }
 0x222   : > { %4326 = vmatprep.subr.mxu1 %v1754_v19  ;;  %4590 = vmatprep.subr.mxu0 %v1764_v16  ;;  %v3092_v19 = vld [vmem:[%s6904_s5 + $0x1e0] sm:$0xff] }
 0x223   : > { %4327 = vmatpush3.msra.mxu1 %v1738_v5  ;;  %4591 = vmatpush3.msra.mxu0 %v1764_v16  ;;  %v3034_v5 = vld [vmem:[%s6904_s5 + $0x10] sm:$0xff]  ;;  %v3076_v16 = vld [vmem:[%s6904_s5 + $0x160] sm:$0xff] }
 0x224   : > { %4328 = vmatprep.subr.mxu1 %v1753_v18  ;;  %4592 = vmatprep.subr.mxu0 %v1763_v22  ;;  %v3049_v18 = vld [vmem:[%s6904_s5 + $0x88] sm:$0xff] }
 0x225   : > { %4329 = vmatpush3.msra.mxu1 %v1737_v21  ;;  %4593 = vmatpush3.msra.mxu0 %v1763_v22  ;;  %v3091_v21 = vld [vmem:[%s6904_s5 + $0x1d8] sm:$0xff]  ;;  %v3033_v22 = vld [vmem:[%s6904_s5 + $0x8] sm:$0xff] }
 0x226   : > { %4330 = vmatprep.subr.mxu1 %v1752_v23  ;;  %4594 = vmatprep.subr.mxu0 %v1762_v6  ;;  %v3075_v23 = vld [vmem:[%s6904_s5 + $0x158] sm:$0xff] }
 0x227   : > { %4331 = vmatpush3.msra.mxu1 %v1736_v24  ;;  %4595 = vmatpush3.msra.mxu0 %v1762_v6  ;;  %v3048_v24 = vld [vmem:[%s6904_s5 + $0x80] sm:$0xff]  ;;  %v3090_v6 = vld [vmem:[%s6904_s5 + $0x1d0] sm:$0xff] }
 0x228   : > { %4332 = vmatprep.subr.mxu1 %v1751_v51  ;;  %4596 = vmatprep.subr.mxu0 %v1761_v20  ;;  %v3032_v51 = vld [vmem:[%s6904_s5] sm:$0xff] }
 0x229   : > { %4333 = vmatpush3.msra.mxu1 %v1735_v7  ;;  %4597 = vmatpush3.msra.mxu0 %v1761_v20  ;;  %v2796_v7 = vld [vmem:[#allocation5 + $0x1] sm:$0x1f]  ;;  %v2798_v20 = vld [vmem:[#allocation5 + $0x8] sm:$0x1f] }
 0x22a   : > { %4334 = vmatprep.subr.mxu1 %v1750_v57  ;;  %4598 = vmatprep.subr.mxu0 %v1760_v9  ;;  %2797 = vst [vmem:[#allocation6 + $0x110] sm:$0x1f] %v2796_v7  ;;  %v2800_v57 = vrot.slane %v2798_v20, 3  ;;  %v2890_v20 = vld [vmem:[#allocation5 + $0x24] sm:$0x1f] }
 0x22b   : > { %4335 = vmatpush3.msra.mxu1 %v1734_v25  ;;  %4599 = vmatpush3.msra.mxu0 %v1760_v9  ;;  %v3074_v25 = vld [vmem:[%s6904_s5 + $0x150] sm:$0xff] }
 0x22c   : > { %4336 = vmatprep.subr.mxu1 %v1749_v30  ;;  %4601 = vmatmul.mubr.f32.vlgmr.msra.gmra.mxu0 %v1375_v63  ;;  %v2771_v9 = vld [vmem:[#allocation5] sm:$0x1f]  ;;  %v2773_v30 = vld [vmem:[#allocation5 + $0x7] sm:$0x1f]  ;;  %v3089_v63 = vld [vmem:[%s6904_s5 + $0x1c8] sm:$0xff] }
 0x22d   : > { %4337 = vmatpush3.msra.mxu1 %v1733_v34  ;;  %4416 = vmatprep.subr.mxu0 %v3095_v14  ;;  %2772 = vst [vmem:[#allocation6 + $0xc8] sm:$0x1f] %v2771_v9  ;;  %v2775_v34 = vrot.slane %v2773_v30, 3  ;;  %2802 = vst [vmem:[#allocation6 + $0x10] ss:$260 sps:$4 sm:$0xe3] %v2800_v57  }
 0x22e   : > { %4338 = vmatprep.subr.mxu1 %v1748_v17  ;;  %4417 = vmatpush3.msra.mxu0 %v3079_v59  ;;  %v3127_v17 = vld [vmem:[%s6904_s5 + $0x2f8] sm:$0xff]  ;;  %v3108_v14 = vld [vmem:[%s6904_s5 + $0x260] sm:$0xff]  ;;  %v3066_v59 = vld [vmem:[%s6904_s5 + $0x110] sm:$0xff]  ;;  %v2892_v9 = vrot.slane %v2890_v20, 4 }
 0x22f   : > { %4339 = vmatpush3.msra.mxu1 %v1732_v27  ;;  %4418 = vmatprep.subr.mxu0 %v3094_v13  ;;  %v3073_v27 = vld [vmem:[%s6904_s5 + $0x148] sm:$0xff]  ;;  %2777 = vst [vmem:[#allocation6 + $0x90] ss:$60 sps:$4 sm:$0xe3] %v2775_v34   ;;  %v2959_v30 = vld [vmem:[#allocation5 + $0x24] sm:$0x1f] }
 0x230   : > { %4340 = vmatprep.subr.mxu1 %v1747_v28  ;;  %4419 = vmatpush3.msra.mxu0 %v3078_v55  ;;  %v3088_v28 = vld [vmem:[%s6904_s5 + $0x1c0] sm:$0xff]  ;;  %v3081_v13 = vld [vmem:[%s6904_s5 + $0x188] sm:$0xff]  ;;  %v2865_v55 = vld [vmem:[#allocation5 + $0x23] sm:$0x1f] }
 0x231   : > { %4341 = vmatpush3.msra.mxu1 %v1731_v8  ;;  %4420 = vmatprep.subr.mxu0 %v3093_v4  ;;  %v3072_v8 = vld [vmem:[%s6904_s5 + $0x140] sm:$0xff]  ;;  %v2867_v4 = vrot.slane %v2865_v55, 4  ;;  %2894 = vst [vmem:[#allocation6 + $0x58] ss:$180 sps:$4 sm:$0xf1] %v2892_v9  }
 0x232   : > { %4342 = vmatprep.subr.mxu1 %v1746_v10  ;;  %4421 = vmatpush3.msra.mxu0 %v3077_v42  ;;  %v3087_v10 = vld [vmem:[%s6904_s5 + $0x1b8] sm:$0xff]  ;;  %v3120_v42 = vld [vmem:[%s6904_s5 + $0x2c0] sm:$0xff] }
 0x233   : > { %4343 = vmatpush3.msra.mxu1 %v1730_v37  ;;  %4422 = vmatprep.subr.mxu0 %v3092_v19  ;;  %v3071_v37 = vld [vmem:[%s6904_s5 + $0x138] sm:$0xff]  ;;  %2869 = vst [vmem:[#allocation6 + $0x38] ss:$180 sps:$4 sm:$0xf1] %v2867_v4   ;;  %v3100_v34 = vld [vmem:[%s6904_s5 + $0x220] sm:$0xff] }
 0x234   : > { %4344 = vmatprep.subr.mxu1 %v1745_v44  ;;  %4423 = vmatpush3.msra.mxu0 %v3076_v16  ;;  %v3086_v44 = vld [vmem:[%s6904_s5 + $0x1b0] sm:$0xff]  ;;  %v2896_v19 = vld [vmem:[#allocation5 + $0x9] sm:$0x1f] }
 0x235   : > { %4345 = vmatpush3.msra.mxu1 %v1729_v45  ;;  %4424 = vmatprep.subr.mxu0 %v3091_v21  ;;  %v3070_v45 = vld [vmem:[%s6904_s5 + $0x130] sm:$0xff]  ;;  %2897 = vst [vmem:[#allocation6 + $0x50] sm:$0x1f] %v2896_v19  ;;  %v3103_v16 = vld [vmem:[%s6904_s5 + $0x238] sm:$0xff] }
 0x236   : > { %4346 = vmatprep.subr.mxu1 %v1744_v40  ;;  %4425 = vmatpush3.msra.mxu0 %v3075_v23  ;;  %v3085_v40 = vld [vmem:[%s6904_s5 + $0x1a8] sm:$0xff]  ;;  %v3102_v23 = vld [vmem:[%s6904_s5 + $0x230] sm:$0xff] }
 0x237   : > { %4347 = vmatpush3.msra.mxu1 %v1728_v29  ;;  %4426 = vmatprep.subr.mxu0 %v3090_v6  ;;  %v3069_v29 = vld [vmem:[%s6904_s5 + $0x128] sm:$0xff]  ;;  %v2915_v6 = vld [vmem:[#allocation5 + $0x25] sm:$0x1f] }
 0x238   : > { %2673 = vmatmul.mubr.f32.vlgmr.msra.gmra.mxu1 %v1348_v47  ;;  %4372 = vmatprep.subr.mxu1 %v3063_v32  ;;  %v3111_v47 = vld [vmem:[%s6904_s5 + $0x278] sm:$0xff]  ;;  %v2996_v32 = vld [vmem:[#allocation6 + $0xc8] sm:$0xff]  ;;  %v2917_v7 = vrot.slane %v2915_v6, 4 }
 0x239   : > { %2677 = vmatprep.mubr.f32.mxu1 %v1374_v33  ;;  %4373 = vmatpush3.msra.mxu1 %v3047_v52  ;;  %v2997_v33 = vld [vmem:[#allocation6 + $0x110] sm:$0xff]  ;;  %v3126_v52 = vld [vmem:[%s6904_s5 + $0x2f0] sm:$0xff] }
 0x23a   : > { %4374 = vmatprep.subr.mxu1 %v3062_v53  ;;  %4427 = vmatpush3.msra.mxu0 %v3074_v25  ;;  %v3068_v53 = vld [vmem:[%s6904_s5 + $0x120] sm:$0xff]  ;;  %2919 = vst [vmem:[#allocation6 + $0xd8] ss:$-116 sps:$4 sm:$0xf1] %v2917_v7  }
 0x23b   : > { %4375 = vmatpush3.msra.mxu1 %v3046_v54  ;;  %4428 = vmatprep.subr.mxu0 %v3089_v63  ;;  %v3110_v54 = vld [vmem:[%s6904_s5 + $0x270] sm:$0xff]  ;;  %v3116_v25 = vld [vmem:[%s6904_s5 + $0x2a0] sm:$0xff]  ;;  %v2961_v63 = vrot.slane %v2959_v30, 1 }
 0x23c   : > { %2678 = vmatmul.mubr.f32.gmra.mxu1 %v1373_v48  ;;  %4376 = vmatprep.subr.mxu1 %v3061_v35  ;;  %v3084_v48 = vld [vmem:[%s6904_s5 + $0x1a0] sm:$0xff]  ;;  %v3083_v35 = vld [vmem:[%s6904_s5 + $0x198] sm:$0xff] }
 0x23d   : > { %4377 = vmatpush3.msra.mxu1 %v3045_v36  ;;  %4429 = vmatpush3.msra.mxu0 %v3073_v27  ;;  %v3125_v36 = vld [vmem:[%s6904_s5 + $0x2e8] sm:$0xff]  ;;  %v2984_v27 = vld [vmem:[#allocation5 + $0x25] sm:$0x1f]  ;;  %2963 = vst [vmem:[#allocation6 + $0x68] ss:$180 sps:$4 sm:$0x8f] %v2961_v63  }
 0x23e   : > { %4378 = vmatprep.subr.mxu1 %v3060_v56  ;;  %4430 = vmatprep.subr.mxu0 %v3088_v28  ;;  %v3067_v56 = vld [vmem:[%s6904_s5 + $0x118] sm:$0xff] }
 0x23f   : > { %4379 = vmatpush3.msra.mxu1 %v3044_v12  ;;  %4431 = vmatpush3.msra.mxu0 %v3072_v8  ;;  %v3109_v12 = vld [vmem:[%s6904_s5 + $0x268] sm:$0xff]  ;;  %v3115_v8 = vld [vmem:[%s6904_s5 + $0x298] sm:$0xff] }
 0x240   : > { %4380 = vmatprep.subr.mxu1 %v3059_v43  ;;  %4432 = vmatprep.subr.mxu0 %v3087_v10  ;;  %v3082_v43 = vld [vmem:[%s6904_s5 + $0x190] sm:$0xff] }
 0x241   : > { %4381 = vmatpush3.msra.mxu1 %v3043_v46  ;;  %4433 = vmatpush3.msra.mxu0 %v3071_v37  ;;  %v3124_v46 = vld [vmem:[%s6904_s5 + $0x2e0] sm:$0xff]  ;;  %v2986_v37 = vrot.slane %v2984_v27, 1 }
 0x242   : > { %4382 = vmatprep.subr.mxu1 %v3058_v60  ;;  %4434 = vmatprep.subr.mxu0 %v3086_v44  ;;  %v3123_v60 = vld [vmem:[%s6904_s5 + $0x2d8] sm:$0xff] }
 0x243   : > { %4383 = vmatpush3.msra.mxu1 %v3042_v61  ;;  %4435 = vmatpush3.msra.mxu0 %v3070_v45  ;;  %v2846_v61 = vld [vmem:[#allocation5 + $0x7] sm:$0x1f]  ;;  %2988 = vst [vmem:[#allocation6 + $0xb8] ss:$28 sps:$4 sm:$0x8f] %v2986_v37  }
 0x244   : > { %4384 = vmatprep.subr.mxu1 %v3057_v26  ;;  %3247 = vmatprep.mubr.f32.mxu1 %v2997_v33  ;;  %v3065_v26 = vld [vmem:[%s6904_s5 + $0x108] sm:$0xff]  ;;  %2847 = vst [vmem:[#allocation6 + $0xf8] sm:$0x1f] %v2846_v61  ;;  %v3099_v44 = vld [vmem:[%s6904_s5 + $0x218] sm:$0xff]  ;;  %v3114_v45 = vld [vmem:[%s6904_s5 + $0x290] sm:$0xff] }
 0x245   : > { %4385 = vmatpush3.msra.mxu1 %v3041_v31  ;;  %4436 = vmatprep.subr.mxu0 %v3085_v40  ;;  %v2821_v31 = vld [vmem:[#allocation5 + $0x2] sm:$0x1f]  ;;  %v3113_v33 = vld [vmem:[%s6904_s5 + $0x288] sm:$0xff] }
 0x246   : > { %4386 = vmatprep.subr.mxu1 %v3056_v62  ;;  %4437 = vmatpush3.msra.mxu0 %v3069_v29  ;;  %v2823_v62 = vld [vmem:[#allocation5 + $0x9] sm:$0x1f]  ;;  %2822 = vst [vmem:[#allocation6 + $0x70] sm:$0x1f] %v2821_v31  ;;  %v3098_v40 = vld [vmem:[%s6904_s5 + $0x210] sm:$0xff] }
 0x247   : > { %4387 = vmatpush3.msra.mxu1 %v3040_v0  ;;  %4438 = vmatprep.subr.mxu0 %v3084_v48  ;;  %v3107_v0 = vld [vmem:[%s6904_s5 + $0x258] sm:$0xff]  ;;  %v3112_v48 = vld [vmem:[%s6904_s5 + $0x280] sm:$0xff] }
 0x248   : > { %4388 = vmatprep.subr.mxu1 %v3055_v49  ;;  %4439 = vmatpush3.msra.mxu0 %v3068_v53  ;;  %v3080_v49 = vld [vmem:[%s6904_s5 + $0x180] sm:$0xff] }
 0x249   : > { %4389 = vmatpush3.msra.mxu1 %v3039_v58  ;;  %4440 = vmatprep.subr.mxu0 %v3083_v35  ;;  %v2825_v58 = vrot.slane %v2823_v62, 3  ;;  %v2990_v31 = vld [vmem:[#allocation5 + $0x2c] sm:$0x1f] }
 0x24a   : > { %4390 = vmatprep.subr.mxu1 %v3054_v11  ;;  %4441 = vmatpush3.msra.mxu0 %v3067_v56  ;;  %v6657_v11 = vpop.f32.mrf.mxu1 }
 0x24b   : > { %4391 = vmatpush3.msra.mxu1 %v3038_v38  ;;  %4442 = vmatprep.subr.mxu0 %v3082_v43  ;;  %v3122_v38 = vld [vmem:[%s6904_s5 + $0x2d0] sm:$0xff]  ;;  %2827 = vst [vmem:[#allocation6 + $0x28] ss:$76 sps:$4 sm:$0xe3] %v2825_v58  }
 0x24c   : > { %4392 = vmatprep.subr.mxu1 %v3053_v39  ;;  %4443 = vmatpush3.msra.mxu0 %v3066_v59  ;;  %v3064_v39 = vld [vmem:[%s6904_s5 + $0x100] sm:$0xff] }
 0x24d   : > { %4393 = vmatpush3.msra.mxu1 %v3037_v1  ;;  %4444 = vmatprep.subr.mxu0 %v3081_v13  ;;  %v3106_v1 = vld [vmem:[%s6904_s5 + $0x250] sm:$0xff] }
 0x24e   : > { %4394 = vmatprep.subr.mxu1 %v3052_v2  ;;  %4445 = vmatpush3.msra.mxu0 %v3065_v26  ;;  %v3159_v2 = vld [vmem:[%s6904_s5 + $0x3f8] sm:$0xff] }
 0x24f   : > { %4395 = vmatpush3.msra.mxu1 %v3036_v50  ;;  %v3121_v50 = vld [vmem:[%s6904_s5 + $0x2c8] sm:$0xff]  ;;  %4446 = vmatprep.subr.mxu0 %v3080_v49  ;;  %v2992_v49 = vrot.slane %v2990_v31, 4 }
 0x250   : > { %4396 = vmatprep.subr.mxu1 %v3051_v3  ;;  %v3105_v3 = vld [vmem:[%s6904_s5 + $0x248] sm:$0xff]  ;;  %4447 = vmatpush3.msra.mxu0 %v3064_v39 }
 0x251   : > { %4397 = vmatpush3.msra.mxu1 %v3035_v41  ;;  %v6677_v41 = vpop.f32.mrf.mxu1  ;;  %4504 = vmatprep.subr.mxu0 %v3159_v2  ;;  %2994 = vst [vmem:[#allocation6 + $0xb0] ss:$12 sps:$4 sm:$0xf1] %v2992_v49  }
 0x252   : > { %4398 = vmatprep.subr.mxu1 %v3050_v15  ;;  %v3104_v15 = vld [vmem:[%s6904_s5 + $0x240] sm:$0xff]  ;;  %v3932_v4 = vadd.f32 %v6677_v41, %v6657_v11 }
 0x253   : > { %4399 = vmatpush3.msra.mxu1 %v3034_v5  ;;  %v3119_v5 = vld [vmem:[%s6904_s5 + $0x2b8] sm:$0xff]  ;;  %v6691_v21 = vpop.f32.mrf.mxu1 }
 0x254   : > { %4400 = vmatprep.subr.mxu1 %v3049_v18  ;;  %v2871_v18 = vld [vmem:[#allocation5 + $0x8] sm:$0x1f] }
 0x255   : > { %4401 = vmatpush3.msra.mxu1 %v3033_v22  ;;  %v3118_v22 = vld [vmem:[%s6904_s5 + $0x2b0] sm:$0xff]  ;;  %2872 = vst [vmem:[#allocation6 + $0x78] sm:$0x1f] %v2871_v18  ;;  %v6705_v57 = vpop.f32.mrf.mxu1 }
 0x256   : > { %4402 = vmatprep.subr.mxu1 %v3048_v24  ;;  %v3117_v24 = vld [vmem:[%s6904_s5 + $0x2a8] sm:$0xff]  ;;  %v3935_v18 = vadd.f32 %v6705_v57, %v6691_v21 }
 0x257   : > { %4403 = vmatpush3.msra.mxu1 %v3032_v51  ;;  %v3101_v51 = vld [vmem:[%s6904_s5 + $0x228] sm:$0xff]  ;;  %v3968_v28 = vpop.f32.mrf.mxu1 }
 0x258   : > { %4460 = vmatprep.subr.mxu1 %v3127_v17  ;;  %3248 = vmatmul.mubr.f32.vlgmr.msra.gmra.mxu1 %v2996_v32  ;;  %v2934_v17 = vld [vmem:[#allocation5 + $0x23] sm:$0x1f]  ;;  %v3096_v32 = vld [vmem:[%s6904_s5 + $0x200] sm:$0xff] }
 0x259   : > { %4461 = vmatpush3.msra.mxu1 %v3111_v47  ;;  %v2936_v10 = vrot.slane %v2934_v17, 1  ;;  %v3969_v29 = vpop.f32.mrf.mxu1  ;;  %v3097_v47 = vld [vmem:[%s6904_s5 + $0x208] sm:$0xff] }
 0x25a   : > { %4462 = vmatprep.subr.mxu1 %v3126_v52  ;;  %v4006_v52 = vpop.f32.mrf.mxu0  ;;  %v3970_v19 = vadd.f32 %v3969_v29, %v3968_v28 }
 0x25b   : > { %4463 = vmatpush3.msra.mxu1 %v3110_v54  ;;  %2938 = vst [vmem:[#allocation6 + $0xc0] ss:$-28 sps:$4 sm:$0x8f] %v2936_v10   ;;  %v3971_v53 = vpop.f32.mrf.mxu1  ;;  %v6740_v54 = vld [vmem:[%s6904_s5 + $0x478] sm:$0xff] }
 0x25c   : > { %4464 = vmatprep.subr.mxu1 %v3125_v36  ;;  %v4007_v35 = vpop.f32.mrf.mxu0 }
 0x25d   : > { %4465 = vmatpush3.msra.mxu1 %v3109_v12  ;;  %v3972_v36 = vpop.f32.mrf.mxu1  ;;  %v4008_v7 = vadd.f32 %v4007_v35, %v4006_v52 }
 0x25e   : > { %4466 = vmatprep.subr.mxu1 %v3124_v46  ;;  %v4009_v12 = vpop.f32.mrf.mxu0  ;;  %v2965_v46 = vld [vmem:[#allocation5 + $0x2b] sm:$0x1f] }
 0x25f   : > { %4467 = vmatpush3.msra.mxu1 %v3108_v14  ;;  %v2967_v59 = vrot.slane %v2965_v46, 4 }
 0x260   : > { %4468 = vmatprep.subr.mxu1 %v3123_v60  ;;  %v4010_v14 = vpop.f32.mrf.mxu0  ;;  %v2940_v60 = vld [vmem:[#allocation5 + $0x2a] sm:$0x1f] }
 0x261   : > { %4469 = vmatpush3.msra.mxu1 %v3107_v0  ;;  %v2942_v13 = vrot.slane %v2940_v60, 4  ;;  %2969 = vst [vmem:[#allocation6 + $0x98] ss:$-44 sps:$4 sm:$0xf1] %v2967_v59   ;;  %v4011_v30 = vadd.f32 %v4010_v14, %v4009_v12 }
 0x262   : > { %4470 = vmatprep.subr.mxu1 %v3122_v38  ;;  %v4082_v61 = vpop.f32.mrf.mxu0 }
 0x263   : > { %4471 = vmatpush3.msra.mxu1 %v3106_v1  ;;  %2944 = vst [vmem:[#allocation6 + $0x30] ss:$148 sps:$4 sm:$0xf1] %v2942_v13  }
 0x264   : > { %4472 = vmatprep.subr.mxu1 %v3121_v50  ;;  %v4083_v62 = vpop.f32.mrf.mxu0 }
 0x265   : > { %4473 = vmatpush3.msra.mxu1 %v3105_v3  ;;  %v4084_v28 = vadd.f32 %v4083_v62, %v4082_v61 }
 0x266   : > { %4474 = vmatprep.subr.mxu1 %v3120_v42  ;;  %v4085_v38 = vpop.f32.mrf.mxu0  ;;  %v3680_v42 = vld [vmem:[%s6903_s4] ss:$0 sm:$0xff] }
 0x267   : > { %4475 = vmatpush3.msra.mxu1 %v3104_v15 }
 0x268   : > { %4476 = vmatprep.subr.mxu1 %v3119_v5  ;;  %v4086_v1 = vpop.f32.mrf.mxu0 }
 0x269   : > { %4477 = vmatpush3.msra.mxu1 %v3103_v16  ;;  %v1850_v16 = vadd.f32 %v3932_v4, %v3680_v42 }
 0x26a   : > { %4478 = vmatprep.subr.mxu1 %v3118_v22 }
 0x26b   : > { %4479 = vmatpush3.msra.mxu1 %v3102_v23  ;;  %v1925_v23 = vadd.f32 %v3970_v19, %v1850_v16 }
 0x26c   : > { %4480 = vmatprep.subr.mxu1 %v3117_v24  ;;  %v3973_v24 = vadd.f32 %v3972_v36, %v3971_v53 }
 0x26d   : > { %4481 = vmatpush3.msra.mxu1 %v3101_v51  ;;  %v1855_v51 = vadd.f32 %v3935_v18, %v3680_v42  ;;  %v2000_v9 = vadd.f32 %v4008_v7, %v1925_v23 }
 0x26e   : > { %4482 = vmatprep.subr.mxu1 %v3116_v25  ;;  %v4044_v56 = vpop.f32.mrf.mxu1 }
 0x26f   : > { %4483 = vmatpush3.msra.mxu1 %v3100_v34  ;;  %v1930_v41 = vadd.f32 %v3973_v24, %v1855_v51 }
 0x270   : > { %4484 = vmatprep.subr.mxu1 %v3115_v8  ;;  %v4045_v43 = vpop.f32.mrf.mxu1 }
 0x271   : > { %4485 = vmatpush3.msra.mxu1 %v3099_v44  ;;  %v4046_v20 = vadd.f32 %v4045_v43, %v4044_v56  ;;  %v2005_v8 = vadd.f32 %v4011_v30, %v1930_v41 }
 0x272   : > { %4486 = vmatprep.subr.mxu1 %v3114_v45  ;;  %v4087_v45 = vadd.f32 %v4086_v1, %v4085_v38 }
 0x273   : > { %4487 = vmatpush3.msra.mxu1 %v3098_v40  ;;  %v4047_v26 = vpop.f32.mrf.mxu1  ;;  %v2075_v34 = vadd.f32 %v4046_v20, %v2000_v9 }
 0x274   : > { %4488 = vmatprep.subr.mxu1 %v3113_v33 }
 0x275   : > { %4489 = vmatpush3.msra.mxu1 %v3097_v47  ;;  %v4048_v0 = vpop.f32.mrf.mxu1  ;;  %v2150_v44 = vadd.f32 %v4084_v28, %v2075_v34 }
 0x276   : > { %4490 = vmatprep.subr.mxu1 %v3112_v48  ;;  %v4049_v63 = vadd.f32 %v4048_v0, %v4047_v26 }
 0x277   : > { %4491 = vmatpush3.msra.mxu1 %v3096_v32 }
 0x278   : > { %4603 = vmatprep.subr.mxu1 %v6740_v54  ;;  %v2080_v37 = vadd.f32 %v4049_v63, %v2005_v8 }
 0x27a   : > { %v2155_v32 = vadd.f32 %v4087_v45, %v2080_v37 }
 0x27c   : > { %v4158_v2 = vpop.f32.mrf.mxu0 }
 0x27e   : > { %v4159_v55 = vpop.f32.mrf.mxu0 }
 0x27f   : > { %v4160_v48 = vadd.f32 %v4159_v55, %v4158_v2 }
 0x281   : > { %v4161_v5 = vpop.f32.mrf.mxu0 }
 0x283   : > { %v4162_v6 = vpop.f32.mrf.mxu0 }
 0x284   : > { %v4163_v12 = vadd.f32 %v4162_v6, %v4161_v5 }
 0x292   : > { %v4120_v58 = vpop.f32.mrf.mxu1 }
 0x294   : > { %v4121_v39 = vpop.f32.mrf.mxu1 }
 0x295   : > { %v4122_v10 = vadd.f32 %v4121_v39, %v4120_v58 }
 0x297   : > { %v4123_v50 = vpop.f32.mrf.mxu1  ;;  %v2225_v40 = vadd.f32 %v4122_v10, %v2150_v44 }
 0x299   : > { %v4124_v3 = vpop.f32.mrf.mxu1  ;;  %v2300_v36 = vadd.f32 %v4160_v48, %v2225_v40 }
 0x29a   : > { %v4125_v29 = vadd.f32 %v4124_v3, %v4123_v50 }
 0x29c   : > { %v2230_v35 = vadd.f32 %v4125_v29, %v2155_v32 }
 0x29e   : > { %v2305_v60 = vadd.f32 %v4163_v12, %v2230_v35 }
 0x2a0   : > { %v4234_v25 = vpop.f32.mrf.mxu0 }
 0x2a2   : > { %v4235_v17 = vpop.f32.mrf.mxu0 }
 0x2a3   : > { %v4236_v59 = vadd.f32 %v4235_v17, %v4234_v25 }
 0x2a5   : > { %v4237_v21 = vpop.f32.mrf.mxu0 }
 0x2a7   : > { %v4238_v33 = vpop.f32.mrf.mxu0 }
 0x2a8   : > { %v4239_v62 = vadd.f32 %v4238_v33, %v4237_v21 }
 0x2b6   : > { %v4196_v15 = vpop.f32.mrf.mxu1 }
 0x2b8   : > { %v4197_v22 = vpop.f32.mrf.mxu1 }
 0x2b9   : > { %v4198_v52 = vadd.f32 %v4197_v22, %v4196_v15 }
 0x2bb   : > { %v4199_v11 = vpop.f32.mrf.mxu1  ;;  %v2375_v43 = vadd.f32 %v4198_v52, %v2300_v36 }
 0x2bd   : > { %v4200_v27 = vpop.f32.mrf.mxu1  ;;  %v2450_v0 = vadd.f32 %v4236_v59, %v2375_v43 }
 0x2be   : > { %v4201_v46 = vadd.f32 %v4200_v27, %v4199_v11 }
 0x2c0   : > { %v2380_v31 = vadd.f32 %v4201_v46, %v2305_v60 }
 0x2c2   : > { %v2455_v1 = vadd.f32 %v4239_v62, %v2380_v31  ;;  %v2998_v62 = vld [vmem:[#allocation6 + $0x70] sm:$0xff] }
 0x2c4   : > { %v4310_v53 = vpop.f32.mrf.mxu0 }
 0x2c6   : > { %v4311_v14 = vpop.f32.mrf.mxu0 }
 0x2c7   : > { %v4312_v2 = vadd.f32 %v4311_v14, %v4310_v53 }
 0x2c8   : > { %v4313_v26 = vpop.f32.mrf.mxu0 }
 0x2ca   : > { %v4314_v38 = vpop.f32.mrf.mxu0 }
 0x2cb   : > { %v4315_v4 = vadd.f32 %v4314_v38, %v4313_v26 }
 0x2d8   : > { %v4272_v57 = vpop.f32.mrf.mxu1 }
 0x2da   : > { %v4273_v47 = vpop.f32.mrf.mxu1 }
 0x2db   : > { %v4274_v13 = vadd.f32 %v4273_v47, %v4272_v57 }
 0x2dc   : > { %v4275_v56 = vpop.f32.mrf.mxu1 }
 0x2dd   : > { %v2525_v49 = vadd.f32 %v4274_v13, %v2450_v0  ;;  %v3143_v0 = vld [vmem:[%s6904_s5 + $0x378] sm:$0xff] }
 0x2de   : > { %v4276_v61 = vpop.f32.mrf.mxu1 }
 0x2df   : > { %v4277_v58 = vadd.f32 %v4276_v61, %v4275_v56  ;;  %v2600_v15 = vadd.f32 %v4312_v2, %v2525_v49 }
 0x2e1   : > { %v2530_v3 = vadd.f32 %v4277_v58, %v2455_v1 }
 0x2e3   : > { %v2605_v22 = vadd.f32 %v4315_v4, %v2530_v3 }
 0x2ec   : > { %v4602_v55 = vpop.f32.mrf.mxu0 }
 0x2ee   : > { %v2749_v16 = vpop.f32.mrf.mxu0 }
 0x2f8   : > { %v4348_v39 = vpop.f32.mrf.mxu1 }
 0x2fa   : > { %v4349_v50 = vpop.f32.mrf.mxu1 }
 0x2fb   : > { %v4350_v42 = vadd.f32 %v4349_v50, %v4348_v39 }
 0x2fc   : > { %v4351_v19 = vpop.f32.mrf.mxu1 }
 0x2fd   : > { %v2675_v5 = vadd.f32 %v4350_v42, %v2600_v15 }
 0x2fe   : > { %v4352_v18 = vpop.f32.mrf.mxu1 }
 0x2ff   : > { %v2750_v23 = vadd.f32 %v2749_v16, %v2675_v5  ;;  %v4353_v24 = vadd.f32 %v4352_v18, %v4351_v19  ;;  %v3158_v19 = vld [vmem:[%s6904_s5 + $0x3f0] sm:$0xff] }
 0x301   : > { %v2758_v6 = vmax.f32 %v2750_v23, 0.0  ;;  %v2680_v51 = vadd.f32 %v4353_v24, %v2605_v22  ;;  %v3142_v22 = vld [vmem:[%s6904_s5 + $0x370] sm:$0xff] }
 0x303   : > { %2767 = vst [vmem:[#allocation5 + $0x10] ss:$12 sps:$4 sm:$0xc7] %v2758_v6   ;;  %2768 = vst [vmem:[#allocation5 + $0x14] sm:$0x38] %v2758_v6  ;;  %v2755_v7 = vadd.f32 %v4602_v55, %v2680_v51  ;;  %v3157_v51 = vld [vmem:[%s6904_s5 + $0x3e8] sm:$0xff] }
 0x305   : > { %v2759_v20 = vmax.f32 %v2755_v7, 0.0 }
 0x307   : > { %2770 = vst [vmem:[#allocation5 + $0x20] sm:$0x1] %v2759_v20  ;;  %v3141_v20 = vld [vmem:[%s6904_s5 + $0x368] sm:$0xff] }
 0x30a   : > { %v2873_v25 = vld [vmem:[#allocation5 + $0xf] sm:$0x1f]  ;;  %v2923_v41 = vld [vmem:[#allocation5 + $0x15] sm:$0x1f] }
 0x30b   : > { %v2921_v11 = vld [vmem:[#allocation5 + $0xe] sm:$0x1f]  ;;  %v2875_v9 = vrot.slane %v2873_v25, 3  ;;  %v2925_v30 = vrot.slane %v2923_v41, 3  ;;  %v2809_v63 = vld [vmem:[#allocation5 + $0x16] sm:$0x1f] }
 0x30c   : > { %2922 = vst [vmem:[#allocation6 + $0xe0] sm:$0x1f] %v2921_v11  ;;  %v2804_v34 = vld [vmem:[#allocation5 + $0xf] sm:$0x1f]  ;;  %v2811_v27 = vrot.slane %v2809_v63, 1 }
 0x30d   : > { %v2806_v17 = vrot.slane %v2804_v34, 6  ;;  %v2848_v28 = vld [vmem:[#allocation5 + $0xe] sm:$0x1f]  ;;  %2877 = vst [vmem:[#allocation6 + $0x80] ss:$-4 sps:$4 sm:$0xe3] %v2875_v9  }
 0x30e   : > { %v2779_v8 = vld [vmem:[#allocation5 + $0xe] sm:$0x1f]  ;;  %2927 = vst [vmem:[#allocation6 + $0xa0] ss:$68 sps:$4 sm:$0xe3] %v2925_v30   ;;  %v2850_v10 = vrot.slane %v2848_v28, 3 }
 0x30f   : > { %v2781_v21 = vrot.slane %v2779_v8, 6  ;;  %v2784_v57 = vld [vmem:[#allocation5 + $0x15] sm:$0x1f]  ;;  %2808 = vst [vmem:[#allocation6 + $0x10] sm:$0x7c] %v2806_v17  ;;  %v3155_v34 = vld [vmem:[%s6904_s5 + $0x3d8] sm:$0xff] }
 0x310   : > { %v2854_v37 = vld [vmem:[#allocation5 + $0x15] sm:$0x1f]  ;;  %2813 = vst [vmem:[#allocation6 + $0x100] ss:$-236 sps:$4 sm:$0x8f] %v2811_v27   ;;  %v2786_v44 = vrot.slane %v2784_v57, 1 }
 0x311   : > { %v2815_v45 = vld [vmem:[#allocation5 + $0x1d] sm:$0x1f]  ;;  %v2856_v40 = vrot.slane %v2854_v37, 6  ;;  %2852 = vst [vmem:[#allocation6 + $0x88] ss:$116 sps:$4 sm:$0xe3] %v2850_v10  }
 0x312   : > { %v2859_v29 = vld [vmem:[#allocation5 + $0x1c] sm:$0x1f]  ;;  %2783 = vst [vmem:[#allocation6 + $0x90] sm:$0x7c] %v2781_v21  ;;  %v2817_v33 = vrot.slane %v2815_v45, 4  ;;  %v3156_v41 = vld [vmem:[%s6904_s5 + $0x3e0] sm:$0xff] }
 0x313   : > { %v2861_v47 = vrot.slane %v2859_v29, 1  ;;  %v2790_v48 = vld [vmem:[#allocation5 + $0x1c] sm:$0x1f]  ;;  %v2829_v32 = vld [vmem:[#allocation5 + $0x10] sm:$0x1f]  ;;  %v3139_v17 = vld [vmem:[%s6904_s5 + $0x358] sm:$0xff] }
 0x314   : > { %2788 = vst [vmem:[#allocation6 + $0xf0] ss:$-92 sps:$4 sm:$0x8f] %v2786_v44   ;;  %2858 = vst [vmem:[#allocation6 + $0x88] sm:$0x7c] %v2856_v40  ;;  %v2792_v52 = vrot.slane %v2790_v48, 4 }
 0x315   : > { %v2831_v53 = vrot.slane %v2829_v32, 6  ;;  %v2834_v35 = vld [vmem:[#allocation5 + $0x17] sm:$0x1f]  ;;  %v2840_v36 = vld [vmem:[#allocation5 + $0x1e] sm:$0x1f]  ;;  %v3151_v32 = vld [vmem:[%s6904_s5 + $0x3b8] sm:$0xff] }
 0x316   : > { %2819 = vst [vmem:[#allocation6 + $0xa8] ss:$92 sps:$4 sm:$0xf1] %v2817_v33   ;;  %2863 = vst [vmem:[#allocation6 + $0xe8] ss:$-92 sps:$4 sm:$0x8f] %v2861_v47  }
 0x317   : > { %v2836_v56 = vrot.slane %v2834_v35, 1  ;;  %v2842_v12 = vrot.slane %v2840_v36, 4  ;;  %v2898_v43 = vld [vmem:[#allocation5 + $0x10] sm:$0x1f]  ;;  %v2904_v46 = vld [vmem:[#allocation5 + $0x17] sm:$0x1f] }
 0x318   : > { %2794 = vst [vmem:[#allocation6 + $0x40] ss:$180 sps:$4 sm:$0xf1] %v2792_v52   ;;  %2833 = vst [vmem:[#allocation6 + $0x28] sm:$0x7c] %v2831_v53  ;;  %v2900_v14 = vrot.slane %v2898_v43, 3 }
 0x319   : > { %v2906_v59 = vrot.slane %v2904_v46, 6  ;;  %v2909_v60 = vld [vmem:[#allocation5 + $0x1e] sm:$0x1f]  ;;  %v2946_v13 = vld [vmem:[#allocation5 + $0xf] sm:$0x1f] }
 0x31a   : > { %2838 = vst [vmem:[#allocation6 + $0x48] ss:$-28 sps:$4 sm:$0x8f] %v2836_v56   ;;  %2844 = vst [vmem:[#allocation6] ss:$76 sps:$4 sm:$0xf1] %v2842_v12  }
 0x31b   : > { %v2911_v61 = vrot.slane %v2909_v60, 1  ;;  %2947 = vst [vmem:[#allocation6 + $0x8] sm:$0x1f] %v2946_v13  ;;  %v2948_v26 = vld [vmem:[#allocation5 + $0x16] sm:$0x1f]  ;;  %v3006_v39 = vld [vmem:[#allocation6 + $0x10] sm:$0xff] }
 0x31c   : > { %v2879_v31 = vld [vmem:[#allocation5 + $0x16] sm:$0x1f]  ;;  %2902 = vst [vmem:[#allocation6 + $0x20] ss:$52 sps:$4 sm:$0xe3] %v2900_v14   ;;  %v2950_v49 = vrot.slane %v2948_v26, 3  ;;  %3252 = vmatprep.mubr.f32.mxu1 %v3006_v39 }
 0x31d   : > { %2908 = vst [vmem:[#allocation6 + $0x20] sm:$0x7c] %v2906_v59  ;;  %v2881_v58 = vrot.slane %v2879_v31, 6  ;;  %v2884_v38 = vld [vmem:[#allocation5 + $0x1d] sm:$0x1f]  ;;  %v2999_v55 = vld [vmem:[#allocation6 + $0xf8] sm:$0xff] }
 0x31e   : > { %2913 = vst [vmem:[#allocation6 + $0x60] ss:$-60 sps:$4 sm:$0x8f] %v2911_v61   ;;  %v2886_v1 = vrot.slane %v2884_v38, 1  ;;  %v2971_v2 = vld [vmem:[#allocation5 + $0x10] sm:$0x1f]  ;;  %3332 = vmatprep.mubr.f32.mxu0 %v2999_v55 }
 0x31f   : > { %v2973_v50 = vld [vmem:[#allocation5 + $0x17] sm:$0x1f]  ;;  %2952 = vst [vmem:[#allocation6 + $0x118] ss:$-268 sps:$4 sm:$0xe3] %v2950_v49   ;;  %v3005_v15 = vld [vmem:[#allocation6 + $0x90] sm:$0xff]  ;;  %3333 = vmatmul.mubr.f32.vlgmr.msra.gmra.mxu0 %v2998_v62 }
 0x320   : > { %2883 = vst [vmem:[#allocation6 + $0x80] sm:$0x7c] %v2881_v58  ;;  %2972 = vst [vmem:[#allocation6 + $0x18] sm:$0x1f] %v2971_v2  ;;  %v2975_v3 = vrot.slane %v2973_v50, 3  ;;  %3253 = vmatmul.mubr.f32.gmra.mxu1 %v3005_v15  ;;  %v3015_v23 = vld [vmem:[#allocation6 + $0x100] sm:$0xff]  ;;  %4505 = vmatpush3.msra.mxu0 %v3143_v0 }
 0x321   : > { %v2954_v4 = vld [vmem:[#allocation5 + $0x1d] sm:$0x1f]  ;;  %2888 = vst [vmem:[#allocation6 + $0x108] ss:$-132 sps:$4 sm:$0x8f] %v2886_v1   ;;  %3257 = vmatprep.mubr.f32.mxu1 %v3015_v23  ;;  %v3014_v7 = vld [vmem:[#allocation6 + $0xf0] sm:$0xff]  ;;  %4506 = vmatprep.subr.mxu0 %v3158_v19 }
 0x322   : > { %v2929_v42 = vld [vmem:[#allocation5 + $0x1c] sm:$0x1f]  ;;  %v2956_v5 = vrot.slane %v2954_v4, 6  ;;  %2977 = vst [vmem:[#allocation6 + $0xd0] ss:$-180 sps:$4 sm:$0xe3] %v2975_v3   ;;  %4507 = vmatpush3.msra.mxu0 %v3142_v22 }
 0x323   : > { %v2931_v16 = vrot.slane %v2929_v42, 6  ;;  %v2979_v18 = vld [vmem:[#allocation5 + $0x1e] sm:$0x1f]  ;;  %4508 = vmatprep.subr.mxu0 %v3157_v51  ;;  %v3140_v30 = vld [vmem:[%s6904_s5 + $0x360] sm:$0xff]  ;;  %v3023_v63 = vld [vmem:[#allocation6 + $0x40] sm:$0x1] }
 0x324   : > { %v3008_v24 = vld [vmem:[#allocation6 + $0x88] sm:$0xff]  ;;  %v2981_v6 = vrot.slane %v2979_v18, 6  ;;  %2958 = vst [vmem:[#allocation6 + $0x118] sm:$0x7c] %v2956_v5  ;;  %3258 = vmatmul.mubr.f32.gmra.mxu1 %v3014_v7  ;;  %4509 = vmatpush3.msra.mxu0 %v3141_v20  ;;  %v3026_v8 = vld [vmem:[#allocation6 + $0x38] sm:$0x1] }
 0x325   : > { %2933 = vst [vmem:[#allocation6 + $0xa0] sm:$0x7c] %v2931_v16  ;;  %3337 = vmatprep.mubr.f32.mxu0 %v3008_v24  ;;  %v3007_v25 = vld [vmem:[#allocation6 + $0x28] sm:$0xff]  ;;  %4510 = vmatprep.subr.mxu0 %v3156_v41  ;;  %v3001_v10 = vld [vmem:[#allocation6 + $0x50] sm:$0xff]  ;;  %v3153_v57 = vld [vmem:[%s6904_s5 + $0x3c8] sm:$0xff] }
 0x326   : > { %2983 = vst [vmem:[#allocation6 + $0xd0] sm:$0x7c] %v2981_v6  ;;  %v3024_v11 = vld [vmem:[#allocation6 + $0xa8] sm:$0x1]  ;;  %3338 = vmatmul.mubr.f32.gmra.mxu0 %v3007_v25  ;;  %v3000_v37 = vld [vmem:[#allocation6 + $0x78] sm:$0xff]  ;;  %v3137_v44 = vld [vmem:[%s6904_s5 + $0x348] sm:$0xff] }
 0x327   : > { %3262 = vmatprep.mubr.f32.mxu1 %v3024_v11  ;;  %v3017_v9 = vld [vmem:[#allocation6 + $0xe8] sm:$0xff]  ;;  %4511 = vmatpush3.msra.mxu0 %v3140_v30  ;;  %v3025_v45 = vld [vmem:[#allocation6] sm:$0x1]  ;;  %v3152_v40 = vld [vmem:[%s6904_s5 + $0x3c0] sm:$0xff]  ;;  %v4404_v30 = vpop.f32.mrf.mxu1 }
 0x328   : > { %3342 = vmatprep.mubr.f32.mxu0 %v3017_v9  ;;  %3263 = vmatmul.mubr.f32.gmra.mxu1 %v3023_v63  ;;  %v3016_v27 = vld [vmem:[#allocation6 + $0x48] sm:$0xff]  ;;  %v3010_v33 = vld [vmem:[#allocation6 + $0x20] sm:$0xff]  ;;  %v3136_v47 = vld [vmem:[%s6904_s5 + $0x340] sm:$0xff] }
 0x329   : > { %v3154_v28 = vld [vmem:[%s6904_s5 + $0x3d0] sm:$0xff]  ;;  %4512 = vmatprep.subr.mxu0 %v3155_v34  ;;  %3417 = vmatprep.mubr.f32.mxu1 %v3001_v10  ;;  %v3173_v52 = vld [vmem:[%s6904_s5 + $0x468] sm:$0xff]  ;;  %v3172_v36 = vld [vmem:[%s6904_s5 + $0x460] sm:$0xff]  ;;  %v4405_v34 = vpop.f32.mrf.mxu1 }
 0x32a   : > { %3343 = vmatmul.mubr.f32.gmra.mxu0 %v3016_v27  ;;  %v3138_v21 = vld [vmem:[%s6904_s5 + $0x350] sm:$0xff]  ;;  %v3009_v53 = vld [vmem:[#allocation6 + $0x80] sm:$0xff]  ;;  %v3171_v46 = vld [vmem:[%s6904_s5 + $0x458] sm:$0xff] }
 0x32b   : > { %4513 = vmatpush3.msra.mxu0 %v3139_v17  ;;  %3347 = vmatprep.mubr.f32.mxu0 %v3026_v8  ;;  %v3174_v29 = vld [vmem:[%s6904_s5 + $0x470] sm:$0xff]  ;;  %v3019_v56 = vld [vmem:[#allocation6 + $0x60] sm:$0xff]  ;;  %v3148_v59 = vld [vmem:[%s6904_s5 + $0x3a0] sm:$0xff] }
 0x32c   : > { %4514 = vmatprep.subr.mxu0 %v3154_v28  ;;  %3418 = vmatmul.mubr.f32.vlgmr.msra.gmra.mxu1 %v3000_v37  ;;  %v3003_v48 = vld [vmem:[#allocation6 + $0x8] sm:$0xff]  ;;  %v3149_v43 = vld [vmem:[%s6904_s5 + $0x3a8] sm:$0xff]  ;;  %v3132_v61 = vld [vmem:[%s6904_s5 + $0x320] sm:$0xff] }
 0x32d   : > { %4515 = vmatpush3.msra.mxu0 %v3138_v21  ;;  %4604 = vmatpush3.msra.mxu1 %v6740_v54  ;;  %v3135_v54 = vld [vmem:[%s6904_s5 + $0x338] sm:$0xff]  ;;  %v3150_v35 = vld [vmem:[%s6904_s5 + $0x3b0] sm:$0xff]  ;;  %v3133_v14 = vld [vmem:[%s6904_s5 + $0x328] sm:$0xff] }
 0x32e   : > { %4516 = vmatprep.subr.mxu0 %v3153_v57  ;;  %3348 = vmatmul.mubr.f32.gmra.mxu0 %v3025_v45  ;;  %v3134_v12 = vld [vmem:[%s6904_s5 + $0x330] sm:$0xff]  ;;  %v3028_v26 = vld [vmem:[#allocation6 + $0xd8] sm:$0x1]  ;;  %v3147_v31 = vld [vmem:[%s6904_s5 + $0x398] sm:$0xff] }
 0x32f   : > { %4517 = vmatpush3.msra.mxu0 %v3137_v44  ;;  %3422 = vmatprep.mubr.f32.mxu1 %v3010_v33  ;;  %v3018_v60 = vld [vmem:[#allocation6 + $0x108] sm:$0xff]  ;;  %v3169_v62 = vld [vmem:[%s6904_s5 + $0x448] sm:$0xff]  ;;  %v3027_v0 = vld [vmem:[#allocation6 + $0x58] sm:$0x1] }
 0x330   : > { %4518 = vmatprep.subr.mxu0 %v3152_v40  ;;  %3502 = vmatprep.mubr.f32.mxu0 %v3003_v48  ;;  %v3170_v13 = vld [vmem:[%s6904_s5 + $0x450] sm:$0xff]  ;;  %v3131_v49 = vld [vmem:[%s6904_s5 + $0x318] sm:$0xff]  ;;  %v3168_v38 = vld [vmem:[%s6904_s5 + $0x440] sm:$0xff] }
 0x331   : > { %4605 = vmatprep.subr.mxu1 %v3174_v29  ;;  %4519 = vmatpush3.msra.mxu0 %v3136_v47  ;;  %v3146_v58 = vld [vmem:[%s6904_s5 + $0x390] sm:$0xff]  ;;  %v3004_v1 = vld [vmem:[#allocation6 + $0x18] sm:$0xff]  ;;  %v3145_v2 = vld [vmem:[%s6904_s5 + $0x388] sm:$0xff] }
 0x332   : > { %4606 = vmatpush3.msra.mxu1 %v3174_v29  ;;  %4520 = vmatprep.subr.mxu0 %v3151_v32  ;;  %v3130_v39 = vld [vmem:[%s6904_s5 + $0x310] sm:$0xff]  ;;  %v3167_v50 = vld [vmem:[%s6904_s5 + $0x438] sm:$0xff]  ;;  %v3129_v55 = vld [vmem:[%s6904_s5 + $0x308] sm:$0xff] }
 0x333   : > { %4607 = vmatprep.subr.mxu1 %v3173_v52  ;;  %3423 = vmatmul.mubr.f32.gmra.mxu1 %v3009_v53  ;;  %v3144_v3 = vld [vmem:[%s6904_s5 + $0x380] sm:$0xff]  ;;  %v3166_v4 = vld [vmem:[%s6904_s5 + $0x430] sm:$0xff]  ;;  %v3165_v15 = vld [vmem:[%s6904_s5 + $0x428] sm:$0xff] }
 0x334   : > { %4521 = vmatpush3.msra.mxu0 %v3135_v54  ;;  %4608 = vmatpush3.msra.mxu1 %v3173_v52  ;;  %v3128_v42 = vld [vmem:[%s6904_s5 + $0x300] sm:$0xff]  ;;  %v3002_v19 = vld [vmem:[#allocation6 + $0xe0] sm:$0xff]  ;;  %v3163_v18 = vld [vmem:[%s6904_s5 + $0x418] sm:$0xff] }
 0x335   : > { %3427 = vmatprep.mubr.f32.mxu1 %v3019_v56  ;;  %4522 = vmatprep.subr.mxu0 %v3150_v35  ;;  %v3164_v5 = vld [vmem:[%s6904_s5 + $0x420] sm:$0xff]  ;;  %v3021_v22 = vld [vmem:[#allocation6 + $0x68] sm:$0xff]  ;;  %v3011_v23 = vld [vmem:[#allocation6 + $0xa0] sm:$0xff]  ;;  %v4406_v56 = vadd.f32 %v4405_v34, %v4404_v30 }
 0x336   : > { %4609 = vmatprep.subr.mxu1 %v3172_v36  ;;  %4523 = vmatpush3.msra.mxu0 %v3134_v12  ;;  %v3012_v16 = vld [vmem:[#allocation6 + $0x118] sm:$0xff]  ;;  %v3162_v24 = vld [vmem:[%s6904_s5 + $0x410] sm:$0xff]  ;;  %v3020_v6 = vld [vmem:[#allocation6 + $0xc0] sm:$0xff] }
 0x337   : > { %4610 = vmatpush3.msra.mxu1 %v3172_v36  ;;  %4524 = vmatprep.subr.mxu0 %v3149_v43  ;;  %v3161_v51 = vld [vmem:[%s6904_s5 + $0x408] sm:$0xff]  ;;  %v3030_v7 = vld [vmem:[#allocation6 + $0x98] sm:$0x1]  ;;  %v3029_v25 = vld [vmem:[#allocation6 + $0x30] sm:$0x1] }
 0x338   : > { %4611 = vmatprep.subr.mxu1 %v3171_v46  ;;  %3428 = vmatmul.mubr.f32.gmra.mxu1 %v3018_v60  ;;  %v3160_v20 = vld [vmem:[%s6904_s5 + $0x400] sm:$0xff]  ;;  %v3013_v41 = vld [vmem:[#allocation6 + $0xd0] sm:$0xff] }
 0x339   : > { %4525 = vmatpush3.msra.mxu0 %v3133_v14  ;;  %4612 = vmatpush3.msra.mxu1 %v3171_v46  ;;  %v3022_v11 = vld [vmem:[#allocation6 + $0xb8] sm:$0xff]  ;;  %v3031_v9 = vld [vmem:[#allocation6 + $0xb0] sm:$0x1] }
 0x33a   : > { %4526 = vmatprep.subr.mxu0 %v3148_v59  ;;  %4613 = vmatprep.subr.mxu1 %v3170_v13  ;;  %v3681_v43 = vld [vmem:[%s6905_s6] ss:$0 sm:$0xff] }
 0x33b   : > { %4527 = vmatpush3.msra.mxu0 %v3132_v61  ;;  %4614 = vmatpush3.msra.mxu1 %v3170_v13 }
 0x33c   : > { %3432 = vmatprep.mubr.f32.mxu1 %v3028_v26  ;;  %4528 = vmatprep.subr.mxu0 %v3147_v31  ;;  %v3250_v26 = vadd.f32 %v4406_v56, %v3681_v43 }
 0x33d   : > { %4615 = vmatprep.subr.mxu1 %v3169_v62  ;;  %3433 = vmatmul.mubr.f32.gmra.mxu1 %v3027_v0 }
 0x33e   : > { %4529 = vmatpush3.msra.mxu0 %v3131_v49  ;;  %4616 = vmatpush3.msra.mxu1 %v3169_v62 }
 0x33f   : > { %4530 = vmatprep.subr.mxu0 %v3146_v58  ;;  %4617 = vmatprep.subr.mxu1 %v3168_v38 }
 0x340   : > { %4635 = vmatprep.mubr.f32.mxu1 %v3004_v1  ;;  %4531 = vmatpush3.msra.mxu0 %v3130_v39 }
 0x341   : > { %4618 = vmatpush3.msra.mxu1 %v3168_v38  ;;  %4532 = vmatprep.subr.mxu0 %v3145_v2 }
 0x342   : > { %4619 = vmatprep.subr.mxu1 %v3167_v50  ;;  %4533 = vmatpush3.msra.mxu0 %v3129_v55 }
 0x343   : > { %4620 = vmatpush3.msra.mxu1 %v3167_v50  ;;  %4534 = vmatprep.subr.mxu0 %v3144_v3 }
 0x344   : > { %4621 = vmatprep.subr.mxu1 %v3166_v4  ;;  %4535 = vmatpush3.msra.mxu0 %v3128_v42 }
 0x345   : > { %4622 = vmatpush3.msra.mxu1 %v3166_v4  ;;  %3503 = vmatmul.mubr.f32.vlgmr.msra.gmra.mxu0 %v3002_v19 }
 0x346   : > { %4623 = vmatprep.subr.mxu1 %v3165_v15  ;;  %3507 = vmatprep.mubr.f32.mxu0 %v3012_v16 }
 0x347   : > { %4624 = vmatpush3.msra.mxu1 %v3165_v15 }
 0x348   : > { %4625 = vmatprep.subr.mxu1 %v3164_v5 }
 0x349   : > { %4626 = vmatpush3.msra.mxu1 %v3164_v5  ;;  %3508 = vmatmul.mubr.f32.gmra.mxu0 %v3011_v23 }
 0x34a   : > { %4627 = vmatprep.subr.mxu1 %v3163_v18  ;;  %3512 = vmatprep.mubr.f32.mxu0 %v3021_v22 }
 0x34b   : > { %4628 = vmatpush3.msra.mxu1 %v3163_v18 }
 0x34c   : > { %4629 = vmatprep.subr.mxu1 %v3162_v24 }
 0x34d   : > { %4630 = vmatpush3.msra.mxu1 %v3162_v24  ;;  %3513 = vmatmul.mubr.f32.gmra.mxu0 %v3020_v6 }
 0x34e   : > { %4631 = vmatprep.subr.mxu1 %v3161_v51  ;;  %3517 = vmatprep.mubr.f32.mxu0 %v3030_v7 }
 0x34f   : > { %4632 = vmatpush3.msra.mxu1 %v3161_v51 }
 0x350   : > { %4633 = vmatprep.subr.mxu1 %v3160_v20 }
 0x351   : > { %4634 = vmatpush3.msra.mxu1 %v3160_v20  ;;  %3518 = vmatmul.mubr.f32.gmra.mxu0 %v3029_v25 }
 0x352   : > { %4636 = vmatmul.mubr.f32.vlgmr.msra.gmra.mxu1 %v3013_v41 }
 0x353   : > { %4638 = vmatprep.mubr.f32.mxu1 %v3022_v11 }
 0x356   : > { %4639 = vmatmul.mubr.f32.gmra.mxu1 %v3031_v9 }
 0x3df   : > { %v4448_v8 = vpop.f32.mrf.mxu0 }
 0x3e0   : > { %v4407_v63 = vpop.f32.mrf.mxu1 }
 0x3e1   : > { %v4449_v21 = vpop.f32.mrf.mxu0 }
 0x3e2   : > { %v4408_v17 = vpop.f32.mrf.mxu1  ;;  %v4450_v13 = vadd.f32 %v4449_v21, %v4448_v8 }
 0x3e3   : > { %v4409_v36 = vadd.f32 %v4408_v17, %v4407_v63 }
 0x3e4   : > { %v4410_v27 = vpop.f32.mrf.mxu1  ;;  %v3335_v50 = vadd.f32 %v4450_v13, %v3250_v26 }
 0x3e5   : > { %v3255_v60 = vadd.f32 %v4409_v36, %v3681_v43 }
 0x3e6   : > { %v4411_v28 = vpop.f32.mrf.mxu1  ;;  %v4451_v37 = vpop.f32.mrf.mxu0 }
 0x3e7   : > { %v4412_v31 = vadd.f32 %v4411_v28, %v4410_v27 }
 0x3e8   : > { %v4413_v10 = vpop.f32.mrf.mxu1  ;;  %v4452_v45 = vpop.f32.mrf.mxu0 }
 0x3e9   : > { %v4453_v46 = vadd.f32 %v4452_v45, %v4451_v37  ;;  %v3260_v42 = vadd.f32 %v4412_v31, %v3681_v43 }
 0x3ea   : > { %v4414_v57 = vpop.f32.mrf.mxu1  ;;  %v4454_v29 = vpop.f32.mrf.mxu0 }
 0x3eb   : > { %v3340_v0 = vadd.f32 %v4453_v46, %v3255_v60  ;;  %v4415_v49 = vadd.f32 %v4414_v57, %v4413_v10 }
 0x3ec   : > { %v4492_v44 = vpop.f32.mrf.mxu1  ;;  %v4455_v47 = vpop.f32.mrf.mxu0 }
 0x3ed   : > { %v4456_v39 = vadd.f32 %v4455_v47, %v4454_v29  ;;  %v3265_v5 = vadd.f32 %v4415_v49, %v3681_v43 }
 0x3ee   : > { %v4493_v40 = vpop.f32.mrf.mxu1  ;;  %v4457_v32 = vpop.f32.mrf.mxu0 }
 0x3ef   : > { %v4494_v58 = vadd.f32 %v4493_v40, %v4492_v44  ;;  %v3345_v23 = vadd.f32 %v4456_v39, %v3260_v42 }
 0x3f0   : > { %v4458_v54 = vpop.f32.mrf.mxu0 }
 0x3f1   : > { %v4459_v55 = vadd.f32 %v4458_v54, %v4457_v32  ;;  %v3420_v16 = vadd.f32 %v4494_v58, %v3335_v50 }
 0x3f3   : > { %v4495_v33 = vpop.f32.mrf.mxu1  ;;  %v3350_v51 = vadd.f32 %v4459_v55, %v3265_v5 }
 0x3f5   : > { %v4496_v48 = vpop.f32.mrf.mxu1 }
 0x3f6   : > { %v4497_v61 = vadd.f32 %v4496_v48, %v4495_v33 }
 0x3f8   : > { %v4498_v52 = vpop.f32.mrf.mxu1  ;;  %v3425_v3 = vadd.f32 %v4497_v61, %v3340_v0 }
 0x3fa   : > { %v4499_v53 = vpop.f32.mrf.mxu1 }
 0x3fb   : > { %v4500_v15 = vadd.f32 %v4499_v53, %v4498_v52 }
 0x3fd   : > { %v4501_v14 = vpop.f32.mrf.mxu1  ;;  %v3430_v11 = vadd.f32 %v4500_v15, %v3345_v23 }
 0x3ff   : > { %v4502_v1 = vpop.f32.mrf.mxu1 }
 0x400   : > { %v4503_v18 = vadd.f32 %v4502_v1, %v4501_v14 }
 0x402   : > { %v3435_v30 = vadd.f32 %v4503_v18, %v3350_v51 }
 0x405   : > { %v4536_v35 = vpop.f32.mrf.mxu0 }
 0x407   : > { %v4537_v12 = vpop.f32.mrf.mxu0 }
 0x408   : > { %v4538_v4 = vadd.f32 %v4537_v12, %v4536_v35 }
 0x409   : > { %v4539_v59 = vpop.f32.mrf.mxu0 }
 0x40a   : > { %v3505_v25 = vadd.f32 %v4538_v4, %v3420_v16 }
 0x40b   : > { %v4540_v62 = vpop.f32.mrf.mxu0 }
 0x40c   : > { %v4541_v38 = vadd.f32 %v4540_v62, %v4539_v59 }
 0x40d   : > { %v4542_v2 = vpop.f32.mrf.mxu0 }
 0x40e   : > { %v3510_v22 = vadd.f32 %v4541_v38, %v3425_v3 }
 0x40f   : > { %v4543_v19 = vpop.f32.mrf.mxu0 }
 0x410   : > { %v4544_v7 = vadd.f32 %v4543_v19, %v4542_v2 }
 0x411   : > { %v4545_v24 = vpop.f32.mrf.mxu0 }
 0x412   : > { %v4637_v6 = vpop.f32.mrf.mxu1  ;;  %v3515_v10 = vadd.f32 %v4544_v7, %v3430_v11 }
 0x413   : > { %v3595_v20 = vadd.f32 %v4637_v6, %v3510_v22  ;;  %v4546_v41 = vpop.f32.mrf.mxu0 }
 0x414   : > { %v3589_v9 = vpop.f32.mrf.mxu1  ;;  %v4547_v63 = vadd.f32 %v4546_v41, %v4545_v24 }
 0x415   : > { %v3609_v34 = vmax.f32 %v3595_v20, 0.0  ;;  %v3590_v17 = vadd.f32 %v3589_v9, %v3505_v25 }
 0x416   : > { %v4640_v27 = vpop.f32.mrf.mxu1  ;;  %v3520_v8 = vadd.f32 %v4547_v63, %v3435_v30 }
 0x417   : > { %3613 = vst [vmem:[%s278_s14 + $0x8] sm:$0xff] %v3609_v34  ;;  %v3608_v28 = vmax.f32 %v3590_v17, 0.0 }
 0x418   : > { %v3599_v21 = vpop.f32.mrf.mxu1  ;;  %v3605_v57 = vadd.f32 %v4640_v27, %v3520_v8 }
 0x419   : > { %3612 = vst [vmem:[%s278_s14] sm:$0xff] %v3608_v28  ;;  %v3600_v37 = vadd.f32 %v3599_v21, %v3515_v10 }
 0x41a   : > { %v3611_v44 = vmax.f32 %v3605_v57, 0.0 }
 0x41b   : > { %v3610_v45 = vmax.f32 %v3600_v37, 0.0 }
 0x41c   : > { %3615 = vst [vmem:[%s278_s14 + $0x18] sm:$0x1] %v3611_v44 }
 0x41d   : > { %3614 = vst [vmem:[%s278_s14 + $0x10] sm:$0xff] %v3610_v45 }
 0x41e PF: > { %s17_s24 = sadd.s32 1, %s4657_s24  }
 0x41f   : > { %p14_p4 = scmp.ge.s32.totalorder %s17_s24, 4  }
 0x421   :  { %16 = sbr.rel (!%p14_p4) target bundleno = 1 (0x1), region = 78 }

</bundles_post_ra>
